<compile_context>
chip_gen: v6e
topology: v6e:2x2x1
jax: 0.10.0
libtpu: 0.0.40
codegen_flags: <defaults>
</compile_context>

<pallas_src>
import functools

import jax
import jax.numpy as jnp
from jax.experimental import pallas as pl
from jax.experimental.pallas import tpu as pltpu

EPS = 1e-5     # torch.nn.InstanceNorm3d default eps (affine=False, no running stats)
PAD = 128      # zero halo (flat-spatial lanes) each side; must be >= H2*W2 + W2 + 1


def _conv_in_relu(xflat, w_ref, hwmask, xe_ref, col_ref, spatial):
    """3x3x3 'same' conv -> InstanceNorm3d(affine=False) -> ReLU (spatial-in-lanes).

    xflat  : (Ci, nsp) f32, nsp = D*H*W flat spatial (lane-dense)
    w_ref  : (Co, 27*Ci) bf16 im2col weights, columns ordered (kd, kh, kw, ci)
    hwmask : (9, nsp) f32 {0,1}: validity of (h+kh-1, w+kw-1), index (kh+1)*3+(kw+1)
    xe_ref : (Ci, PAD + nsp + PAD) f32 scratch (zero halo absorbs the d-boundary)
    col_ref: (27*Ci, nsp) f32 scratch (lane-dense row-slab stores)
    returns: (Co, nsp) f32
    """
    D, H, W = spatial
    Ci, nsp = xflat.shape

    # Stage the activation with a zero halo; only the 2*PAD halo lanes get (re)zeroed.
    xe_ref[:, 0:PAD] = jnp.zeros((Ci, PAD), jnp.float32)
    xe_ref[:, PAD + nsp:2 * PAD + nsp] = jnp.zeros((Ci, PAD), jnp.float32)
    xe_ref[:, PAD:PAD + nsp] = xflat

    # im2col in flipped orientation: 27 shifted (Ci, nsp) slabs, each a static
    # lane-window read of the haloed activation plus a 0/1 (kh,kw) validity mask.
    tap = 0
    for kd in (-1, 0, 1):
        for kh in (-1, 0, 1):
            for kw in (-1, 0, 1):
                delta = kd * H * W + kh * W + kw
                slab = xe_ref[:, PAD + delta:PAD + delta + nsp]   # x[:, d+kd, h+kh, w+kw]
                if not (kh == 0 and kw == 0):                     # center column mask == 1
                    mi = (kh + 1) * 3 + (kw + 1)
                    slab = slab * hwmask[mi:mi + 1]
                col_ref[tap * Ci:(tap + 1) * Ci, :] = slab
                tap += 1

    # One MXU matmul with K = 27*Ci and a (Cout x 512-lane) output: lane-dense, no
    # transpose. bf16 operands (single MXU pass), f32 accumulation.
    acc = jnp.dot(w_ref[...], col_ref[...].astype(jnp.bfloat16),
                  preferred_element_type=jnp.float32)             # (Co, nsp)

    # InstanceNorm3d(affine=False) + ReLU; one-pass stats over the dense lane axis.
    m = jnp.mean(acc, axis=1, keepdims=True)
    var = jnp.mean(acc * acc, axis=1, keepdims=True) - m * m
    return jnp.maximum((acc - m) * jax.lax.rsqrt(var + EPS), 0.0)


def _down_kernel(x_ref, mask_ref, w1_ref, w2_ref, o_ref,
                 xe1_ref, xe2_ref, col1_ref, col2_ref, *, spatial):
    # x_ref : (8, Cin, nsp)  the 8 MaxPool3d(k=2) partner slabs of one batch element
    # o_ref : (Cout, nsp)    lane-dense NCDHW-flat output for that batch element

    # ---- MaxPool3d(kernel_size=2): 7 dense-lane VPU maxima -------------------------
    pooled = jnp.maximum(
        jnp.maximum(jnp.maximum(x_ref[0], x_ref[1]), jnp.maximum(x_ref[2], x_ref[3])),
        jnp.maximum(jnp.maximum(x_ref[4], x_ref[5]), jnp.maximum(x_ref[6], x_ref[7])))

    hwmask = mask_ref[...]                                        # (9, nsp)

    # conv bias omitted: it cancels exactly under InstanceNorm3d(affine=False)
    y1 = _conv_in_relu(pooled, w1_ref, hwmask, xe1_ref, col1_ref, spatial)
    y2 = _conv_in_relu(y1, w2_ref, hwmask, xe2_ref, col2_ref, spatial)
    o_ref[...] = y2.astype(o_ref.dtype)


@jax.jit
def down_forward(x_ncdhw, w1, b1, w2, b2):
    # b1/b2 accepted for interface parity with nn.Conv3d; per-channel conv biases are
    # exactly cancelled by InstanceNorm3d(affine=False) -> dropped (dead work).
    # NOTE: this elision is only valid while the norm stays affine=False instance norm.
    del b1, b2
    N, Cin, D, H, W = x_ncdhw.shape
    Cout = w1.shape[-1]
    assert D % 2 == 0 and H % 2 == 0 and W % 2 == 0
    D2, H2, W2 = D // 2, H // 2, W // 2
    nsp = D2 * H2 * W2
    assert H2 * W2 + W2 + 1 <= PAD, "flat tap offset must fit inside the zero halo"
    assert nsp % 128 == 0, "flat pooled spatial must be lane-dense (multiple of 128)"

    # Pack the 8 pool partners into a leading dim and the pooled flat spatial into lanes.
    xp = x_ncdhw.astype(jnp.float32).reshape(N, Cin, D2, 2, H2, 2, W2, 2)
    xp = jnp.transpose(xp, (0, 3, 5, 7, 1, 2, 4, 6)).reshape(N, 8, Cin, nsp)

    # (kh, kw) halo-validity masks over the flat spatial index (d handled by zero halo).
    sidx = jnp.arange(nsp, dtype=jnp.int32)
    hh = (sidx // W2) % H2
    ww = sidx % W2
    rows = []
    for kh in (-1, 0, 1):
        for kw in (-1, 0, 1):
            ok = (hh + kh >= 0) & (hh + kh < H2) & (ww + kw >= 0) & (ww + kw < W2)
            rows.append(ok.astype(jnp.float32))
    hwmask = jnp.stack(rows)                                      # (9, nsp)

    # im2col weights, flipped orientation (Cout, 27*Cin), columns (kd,kh,kw,ci)-major, bf16.
    w1c = jnp.transpose(w1, (4, 0, 1, 2, 3)).reshape(Cout, 27 * Cin).astype(jnp.bfloat16)
    w2c = jnp.transpose(w2, (4, 0, 1, 2, 3)).reshape(Cout, 27 * Cout).astype(jnp.bfloat16)

    out = pl.pallas_call(
        functools.partial(_down_kernel, spatial=(D2, H2, W2)),
        out_shape=jax.ShapeDtypeStruct((N, Cout, nsp), jnp.float32),
        grid=(N,),
        in_specs=[
            pl.BlockSpec((None, 8, Cin, nsp), lambda n: (n, 0, 0, 0)),   # pool partners
            pl.BlockSpec((9, nsp), lambda n: (0, 0)),                    # halo masks
            pl.BlockSpec((Cout, 27 * Cin), lambda n: (0, 0)),            # conv1 weights
            pl.BlockSpec((Cout, 27 * Cout), lambda n: (0, 0)),           # conv2 weights
        ],
        out_specs=pl.BlockSpec((None, Cout, nsp), lambda n: (n, 0, 0)),
        scratch_shapes=[
            pltpu.VMEM((Cin, 2 * PAD + nsp), jnp.float32),    # zero-haloed pooled input
            pltpu.VMEM((Cout, 2 * PAD + nsp), jnp.float32),   # zero-haloed conv1 output
            pltpu.VMEM((27 * Cin, nsp), jnp.float32),         # im2col, conv1
            pltpu.VMEM((27 * Cout, nsp), jnp.float32),        # im2col, conv2
        ],
        compiler_params=pltpu.CompilerParams(dimension_semantics=("parallel",)),
    )(xp, hwmask, w1c, w2c)

    # (N, Cout, D2*H2*W2) is already NCDHW-flat order -> free reshape, no transpose.
    return out.reshape(N, Cout, D2, H2, W2)


# ------------------------------- pure-JAX reference --------------------------------- #
def _ref_down(x_ncdhw, w1, b1, w2, b2):
    x = jnp.transpose(x_ncdhw, (0, 2, 3, 4, 1))
    N, D, H, W, C = x.shape
    x = x.reshape(N, D // 2, 2, H // 2, 2, W // 2, 2, C).max(axis=(2, 4, 6))

    def block(v, w, b):
        y = jax.lax.conv_general_dilated(
            v, w, window_strides=(1, 1, 1), padding="SAME",
            dimension_numbers=("NDHWC", "DHWIO", "NDHWC"))
        y = y + b  # bias kept here to demonstrate it cancels under InstanceNorm
        mean = y.mean(axis=(1, 2, 3), keepdims=True)
        var = ((y - mean) ** 2).mean(axis=(1, 2, 3), keepdims=True)
        return jnp.maximum((y - mean) * jax.lax.rsqrt(var + EPS), 0.0)

    x = block(x, w1, b1)
    x = block(x, w2, b2)
    return jnp.transpose(x, (0, 4, 1, 2, 3))


if __name__ == "__main__":
    key = jax.random.PRNGKey(0)
    kx, k1, k2, k3, k4 = jax.random.split(key, 5)

    N, Cin, Cout = 2, 4, 8
    D = H = W = 16
    x = jax.random.normal(kx, (N, Cin, D, H, W), jnp.float32)          # PyTorch NCDHW input
    # deterministic synthetic parameters (shapes from Conv3d(k=3) in DoubleConv, DHWIO)
    w1 = jax.random.normal(k1, (3, 3, 3, Cin, Cout), jnp.float32) * 0.1
    b1 = jax.random.normal(k2, (Cout,), jnp.float32) * 0.1
    w2 = jax.random.normal(k3, (3, 3, 3, Cout, Cout), jnp.float32) * 0.1
    b2 = jax.random.normal(k4, (Cout,), jnp.float32) * 0.1

    out = jax.block_until_ready(down_forward(x, w1, b1, w2, b2))
    ref = jax.block_until_ready(_ref_down(x, w1, b1, w2, b2))

    assert out.shape == (N, Cout, D // 2, H // 2, W // 2), out.shape
    # bf16 accuracy contract: MXU operands are bf16 (single pass), accumulation f32;
    # post-InstanceNorm outputs are unit-variance, so 5e-2 is loose vs. observed error
    # yet still catches any voxel-alignment / layout bug (those produce O(1) errors).
    err = float(jnp.max(jnp.abs(out - ref)))
    assert jnp.allclose(out, ref, atol=5e-2, rtol=5e-2), err
    print("KERNEL_OK")
</pallas_src>

<mosaic_0001>
module attributes {stable_mosaic.version = 11 : i64} {
  func.func @_down_kernel(%arg0: i32, %arg1: memref<1x8x4x512xf32, #tpu.memory_space<vmem>>, %arg2: memref<9x512xf32, #tpu.memory_space<vmem>>, %arg3: memref<8x108xbf16, #tpu.memory_space<vmem>>, %arg4: memref<8x216xbf16, #tpu.memory_space<vmem>>, %arg5: memref<1x8x512xf32, #tpu.memory_space<vmem>>, %arg6: memref<4x768xf32, #tpu.memory_space<vmem>>, %arg7: memref<8x768xf32, #tpu.memory_space<vmem>>, %arg8: memref<108x512xf32, #tpu.memory_space<vmem>>, %arg9: memref<216x512xf32, #tpu.memory_space<vmem>>) attributes {dimension_semantics = [#tpu.dimension_semantics<parallel>], iteration_bounds = array<i64: 2>, scalar_prefetch = 0 : i64, scratch_operands = 4 : i64, tpu.core_type = #tpu.core_type<tc>, window_params = [{transform_indices = @transform_0, window_bounds = array<i64: 1, 8, 4, 512>}, {pipeline_mode = #tpu.pipeline_mode<synchronous>, transform_indices = @transform_1, window_bounds = array<i64: 9, 512>}, {pipeline_mode = #tpu.pipeline_mode<synchronous>, transform_indices = @transform_2, window_bounds = array<i64: 8, 108>}, {pipeline_mode = #tpu.pipeline_mode<synchronous>, transform_indices = @transform_3, window_bounds = array<i64: 8, 216>}, {transform_indices = @transform_4, window_bounds = array<i64: 1, 8, 512>}]} {
    %c0 = arith.constant 0 : index
    %c0_0 = arith.constant 0 : index
    %c0_1 = arith.constant 0 : index
    %c0_2 = arith.constant 0 : index
    %0 = vector.load %arg1[%c0, %c0_0, %c0_1, %c0_2] : memref<1x8x4x512xf32, #tpu.memory_space<vmem>>, vector<1x1x4x512xf32>
    %1 = vector.shape_cast %0 : vector<1x1x4x512xf32> to vector<4x512xf32>
    %c0_3 = arith.constant 0 : index
    %c1 = arith.constant 1 : index
    %c0_4 = arith.constant 0 : index
    %c0_5 = arith.constant 0 : index
    %2 = vector.load %arg1[%c0_3, %c1, %c0_4, %c0_5] : memref<1x8x4x512xf32, #tpu.memory_space<vmem>>, vector<1x1x4x512xf32>
    %3 = vector.shape_cast %2 : vector<1x1x4x512xf32> to vector<4x512xf32>
    %4 = arith.maximumf %1, %3 : vector<4x512xf32>
    %c0_6 = arith.constant 0 : index
    %c2 = arith.constant 2 : index
    %c0_7 = arith.constant 0 : index
    %c0_8 = arith.constant 0 : index
    %5 = vector.load %arg1[%c0_6, %c2, %c0_7, %c0_8] : memref<1x8x4x512xf32, #tpu.memory_space<vmem>>, vector<1x1x4x512xf32>
    %6 = vector.shape_cast %5 : vector<1x1x4x512xf32> to vector<4x512xf32>
    %c0_9 = arith.constant 0 : index
    %c3 = arith.constant 3 : index
    %c0_10 = arith.constant 0 : index
    %c0_11 = arith.constant 0 : index
    %7 = vector.load %arg1[%c0_9, %c3, %c0_10, %c0_11] : memref<1x8x4x512xf32, #tpu.memory_space<vmem>>, vector<1x1x4x512xf32>
    %8 = vector.shape_cast %7 : vector<1x1x4x512xf32> to vector<4x512xf32>
    %9 = arith.maximumf %6, %8 : vector<4x512xf32>
    %10 = arith.maximumf %4, %9 : vector<4x512xf32>
    %c0_12 = arith.constant 0 : index
    %c4 = arith.constant 4 : index
    %c0_13 = arith.constant 0 : index
    %c0_14 = arith.constant 0 : index
    %11 = vector.load %arg1[%c0_12, %c4, %c0_13, %c0_14] : memref<1x8x4x512xf32, #tpu.memory_space<vmem>>, vector<1x1x4x512xf32>
    %12 = vector.shape_cast %11 : vector<1x1x4x512xf32> to vector<4x512xf32>
    %c0_15 = arith.constant 0 : index
    %c5 = arith.constant 5 : index
    %c0_16 = arith.constant 0 : index
    %c0_17 = arith.constant 0 : index
    %13 = vector.load %arg1[%c0_15, %c5, %c0_16, %c0_17] : memref<1x8x4x512xf32, #tpu.memory_space<vmem>>, vector<1x1x4x512xf32>
    %14 = vector.shape_cast %13 : vector<1x1x4x512xf32> to vector<4x512xf32>
    %15 = arith.maximumf %12, %14 : vector<4x512xf32>
    %c0_18 = arith.constant 0 : index
    %c6 = arith.constant 6 : index
    %c0_19 = arith.constant 0 : index
    %c0_20 = arith.constant 0 : index
    %16 = vector.load %arg1[%c0_18, %c6, %c0_19, %c0_20] : memref<1x8x4x512xf32, #tpu.memory_space<vmem>>, vector<1x1x4x512xf32>
    %17 = vector.shape_cast %16 : vector<1x1x4x512xf32> to vector<4x512xf32>
    %c0_21 = arith.constant 0 : index
    %c7 = arith.constant 7 : index
    %c0_22 = arith.constant 0 : index
    %c0_23 = arith.constant 0 : index
    %18 = vector.load %arg1[%c0_21, %c7, %c0_22, %c0_23] : memref<1x8x4x512xf32, #tpu.memory_space<vmem>>, vector<1x1x4x512xf32>
    %19 = vector.shape_cast %18 : vector<1x1x4x512xf32> to vector<4x512xf32>
    %20 = arith.maximumf %17, %19 : vector<4x512xf32>
    %21 = arith.maximumf %15, %20 : vector<4x512xf32>
    %22 = arith.maximumf %10, %21 : vector<4x512xf32>
    %c0_24 = arith.constant 0 : index
    %c0_25 = arith.constant 0 : index
    %23 = vector.load %arg2[%c0_24, %c0_25] : memref<9x512xf32, #tpu.memory_space<vmem>>, vector<9x512xf32>
    %cst = arith.constant 0.000000e+00 : f32
    %24 = vector.broadcast %cst : f32 to vector<4x128xf32>
    %c0_26 = arith.constant 0 : index
    %c0_27 = arith.constant 0 : index
    %25 = vector.load %arg6[%c0_26, %c0_27] : memref<4x768xf32, #tpu.memory_space<vmem>>, vector<4x128xf32>
    tpu.vector_store %arg6[%c0_26, %c0_27], %24 {strides = array<i32>} : memref<4x768xf32, #tpu.memory_space<vmem>>, vector<4x128xf32>,
    %cst_28 = arith.constant 0.000000e+00 : f32
    %26 = vector.broadcast %cst_28 : f32 to vector<4x128xf32>
    %c0_29 = arith.constant 0 : index
    %c640 = arith.constant 640 : index
    %27 = vector.load %arg6[%c0_29, %c640] : memref<4x768xf32, #tpu.memory_space<vmem>>, vector<4x128xf32>
    tpu.vector_store %arg6[%c0_29, %c640], %26 {strides = array<i32>} : memref<4x768xf32, #tpu.memory_space<vmem>>, vector<4x128xf32>,
    %c0_30 = arith.constant 0 : index
    %c128 = arith.constant 128 : index
    %28 = vector.load %arg6[%c0_30, %c128] : memref<4x768xf32, #tpu.memory_space<vmem>>, vector<4x512xf32>
    tpu.vector_store %arg6[%c0_30, %c128], %22 {strides = array<i32>} : memref<4x768xf32, #tpu.memory_space<vmem>>, vector<4x512xf32>,
    %c0_31 = arith.constant 0 : index
    %c55 = arith.constant 55 : index
    %29 = vector.load %arg6[%c0_31, %c55] : memref<4x768xf32, #tpu.memory_space<vmem>>, vector<4x512xf32>
    %30 = vector.extract_strided_slice %23 {offsets = [0, 0], sizes = [1, 512], strides = [1, 1]} : vector<9x512xf32> to vector<1x512xf32>
    %31 = vector.broadcast %30 : vector<1x512xf32> to vector<4x512xf32>
    %32 = arith.mulf %29, %31 : vector<4x512xf32>
    %c0_32 = arith.constant 0 : index
    %c0_33 = arith.constant 0 : index
    %33 = vector.load %arg8[%c0_32, %c0_33] : memref<108x512xf32, #tpu.memory_space<vmem>>, vector<4x512xf32>
    tpu.vector_store %arg8[%c0_32, %c0_33], %32 {strides = array<i32>} : memref<108x512xf32, #tpu.memory_space<vmem>>, vector<4x512xf32>,
    %c0_34 = arith.constant 0 : index
    %c56 = arith.constant 56 : index
    %34 = vector.load %arg6[%c0_34, %c56] : memref<4x768xf32, #tpu.memory_space<vmem>>, vector<4x512xf32>
    %35 = vector.extract_strided_slice %23 {offsets = [1, 0], sizes = [1, 512], strides = [1, 1]} : vector<9x512xf32> to vector<1x512xf32>
    %36 = vector.broadcast %35 : vector<1x512xf32> to vector<4x512xf32>
    %37 = arith.mulf %34, %36 : vector<4x512xf32>
    %c4_35 = arith.constant 4 : index
    %c0_36 = arith.constant 0 : index
    %38 = vector.load %arg8[%c4_35, %c0_36] : memref<108x512xf32, #tpu.memory_space<vmem>>, vector<4x512xf32>
    tpu.vector_store %arg8[%c4_35, %c0_36], %37 {strides = array<i32>} : memref<108x512xf32, #tpu.memory_space<vmem>>, vector<4x512xf32>,
    %c0_37 = arith.constant 0 : index
    %c57 = arith.constant 57 : index
    %39 = vector.load %arg6[%c0_37, %c57] : memref<4x768xf32, #tpu.memory_space<vmem>>, vector<4x512xf32>
    %40 = vector.extract_strided_slice %23 {offsets = [2, 0], sizes = [1, 512], strides = [1, 1]} : vector<9x512xf32> to vector<1x512xf32>
    %41 = vector.broadcast %40 : vector<1x512xf32> to vector<4x512xf32>
    %42 = arith.mulf %39, %41 : vector<4x512xf32>
    %c8 = arith.constant 8 : index
    %c0_38 = arith.constant 0 : index
    %43 = vector.load %arg8[%c8, %c0_38] : memref<108x512xf32, #tpu.memory_space<vmem>>, vector<4x512xf32>
    tpu.vector_store %arg8[%c8, %c0_38], %42 {strides = array<i32>} : memref<108x512xf32, #tpu.memory_space<vmem>>, vector<4x512xf32>,
    %c0_39 = arith.constant 0 : index
    %c63 = arith.constant 63 : index
    %44 = vector.load %arg6[%c0_39, %c63] : memref<4x768xf32, #tpu.memory_space<vmem>>, vector<4x512xf32>
    %45 = vector.extract_strided_slice %23 {offsets = [3, 0], sizes = [1, 512], strides = [1, 1]} : vector<9x512xf32> to vector<1x512xf32>
    %46 = vector.broadcast %45 : vector<1x512xf32> to vector<4x512xf32>
    %47 = arith.mulf %44, %46 : vector<4x512xf32>
    %c12 = arith.constant 12 : index
    %c0_40 = arith.constant 0 : index
    %48 = vector.load %arg8[%c12, %c0_40] : memref<108x512xf32, #tpu.memory_space<vmem>>, vector<4x512xf32>
    tpu.vector_store %arg8[%c12, %c0_40], %47 {strides = array<i32>} : memref<108x512xf32, #tpu.memory_space<vmem>>, vector<4x512xf32>,
    %c0_41 = arith.constant 0 : index
    %c64 = arith.constant 64 : index
    %49 = vector.load %arg6[%c0_41, %c64] : memref<4x768xf32, #tpu.memory_space<vmem>>, vector<4x512xf32>
    %c16 = arith.constant 16 : index
    %c0_42 = arith.constant 0 : index
    %50 = vector.load %arg8[%c16, %c0_42] : memref<108x512xf32, #tpu.memory_space<vmem>>, vector<4x512xf32>
    tpu.vector_store %arg8[%c16, %c0_42], %49 {strides = array<i32>} : memref<108x512xf32, #tpu.memory_space<vmem>>, vector<4x512xf32>,
    %c0_43 = arith.constant 0 : index
    %c65 = arith.constant 65 : index
    %51 = vector.load %arg6[%c0_43, %c65] : memref<4x768xf32, #tpu.memory_space<vmem>>, vector<4x512xf32>
    %52 = vector.extract_strided_slice %23 {offsets = [5, 0], sizes = [1, 512], strides = [1, 1]} : vector<9x512xf32> to vector<1x512xf32>
    %53 = vector.broadcast %52 : vector<1x512xf32> to vector<4x512xf32>
    %54 = arith.mulf %51, %53 : vector<4x512xf32>
    %c20 = arith.constant 20 : index
    %c0_44 = arith.constant 0 : index
    %55 = vector.load %arg8[%c20, %c0_44] : memref<108x512xf32, #tpu.memory_space<vmem>>, vector<4x512xf32>
    tpu.vector_store %arg8[%c20, %c0_44], %54 {strides = array<i32>} : memref<108x512xf32, #tpu.memory_space<vmem>>, vector<4x512xf32>,
    %c0_45 = arith.constant 0 : index
    %c71 = arith.constant 71 : index
    %56 = vector.load %arg6[%c0_45, %c71] : memref<4x768xf32, #tpu.memory_space<vmem>>, vector<4x512xf32>
    %57 = vector.extract_strided_slice %23 {offsets = [6, 0], sizes = [1, 512], strides = [1, 1]} : vector<9x512xf32> to vector<1x512xf32>
    %58 = vector.broadcast %57 : vector<1x512xf32> to vector<4x512xf32>
    %59 = arith.mulf %56, %58 : vector<4x512xf32>
    %c24 = arith.constant 24 : index
    %c0_46 = arith.constant 0 : index
    %60 = vector.load %arg8[%c24, %c0_46] : memref<108x512xf32, #tpu.memory_space<vmem>>, vector<4x512xf32>
    tpu.vector_store %arg8[%c24, %c0_46], %59 {strides = array<i32>} : memref<108x512xf32, #tpu.memory_space<vmem>>, vector<4x512xf32>,
    %c0_47 = arith.constant 0 : index
    %c72 = arith.constant 72 : index
    %61 = vector.load %arg6[%c0_47, %c72] : memref<4x768xf32, #tpu.memory_space<vmem>>, vector<4x512xf32>
    %62 = vector.extract_strided_slice %23 {offsets = [7, 0], sizes = [1, 512], strides = [1, 1]} : vector<9x512xf32> to vector<1x512xf32>
    %63 = vector.broadcast %62 : vector<1x512xf32> to vector<4x512xf32>
    %64 = arith.mulf %61, %63 : vector<4x512xf32>
    %c28 = arith.constant 28 : index
    %c0_48 = arith.constant 0 : index
    %65 = vector.load %arg8[%c28, %c0_48] : memref<108x512xf32, #tpu.memory_space<vmem>>, vector<4x512xf32>
    tpu.vector_store %arg8[%c28, %c0_48], %64 {strides = array<i32>} : memref<108x512xf32, #tpu.memory_space<vmem>>, vector<4x512xf32>,
    %c0_49 = arith.constant 0 : index
    %c73 = arith.constant 73 : index
    %66 = vector.load %arg6[%c0_49, %c73] : memref<4x768xf32, #tpu.memory_space<vmem>>, vector<4x512xf32>
    %67 = vector.extract_strided_slice %23 {offsets = [8, 0], sizes = [1, 512], strides = [1, 1]} : vector<9x512xf32> to vector<1x512xf32>
    %68 = vector.broadcast %67 : vector<1x512xf32> to vector<4x512xf32>
    %69 = arith.mulf %66, %68 : vector<4x512xf32>
    %c32 = arith.constant 32 : index
    %c0_50 = arith.constant 0 : index
    %70 = vector.load %arg8[%c32, %c0_50] : memref<108x512xf32, #tpu.memory_space<vmem>>, vector<4x512xf32>
    tpu.vector_store %arg8[%c32, %c0_50], %69 {strides = array<i32>} : memref<108x512xf32, #tpu.memory_space<vmem>>, vector<4x512xf32>,
    %c0_51 = arith.constant 0 : index
    %c119 = arith.constant 119 : index
    %71 = vector.load %arg6[%c0_51, %c119] : memref<4x768xf32, #tpu.memory_space<vmem>>, vector<4x512xf32>
    %72 = vector.extract_strided_slice %23 {offsets = [0, 0], sizes = [1, 512], strides = [1, 1]} : vector<9x512xf32> to vector<1x512xf32>
    %73 = vector.broadcast %72 : vector<1x512xf32> to vector<4x512xf32>
    %74 = arith.mulf %71, %73 : vector<4x512xf32>
    %c36 = arith.constant 36 : index
    %c0_52 = arith.constant 0 : index
    %75 = vector.load %arg8[%c36, %c0_52] : memref<108x512xf32, #tpu.memory_space<vmem>>, vector<4x512xf32>
    tpu.vector_store %arg8[%c36, %c0_52], %74 {strides = array<i32>} : memref<108x512xf32, #tpu.memory_space<vmem>>, vector<4x512xf32>,
    %c0_53 = arith.constant 0 : index
    %c120 = arith.constant 120 : index
    %76 = vector.load %arg6[%c0_53, %c120] : memref<4x768xf32, #tpu.memory_space<vmem>>, vector<4x512xf32>
    %77 = vector.extract_strided_slice %23 {offsets = [1, 0], sizes = [1, 512], strides = [1, 1]} : vector<9x512xf32> to vector<1x512xf32>
    %78 = vector.broadcast %77 : vector<1x512xf32> to vector<4x512xf32>
    %79 = arith.mulf %76, %78 : vector<4x512xf32>
    %c40 = arith.constant 40 : index
    %c0_54 = arith.constant 0 : index
    %80 = vector.load %arg8[%c40, %c0_54] : memref<108x512xf32, #tpu.memory_space<vmem>>, vector<4x512xf32>
    tpu.vector_store %arg8[%c40, %c0_54], %79 {strides = array<i32>} : memref<108x512xf32, #tpu.memory_space<vmem>>, vector<4x512xf32>,
    %c0_55 = arith.constant 0 : index
    %c121 = arith.constant 121 : index
    %81 = vector.load %arg6[%c0_55, %c121] : memref<4x768xf32, #tpu.memory_space<vmem>>, vector<4x512xf32>
    %82 = vector.extract_strided_slice %23 {offsets = [2, 0], sizes = [1, 512], strides = [1, 1]} : vector<9x512xf32> to vector<1x512xf32>
    %83 = vector.broadcast %82 : vector<1x512xf32> to vector<4x512xf32>
    %84 = arith.mulf %81, %83 : vector<4x512xf32>
    %c44 = arith.constant 44 : index
    %c0_56 = arith.constant 0 : index
    %85 = vector.load %arg8[%c44, %c0_56] : memref<108x512xf32, #tpu.memory_space<vmem>>, vector<4x512xf32>
    tpu.vector_store %arg8[%c44, %c0_56], %84 {strides = array<i32>} : memref<108x512xf32, #tpu.memory_space<vmem>>, vector<4x512xf32>,
    %c0_57 = arith.constant 0 : index
    %c127 = arith.constant 127 : index
    %86 = vector.load %arg6[%c0_57, %c127] : memref<4x768xf32, #tpu.memory_space<vmem>>, vector<4x512xf32>
    %87 = vector.extract_strided_slice %23 {offsets = [3, 0], sizes = [1, 512], strides = [1, 1]} : vector<9x512xf32> to vector<1x512xf32>
    %88 = vector.broadcast %87 : vector<1x512xf32> to vector<4x512xf32>
    %89 = arith.mulf %86, %88 : vector<4x512xf32>
    %c48 = arith.constant 48 : index
    %c0_58 = arith.constant 0 : index
    %90 = vector.load %arg8[%c48, %c0_58] : memref<108x512xf32, #tpu.memory_space<vmem>>, vector<4x512xf32>
    tpu.vector_store %arg8[%c48, %c0_58], %89 {strides = array<i32>} : memref<108x512xf32, #tpu.memory_space<vmem>>, vector<4x512xf32>,
    %c0_59 = arith.constant 0 : index
    %c128_60 = arith.constant 128 : index
    %91 = vector.load %arg6[%c0_59, %c128_60] : memref<4x768xf32, #tpu.memory_space<vmem>>, vector<4x512xf32>
    %c52 = arith.constant 52 : index
    %c0_61 = arith.constant 0 : index
    %92 = vector.load %arg8[%c52, %c0_61] : memref<108x512xf32, #tpu.memory_space<vmem>>, vector<4x512xf32>
    tpu.vector_store %arg8[%c52, %c0_61], %91 {strides = array<i32>} : memref<108x512xf32, #tpu.memory_space<vmem>>, vector<4x512xf32>,
    %c0_62 = arith.constant 0 : index
    %c129 = arith.constant 129 : index
    %93 = vector.load %arg6[%c0_62, %c129] : memref<4x768xf32, #tpu.memory_space<vmem>>, vector<4x512xf32>
    %94 = vector.extract_strided_slice %23 {offsets = [5, 0], sizes = [1, 512], strides = [1, 1]} : vector<9x512xf32> to vector<1x512xf32>
    %95 = vector.broadcast %94 : vector<1x512xf32> to vector<4x512xf32>
    %96 = arith.mulf %93, %95 : vector<4x512xf32>
    %c56_63 = arith.constant 56 : index
    %c0_64 = arith.constant 0 : index
    %97 = vector.load %arg8[%c56_63, %c0_64] : memref<108x512xf32, #tpu.memory_space<vmem>>, vector<4x512xf32>
    tpu.vector_store %arg8[%c56_63, %c0_64], %96 {strides = array<i32>} : memref<108x512xf32, #tpu.memory_space<vmem>>, vector<4x512xf32>,
    %c0_65 = arith.constant 0 : index
    %c135 = arith.constant 135 : index
    %98 = vector.load %arg6[%c0_65, %c135] : memref<4x768xf32, #tpu.memory_space<vmem>>, vector<4x512xf32>
    %99 = vector.extract_strided_slice %23 {offsets = [6, 0], sizes = [1, 512], strides = [1, 1]} : vector<9x512xf32> to vector<1x512xf32>
    %100 = vector.broadcast %99 : vector<1x512xf32> to vector<4x512xf32>
    %101 = arith.mulf %98, %100 : vector<4x512xf32>
    %c60 = arith.constant 60 : index
    %c0_66 = arith.constant 0 : index
    %102 = vector.load %arg8[%c60, %c0_66] : memref<108x512xf32, #tpu.memory_space<vmem>>, vector<4x512xf32>
    tpu.vector_store %arg8[%c60, %c0_66], %101 {strides = array<i32>} : memref<108x512xf32, #tpu.memory_space<vmem>>, vector<4x512xf32>,
    %c0_67 = arith.constant 0 : index
    %c136 = arith.constant 136 : index
    %103 = vector.load %arg6[%c0_67, %c136] : memref<4x768xf32, #tpu.memory_space<vmem>>, vector<4x512xf32>
    %104 = vector.extract_strided_slice %23 {offsets = [7, 0], sizes = [1, 512], strides = [1, 1]} : vector<9x512xf32> to vector<1x512xf32>
    %105 = vector.broadcast %104 : vector<1x512xf32> to vector<4x512xf32>
    %106 = arith.mulf %103, %105 : vector<4x512xf32>
    %c64_68 = arith.constant 64 : index
    %c0_69 = arith.constant 0 : index
    %107 = vector.load %arg8[%c64_68, %c0_69] : memref<108x512xf32, #tpu.memory_space<vmem>>, vector<4x512xf32>
    tpu.vector_store %arg8[%c64_68, %c0_69], %106 {strides = array<i32>} : memref<108x512xf32, #tpu.memory_space<vmem>>, vector<4x512xf32>,
    %c0_70 = arith.constant 0 : index
    %c137 = arith.constant 137 : index
    %108 = vector.load %arg6[%c0_70, %c137] : memref<4x768xf32, #tpu.memory_space<vmem>>, vector<4x512xf32>
    %109 = vector.extract_strided_slice %23 {offsets = [8, 0], sizes = [1, 512], strides = [1, 1]} : vector<9x512xf32> to vector<1x512xf32>
    %110 = vector.broadcast %109 : vector<1x512xf32> to vector<4x512xf32>
    %111 = arith.mulf %108, %110 : vector<4x512xf32>
    %c68 = arith.constant 68 : index
    %c0_71 = arith.constant 0 : index
    %112 = vector.load %arg8[%c68, %c0_71] : memref<108x512xf32, #tpu.memory_space<vmem>>, vector<4x512xf32>
    tpu.vector_store %arg8[%c68, %c0_71], %111 {strides = array<i32>} : memref<108x512xf32, #tpu.memory_space<vmem>>, vector<4x512xf32>,
    %c0_72 = arith.constant 0 : index
    %c183 = arith.constant 183 : index
    %113 = vector.load %arg6[%c0_72, %c183] : memref<4x768xf32, #tpu.memory_space<vmem>>, vector<4x512xf32>
    %114 = vector.extract_strided_slice %23 {offsets = [0, 0], sizes = [1, 512], strides = [1, 1]} : vector<9x512xf32> to vector<1x512xf32>
    %115 = vector.broadcast %114 : vector<1x512xf32> to vector<4x512xf32>
    %116 = arith.mulf %113, %115 : vector<4x512xf32>
    %c72_73 = arith.constant 72 : index
    %c0_74 = arith.constant 0 : index
    %117 = vector.load %arg8[%c72_73, %c0_74] : memref<108x512xf32, #tpu.memory_space<vmem>>, vector<4x512xf32>
    tpu.vector_store %arg8[%c72_73, %c0_74], %116 {strides = array<i32>} : memref<108x512xf32, #tpu.memory_space<vmem>>, vector<4x512xf32>,
    %c0_75 = arith.constant 0 : index
    %c184 = arith.constant 184 : index
    %118 = vector.load %arg6[%c0_75, %c184] : memref<4x768xf32, #tpu.memory_space<vmem>>, vector<4x512xf32>
    %119 = vector.extract_strided_slice %23 {offsets = [1, 0], sizes = [1, 512], strides = [1, 1]} : vector<9x512xf32> to vector<1x512xf32>
    %120 = vector.broadcast %119 : vector<1x512xf32> to vector<4x512xf32>
    %121 = arith.mulf %118, %120 : vector<4x512xf32>
    %c76 = arith.constant 76 : index
    %c0_76 = arith.constant 0 : index
    %122 = vector.load %arg8[%c76, %c0_76] : memref<108x512xf32, #tpu.memory_space<vmem>>, vector<4x512xf32>
    tpu.vector_store %arg8[%c76, %c0_76], %121 {strides = array<i32>} : memref<108x512xf32, #tpu.memory_space<vmem>>, vector<4x512xf32>,
    %c0_77 = arith.constant 0 : index
    %c185 = arith.constant 185 : index
    %123 = vector.load %arg6[%c0_77, %c185] : memref<4x768xf32, #tpu.memory_space<vmem>>, vector<4x512xf32>
    %124 = vector.extract_strided_slice %23 {offsets = [2, 0], sizes = [1, 512], strides = [1, 1]} : vector<9x512xf32> to vector<1x512xf32>
    %125 = vector.broadcast %124 : vector<1x512xf32> to vector<4x512xf32>
    %126 = arith.mulf %123, %125 : vector<4x512xf32>
    %c80 = arith.constant 80 : index
    %c0_78 = arith.constant 0 : index
    %127 = vector.load %arg8[%c80, %c0_78] : memref<108x512xf32, #tpu.memory_space<vmem>>, vector<4x512xf32>
    tpu.vector_store %arg8[%c80, %c0_78], %126 {strides = array<i32>} : memref<108x512xf32, #tpu.memory_space<vmem>>, vector<4x512xf32>,
    %c0_79 = arith.constant 0 : index
    %c191 = arith.constant 191 : index
    %128 = vector.load %arg6[%c0_79, %c191] : memref<4x768xf32, #tpu.memory_space<vmem>>, vector<4x512xf32>
    %129 = vector.extract_strided_slice %23 {offsets = [3, 0], sizes = [1, 512], strides = [1, 1]} : vector<9x512xf32> to vector<1x512xf32>
    %130 = vector.broadcast %129 : vector<1x512xf32> to vector<4x512xf32>
    %131 = arith.mulf %128, %130 : vector<4x512xf32>
    %c84 = arith.constant 84 : index
    %c0_80 = arith.constant 0 : index
    %132 = vector.load %arg8[%c84, %c0_80] : memref<108x512xf32, #tpu.memory_space<vmem>>, vector<4x512xf32>
    tpu.vector_store %arg8[%c84, %c0_80], %131 {strides = array<i32>} : memref<108x512xf32, #tpu.memory_space<vmem>>, vector<4x512xf32>,
    %c0_81 = arith.constant 0 : index
    %c192 = arith.constant 192 : index
    %133 = vector.load %arg6[%c0_81, %c192] : memref<4x768xf32, #tpu.memory_space<vmem>>, vector<4x512xf32>
    %c88 = arith.constant 88 : index
    %c0_82 = arith.constant 0 : index
    %134 = vector.load %arg8[%c88, %c0_82] : memref<108x512xf32, #tpu.memory_space<vmem>>, vector<4x512xf32>
    tpu.vector_store %arg8[%c88, %c0_82], %133 {strides = array<i32>} : memref<108x512xf32, #tpu.memory_space<vmem>>, vector<4x512xf32>,
    %c0_83 = arith.constant 0 : index
    %c193 = arith.constant 193 : index
    %135 = vector.load %arg6[%c0_83, %c193] : memref<4x768xf32, #tpu.memory_space<vmem>>, vector<4x512xf32>
    %136 = vector.extract_strided_slice %23 {offsets = [5, 0], sizes = [1, 512], strides = [1, 1]} : vector<9x512xf32> to vector<1x512xf32>
    %137 = vector.broadcast %136 : vector<1x512xf32> to vector<4x512xf32>
    %138 = arith.mulf %135, %137 : vector<4x512xf32>
    %c92 = arith.constant 92 : index
    %c0_84 = arith.constant 0 : index
    %139 = vector.load %arg8[%c92, %c0_84] : memref<108x512xf32, #tpu.memory_space<vmem>>, vector<4x512xf32>
    tpu.vector_store %arg8[%c92, %c0_84], %138 {strides = array<i32>} : memref<108x512xf32, #tpu.memory_space<vmem>>, vector<4x512xf32>,
    %c0_85 = arith.constant 0 : index
    %c199 = arith.constant 199 : index
    %140 = vector.load %arg6[%c0_85, %c199] : memref<4x768xf32, #tpu.memory_space<vmem>>, vector<4x512xf32>
    %141 = vector.extract_strided_slice %23 {offsets = [6, 0], sizes = [1, 512], strides = [1, 1]} : vector<9x512xf32> to vector<1x512xf32>
    %142 = vector.broadcast %141 : vector<1x512xf32> to vector<4x512xf32>
    %143 = arith.mulf %140, %142 : vector<4x512xf32>
    %c96 = arith.constant 96 : index
    %c0_86 = arith.constant 0 : index
    %144 = vector.load %arg8[%c96, %c0_86] : memref<108x512xf32, #tpu.memory_space<vmem>>, vector<4x512xf32>
    tpu.vector_store %arg8[%c96, %c0_86], %143 {strides = array<i32>} : memref<108x512xf32, #tpu.memory_space<vmem>>, vector<4x512xf32>,
    %c0_87 = arith.constant 0 : index
    %c200 = arith.constant 200 : index
    %145 = vector.load %arg6[%c0_87, %c200] : memref<4x768xf32, #tpu.memory_space<vmem>>, vector<4x512xf32>
    %146 = vector.extract_strided_slice %23 {offsets = [7, 0], sizes = [1, 512], strides = [1, 1]} : vector<9x512xf32> to vector<1x512xf32>
    %147 = vector.broadcast %146 : vector<1x512xf32> to vector<4x512xf32>
    %148 = arith.mulf %145, %147 : vector<4x512xf32>
    %c100 = arith.constant 100 : index
    %c0_88 = arith.constant 0 : index
    %149 = vector.load %arg8[%c100, %c0_88] : memref<108x512xf32, #tpu.memory_space<vmem>>, vector<4x512xf32>
    tpu.vector_store %arg8[%c100, %c0_88], %148 {strides = array<i32>} : memref<108x512xf32, #tpu.memory_space<vmem>>, vector<4x512xf32>,
    %c0_89 = arith.constant 0 : index
    %c201 = arith.constant 201 : index
    %150 = vector.load %arg6[%c0_89, %c201] : memref<4x768xf32, #tpu.memory_space<vmem>>, vector<4x512xf32>
    %151 = vector.extract_strided_slice %23 {offsets = [8, 0], sizes = [1, 512], strides = [1, 1]} : vector<9x512xf32> to vector<1x512xf32>
    %152 = vector.broadcast %151 : vector<1x512xf32> to vector<4x512xf32>
    %153 = arith.mulf %150, %152 : vector<4x512xf32>
    %c104 = arith.constant 104 : index
    %c0_90 = arith.constant 0 : index
    %154 = vector.load %arg8[%c104, %c0_90] : memref<108x512xf32, #tpu.memory_space<vmem>>, vector<4x512xf32>
    tpu.vector_store %arg8[%c104, %c0_90], %153 {strides = array<i32>} : memref<108x512xf32, #tpu.memory_space<vmem>>, vector<4x512xf32>,
    %c0_91 = arith.constant 0 : index
    %c0_92 = arith.constant 0 : index
    %155 = vector.load %arg3[%c0_91, %c0_92] : memref<8x108xbf16, #tpu.memory_space<vmem>>, vector<8x108xbf16>
    %c0_93 = arith.constant 0 : index
    %c0_94 = arith.constant 0 : index
    %156 = vector.load %arg8[%c0_93, %c0_94] : memref<108x512xf32, #tpu.memory_space<vmem>>, vector<108x512xf32>
    %157 = arith.truncf %156 : vector<108x512xf32> to vector<108x512xbf16>
    %cst_95 = arith.constant dense<0.000000e+00> : vector<8x512xf32>
    %158 = tpu.matmul %155, %157, %cst_95 {dimension_numbers = #tpu.dot_dimension_numbers<[1], [0], [0], [1], [0, 0, 1, 1], [], []>} : vector<8x108xbf16>, vector<108x512xbf16>, vector<8x512xf32> -> vector<8x512xf32>
    %cst_96 = arith.constant dense<0.000000e+00> : vector<8xf32>
    %159 = vector.multi_reduction <add>, %158, %cst_96 [1] : vector<8x512xf32> to vector<8xf32>
    %160 = vector.shape_cast %159 : vector<8xf32> to vector<8x1xf32>
    %cst_97 = arith.constant 5.120000e+02 : f32
    %161 = vector.broadcast %cst_97 : f32 to vector<8x1xf32>
    %162 = arith.divf %160, %161 : vector<8x1xf32>
    %163 = arith.mulf %158, %158 : vector<8x512xf32>
    %cst_98 = arith.constant dense<0.000000e+00> : vector<8xf32>
    %164 = vector.multi_reduction <add>, %163, %cst_98 [1] : vector<8x512xf32> to vector<8xf32>
    %165 = vector.shape_cast %164 : vector<8xf32> to vector<8x1xf32>
    %cst_99 = arith.constant 5.120000e+02 : f32
    %166 = vector.broadcast %cst_99 : f32 to vector<8x1xf32>
    %167 = arith.divf %165, %166 : vector<8x1xf32>
    %168 = arith.mulf %162, %162 : vector<8x1xf32>
    %169 = arith.subf %167, %168 : vector<8x1xf32>
    %170 = vector.broadcast %162 : vector<8x1xf32> to vector<8x512xf32>
    %171 = arith.subf %158, %170 : vector<8x512xf32>
    %cst_100 = arith.constant 9.99999974E-6 : f32
    %172 = vector.broadcast %cst_100 : f32 to vector<8x1xf32>
    %173 = arith.addf %169, %172 : vector<8x1xf32>
    %174 = math.rsqrt %173 : vector<8x1xf32>
    %175 = vector.broadcast %174 : vector<8x1xf32> to vector<8x512xf32>
    %176 = arith.mulf %171, %175 : vector<8x512xf32>
    %cst_101 = arith.constant 0.000000e+00 : f32
    %177 = vector.broadcast %cst_101 : f32 to vector<8x512xf32>
    %178 = arith.maximumf %176, %177 : vector<8x512xf32>
    %cst_102 = arith.constant 0.000000e+00 : f32
    %179 = vector.broadcast %cst_102 : f32 to vector<8x128xf32>
    %c0_103 = arith.constant 0 : index
    %c0_104 = arith.constant 0 : index
    %180 = vector.load %arg7[%c0_103, %c0_104] : memref<8x768xf32, #tpu.memory_space<vmem>>, vector<8x128xf32>
    tpu.vector_store %arg7[%c0_103, %c0_104], %179 {strides = array<i32>} : memref<8x768xf32, #tpu.memory_space<vmem>>, vector<8x128xf32>,
    %cst_105 = arith.constant 0.000000e+00 : f32
    %181 = vector.broadcast %cst_105 : f32 to vector<8x128xf32>
    %c0_106 = arith.constant 0 : index
    %c640_107 = arith.constant 640 : index
    %182 = vector.load %arg7[%c0_106, %c640_107] : memref<8x768xf32, #tpu.memory_space<vmem>>, vector<8x128xf32>
    tpu.vector_store %arg7[%c0_106, %c640_107], %181 {strides = array<i32>} : memref<8x768xf32, #tpu.memory_space<vmem>>, vector<8x128xf32>,
    %c0_108 = arith.constant 0 : index
    %c128_109 = arith.constant 128 : index
    %183 = vector.load %arg7[%c0_108, %c128_109] : memref<8x768xf32, #tpu.memory_space<vmem>>, vector<8x512xf32>
    tpu.vector_store %arg7[%c0_108, %c128_109], %178 {strides = array<i32>} : memref<8x768xf32, #tpu.memory_space<vmem>>, vector<8x512xf32>,
    %c0_110 = arith.constant 0 : index
    %c55_111 = arith.constant 55 : index
    %184 = vector.load %arg7[%c0_110, %c55_111] : memref<8x768xf32, #tpu.memory_space<vmem>>, vector<8x512xf32>
    %185 = vector.extract_strided_slice %23 {offsets = [0, 0], sizes = [1, 512], strides = [1, 1]} : vector<9x512xf32> to vector<1x512xf32>
    %186 = vector.broadcast %185 : vector<1x512xf32> to vector<8x512xf32>
    %187 = arith.mulf %184, %186 : vector<8x512xf32>
    %c0_112 = arith.constant 0 : index
    %c0_113 = arith.constant 0 : index
    %188 = vector.load %arg9[%c0_112, %c0_113] : memref<216x512xf32, #tpu.memory_space<vmem>>, vector<8x512xf32>
    tpu.vector_store %arg9[%c0_112, %c0_113], %187 {strides = array<i32>} : memref<216x512xf32, #tpu.memory_space<vmem>>, vector<8x512xf32>,
    %c0_114 = arith.constant 0 : index
    %c56_115 = arith.constant 56 : index
    %189 = vector.load %arg7[%c0_114, %c56_115] : memref<8x768xf32, #tpu.memory_space<vmem>>, vector<8x512xf32>
    %190 = vector.extract_strided_slice %23 {offsets = [1, 0], sizes = [1, 512], strides = [1, 1]} : vector<9x512xf32> to vector<1x512xf32>
    %191 = vector.broadcast %190 : vector<1x512xf32> to vector<8x512xf32>
    %192 = arith.mulf %189, %191 : vector<8x512xf32>
    %c8_116 = arith.constant 8 : index
    %c0_117 = arith.constant 0 : index
    %193 = vector.load %arg9[%c8_116, %c0_117] : memref<216x512xf32, #tpu.memory_space<vmem>>, vector<8x512xf32>
    tpu.vector_store %arg9[%c8_116, %c0_117], %192 {strides = array<i32>} : memref<216x512xf32, #tpu.memory_space<vmem>>, vector<8x512xf32>,
    %c0_118 = arith.constant 0 : index
    %c57_119 = arith.constant 57 : index
    %194 = vector.load %arg7[%c0_118, %c57_119] : memref<8x768xf32, #tpu.memory_space<vmem>>, vector<8x512xf32>
    %195 = vector.extract_strided_slice %23 {offsets = [2, 0], sizes = [1, 512], strides = [1, 1]} : vector<9x512xf32> to vector<1x512xf32>
    %196 = vector.broadcast %195 : vector<1x512xf32> to vector<8x512xf32>
    %197 = arith.mulf %194, %196 : vector<8x512xf32>
    %c16_120 = arith.constant 16 : index
    %c0_121 = arith.constant 0 : index
    %198 = vector.load %arg9[%c16_120, %c0_121] : memref<216x512xf32, #tpu.memory_space<vmem>>, vector<8x512xf32>
    tpu.vector_store %arg9[%c16_120, %c0_121], %197 {strides = array<i32>} : memref<216x512xf32, #tpu.memory_space<vmem>>, vector<8x512xf32>,
    %c0_122 = arith.constant 0 : index
    %c63_123 = arith.constant 63 : index
    %199 = vector.load %arg7[%c0_122, %c63_123] : memref<8x768xf32, #tpu.memory_space<vmem>>, vector<8x512xf32>
    %200 = vector.extract_strided_slice %23 {offsets = [3, 0], sizes = [1, 512], strides = [1, 1]} : vector<9x512xf32> to vector<1x512xf32>
    %201 = vector.broadcast %200 : vector<1x512xf32> to vector<8x512xf32>
    %202 = arith.mulf %199, %201 : vector<8x512xf32>
    %c24_124 = arith.constant 24 : index
    %c0_125 = arith.constant 0 : index
    %203 = vector.load %arg9[%c24_124, %c0_125] : memref<216x512xf32, #tpu.memory_space<vmem>>, vector<8x512xf32>
    tpu.vector_store %arg9[%c24_124, %c0_125], %202 {strides = array<i32>} : memref<216x512xf32, #tpu.memory_space<vmem>>, vector<8x512xf32>,
    %c0_126 = arith.constant 0 : index
    %c64_127 = arith.constant 64 : index
    %204 = vector.load %arg7[%c0_126, %c64_127] : memref<8x768xf32, #tpu.memory_space<vmem>>, vector<8x512xf32>
    %c32_128 = arith.constant 32 : index
    %c0_129 = arith.constant 0 : index
    %205 = vector.load %arg9[%c32_128, %c0_129] : memref<216x512xf32, #tpu.memory_space<vmem>>, vector<8x512xf32>
    tpu.vector_store %arg9[%c32_128, %c0_129], %204 {strides = array<i32>} : memref<216x512xf32, #tpu.memory_space<vmem>>, vector<8x512xf32>,
    %c0_130 = arith.constant 0 : index
    %c65_131 = arith.constant 65 : index
    %206 = vector.load %arg7[%c0_130, %c65_131] : memref<8x768xf32, #tpu.memory_space<vmem>>, vector<8x512xf32>
    %207 = vector.extract_strided_slice %23 {offsets = [5, 0], sizes = [1, 512], strides = [1, 1]} : vector<9x512xf32> to vector<1x512xf32>
    %208 = vector.broadcast %207 : vector<1x512xf32> to vector<8x512xf32>
    %209 = arith.mulf %206, %208 : vector<8x512xf32>
    %c40_132 = arith.constant 40 : index
    %c0_133 = arith.constant 0 : index
    %210 = vector.load %arg9[%c40_132, %c0_133] : memref<216x512xf32, #tpu.memory_space<vmem>>, vector<8x512xf32>
    tpu.vector_store %arg9[%c40_132, %c0_133], %209 {strides = array<i32>} : memref<216x512xf32, #tpu.memory_space<vmem>>, vector<8x512xf32>,
    %c0_134 = arith.constant 0 : index
    %c71_135 = arith.constant 71 : index
    %211 = vector.load %arg7[%c0_134, %c71_135] : memref<8x768xf32, #tpu.memory_space<vmem>>, vector<8x512xf32>
    %212 = vector.extract_strided_slice %23 {offsets = [6, 0], sizes = [1, 512], strides = [1, 1]} : vector<9x512xf32> to vector<1x512xf32>
    %213 = vector.broadcast %212 : vector<1x512xf32> to vector<8x512xf32>
    %214 = arith.mulf %211, %213 : vector<8x512xf32>
    %c48_136 = arith.constant 48 : index
    %c0_137 = arith.constant 0 : index
    %215 = vector.load %arg9[%c48_136, %c0_137] : memref<216x512xf32, #tpu.memory_space<vmem>>, vector<8x512xf32>
    tpu.vector_store %arg9[%c48_136, %c0_137], %214 {strides = array<i32>} : memref<216x512xf32, #tpu.memory_space<vmem>>, vector<8x512xf32>,
    %c0_138 = arith.constant 0 : index
    %c72_139 = arith.constant 72 : index
    %216 = vector.load %arg7[%c0_138, %c72_139] : memref<8x768xf32, #tpu.memory_space<vmem>>, vector<8x512xf32>
    %217 = vector.extract_strided_slice %23 {offsets = [7, 0], sizes = [1, 512], strides = [1, 1]} : vector<9x512xf32> to vector<1x512xf32>
    %218 = vector.broadcast %217 : vector<1x512xf32> to vector<8x512xf32>
    %219 = arith.mulf %216, %218 : vector<8x512xf32>
    %c56_140 = arith.constant 56 : index
    %c0_141 = arith.constant 0 : index
    %220 = vector.load %arg9[%c56_140, %c0_141] : memref<216x512xf32, #tpu.memory_space<vmem>>, vector<8x512xf32>
    tpu.vector_store %arg9[%c56_140, %c0_141], %219 {strides = array<i32>} : memref<216x512xf32, #tpu.memory_space<vmem>>, vector<8x512xf32>,
    %c0_142 = arith.constant 0 : index
    %c73_143 = arith.constant 73 : index
    %221 = vector.load %arg7[%c0_142, %c73_143] : memref<8x768xf32, #tpu.memory_space<vmem>>, vector<8x512xf32>
    %222 = vector.extract_strided_slice %23 {offsets = [8, 0], sizes = [1, 512], strides = [1, 1]} : vector<9x512xf32> to vector<1x512xf32>
    %223 = vector.broadcast %222 : vector<1x512xf32> to vector<8x512xf32>
    %224 = arith.mulf %221, %223 : vector<8x512xf32>
    %c64_144 = arith.constant 64 : index
    %c0_145 = arith.constant 0 : index
    %225 = vector.load %arg9[%c64_144, %c0_145] : memref<216x512xf32, #tpu.memory_space<vmem>>, vector<8x512xf32>
    tpu.vector_store %arg9[%c64_144, %c0_145], %224 {strides = array<i32>} : memref<216x512xf32, #tpu.memory_space<vmem>>, vector<8x512xf32>,
    %c0_146 = arith.constant 0 : index
    %c119_147 = arith.constant 119 : index
    %226 = vector.load %arg7[%c0_146, %c119_147] : memref<8x768xf32, #tpu.memory_space<vmem>>, vector<8x512xf32>
    %227 = vector.extract_strided_slice %23 {offsets = [0, 0], sizes = [1, 512], strides = [1, 1]} : vector<9x512xf32> to vector<1x512xf32>
    %228 = vector.broadcast %227 : vector<1x512xf32> to vector<8x512xf32>
    %229 = arith.mulf %226, %228 : vector<8x512xf32>
    %c72_148 = arith.constant 72 : index
    %c0_149 = arith.constant 0 : index
    %230 = vector.load %arg9[%c72_148, %c0_149] : memref<216x512xf32, #tpu.memory_space<vmem>>, vector<8x512xf32>
    tpu.vector_store %arg9[%c72_148, %c0_149], %229 {strides = array<i32>} : memref<216x512xf32, #tpu.memory_space<vmem>>, vector<8x512xf32>,
    %c0_150 = arith.constant 0 : index
    %c120_151 = arith.constant 120 : index
    %231 = vector.load %arg7[%c0_150, %c120_151] : memref<8x768xf32, #tpu.memory_space<vmem>>, vector<8x512xf32>
    %232 = vector.extract_strided_slice %23 {offsets = [1, 0], sizes = [1, 512], strides = [1, 1]} : vector<9x512xf32> to vector<1x512xf32>
    %233 = vector.broadcast %232 : vector<1x512xf32> to vector<8x512xf32>
    %234 = arith.mulf %231, %233 : vector<8x512xf32>
    %c80_152 = arith.constant 80 : index
    %c0_153 = arith.constant 0 : index
    %235 = vector.load %arg9[%c80_152, %c0_153] : memref<216x512xf32, #tpu.memory_space<vmem>>, vector<8x512xf32>
    tpu.vector_store %arg9[%c80_152, %c0_153], %234 {strides = array<i32>} : memref<216x512xf32, #tpu.memory_space<vmem>>, vector<8x512xf32>,
    %c0_154 = arith.constant 0 : index
    %c121_155 = arith.constant 121 : index
    %236 = vector.load %arg7[%c0_154, %c121_155] : memref<8x768xf32, #tpu.memory_space<vmem>>, vector<8x512xf32>
    %237 = vector.extract_strided_slice %23 {offsets = [2, 0], sizes = [1, 512], strides = [1, 1]} : vector<9x512xf32> to vector<1x512xf32>
    %238 = vector.broadcast %237 : vector<1x512xf32> to vector<8x512xf32>
    %239 = arith.mulf %236, %238 : vector<8x512xf32>
    %c88_156 = arith.constant 88 : index
    %c0_157 = arith.constant 0 : index
    %240 = vector.load %arg9[%c88_156, %c0_157] : memref<216x512xf32, #tpu.memory_space<vmem>>, vector<8x512xf32>
    tpu.vector_store %arg9[%c88_156, %c0_157], %239 {strides = array<i32>} : memref<216x512xf32, #tpu.memory_space<vmem>>, vector<8x512xf32>,
    %c0_158 = arith.constant 0 : index
    %c127_159 = arith.constant 127 : index
    %241 = vector.load %arg7[%c0_158, %c127_159] : memref<8x768xf32, #tpu.memory_space<vmem>>, vector<8x512xf32>
    %242 = vector.extract_strided_slice %23 {offsets = [3, 0], sizes = [1, 512], strides = [1, 1]} : vector<9x512xf32> to vector<1x512xf32>
    %243 = vector.broadcast %242 : vector<1x512xf32> to vector<8x512xf32>
    %244 = arith.mulf %241, %243 : vector<8x512xf32>
    %c96_160 = arith.constant 96 : index
    %c0_161 = arith.constant 0 : index
    %245 = vector.load %arg9[%c96_160, %c0_161] : memref<216x512xf32, #tpu.memory_space<vmem>>, vector<8x512xf32>
    tpu.vector_store %arg9[%c96_160, %c0_161], %244 {strides = array<i32>} : memref<216x512xf32, #tpu.memory_space<vmem>>, vector<8x512xf32>,
    %c0_162 = arith.constant 0 : index
    %c128_163 = arith.constant 128 : index
    %246 = vector.load %arg7[%c0_162, %c128_163] : memref<8x768xf32, #tpu.memory_space<vmem>>, vector<8x512xf32>
    %c104_164 = arith.constant 104 : index
    %c0_165 = arith.constant 0 : index
    %247 = vector.load %arg9[%c104_164, %c0_165] : memref<216x512xf32, #tpu.memory_space<vmem>>, vector<8x512xf32>
    tpu.vector_store %arg9[%c104_164, %c0_165], %246 {strides = array<i32>} : memref<216x512xf32, #tpu.memory_space<vmem>>, vector<8x512xf32>,
    %c0_166 = arith.constant 0 : index
    %c129_167 = arith.constant 129 : index
    %248 = vector.load %arg7[%c0_166, %c129_167] : memref<8x768xf32, #tpu.memory_space<vmem>>, vector<8x512xf32>
    %249 = vector.extract_strided_slice %23 {offsets = [5, 0], sizes = [1, 512], strides = [1, 1]} : vector<9x512xf32> to vector<1x512xf32>
    %250 = vector.broadcast %249 : vector<1x512xf32> to vector<8x512xf32>
    %251 = arith.mulf %248, %250 : vector<8x512xf32>
    %c112 = arith.constant 112 : index
    %c0_168 = arith.constant 0 : index
    %252 = vector.load %arg9[%c112, %c0_168] : memref<216x512xf32, #tpu.memory_space<vmem>>, vector<8x512xf32>
    tpu.vector_store %arg9[%c112, %c0_168], %251 {strides = array<i32>} : memref<216x512xf32, #tpu.memory_space<vmem>>, vector<8x512xf32>,
    %c0_169 = arith.constant 0 : index
    %c135_170 = arith.constant 135 : index
    %253 = vector.load %arg7[%c0_169, %c135_170] : memref<8x768xf32, #tpu.memory_space<vmem>>, vector<8x512xf32>
    %254 = vector.extract_strided_slice %23 {offsets = [6, 0], sizes = [1, 512], strides = [1, 1]} : vector<9x512xf32> to vector<1x512xf32>
    %255 = vector.broadcast %254 : vector<1x512xf32> to vector<8x512xf32>
    %256 = arith.mulf %253, %255 : vector<8x512xf32>
    %c120_171 = arith.constant 120 : index
    %c0_172 = arith.constant 0 : index
    %257 = vector.load %arg9[%c120_171, %c0_172] : memref<216x512xf32, #tpu.memory_space<vmem>>, vector<8x512xf32>
    tpu.vector_store %arg9[%c120_171, %c0_172], %256 {strides = array<i32>} : memref<216x512xf32, #tpu.memory_space<vmem>>, vector<8x512xf32>,
    %c0_173 = arith.constant 0 : index
    %c136_174 = arith.constant 136 : index
    %258 = vector.load %arg7[%c0_173, %c136_174] : memref<8x768xf32, #tpu.memory_space<vmem>>, vector<8x512xf32>
    %259 = vector.extract_strided_slice %23 {offsets = [7, 0], sizes = [1, 512], strides = [1, 1]} : vector<9x512xf32> to vector<1x512xf32>
    %260 = vector.broadcast %259 : vector<1x512xf32> to vector<8x512xf32>
    %261 = arith.mulf %258, %260 : vector<8x512xf32>
    %c128_175 = arith.constant 128 : index
    %c0_176 = arith.constant 0 : index
    %262 = vector.load %arg9[%c128_175, %c0_176] : memref<216x512xf32, #tpu.memory_space<vmem>>, vector<8x512xf32>
    tpu.vector_store %arg9[%c128_175, %c0_176], %261 {strides = array<i32>} : memref<216x512xf32, #tpu.memory_space<vmem>>, vector<8x512xf32>,
    %c0_177 = arith.constant 0 : index
    %c137_178 = arith.constant 137 : index
    %263 = vector.load %arg7[%c0_177, %c137_178] : memref<8x768xf32, #tpu.memory_space<vmem>>, vector<8x512xf32>
    %264 = vector.extract_strided_slice %23 {offsets = [8, 0], sizes = [1, 512], strides = [1, 1]} : vector<9x512xf32> to vector<1x512xf32>
    %265 = vector.broadcast %264 : vector<1x512xf32> to vector<8x512xf32>
    %266 = arith.mulf %263, %265 : vector<8x512xf32>
    %c136_179 = arith.constant 136 : index
    %c0_180 = arith.constant 0 : index
    %267 = vector.load %arg9[%c136_179, %c0_180] : memref<216x512xf32, #tpu.memory_space<vmem>>, vector<8x512xf32>
    tpu.vector_store %arg9[%c136_179, %c0_180], %266 {strides = array<i32>} : memref<216x512xf32, #tpu.memory_space<vmem>>, vector<8x512xf32>,
    %c0_181 = arith.constant 0 : index
    %c183_182 = arith.constant 183 : index
    %268 = vector.load %arg7[%c0_181, %c183_182] : memref<8x768xf32, #tpu.memory_space<vmem>>, vector<8x512xf32>
    %269 = vector.extract_strided_slice %23 {offsets = [0, 0], sizes = [1, 512], strides = [1, 1]} : vector<9x512xf32> to vector<1x512xf32>
    %270 = vector.broadcast %269 : vector<1x512xf32> to vector<8x512xf32>
    %271 = arith.mulf %268, %270 : vector<8x512xf32>
    %c144 = arith.constant 144 : index
    %c0_183 = arith.constant 0 : index
    %272 = vector.load %arg9[%c144, %c0_183] : memref<216x512xf32, #tpu.memory_space<vmem>>, vector<8x512xf32>
    tpu.vector_store %arg9[%c144, %c0_183], %271 {strides = array<i32>} : memref<216x512xf32, #tpu.memory_space<vmem>>, vector<8x512xf32>,
    %c0_184 = arith.constant 0 : index
    %c184_185 = arith.constant 184 : index
    %273 = vector.load %arg7[%c0_184, %c184_185] : memref<8x768xf32, #tpu.memory_space<vmem>>, vector<8x512xf32>
    %274 = vector.extract_strided_slice %23 {offsets = [1, 0], sizes = [1, 512], strides = [1, 1]} : vector<9x512xf32> to vector<1x512xf32>
    %275 = vector.broadcast %274 : vector<1x512xf32> to vector<8x512xf32>
    %276 = arith.mulf %273, %275 : vector<8x512xf32>
    %c152 = arith.constant 152 : index
    %c0_186 = arith.constant 0 : index
    %277 = vector.load %arg9[%c152, %c0_186] : memref<216x512xf32, #tpu.memory_space<vmem>>, vector<8x512xf32>
    tpu.vector_store %arg9[%c152, %c0_186], %276 {strides = array<i32>} : memref<216x512xf32, #tpu.memory_space<vmem>>, vector<8x512xf32>,
    %c0_187 = arith.constant 0 : index
    %c185_188 = arith.constant 185 : index
    %278 = vector.load %arg7[%c0_187, %c185_188] : memref<8x768xf32, #tpu.memory_space<vmem>>, vector<8x512xf32>
    %279 = vector.extract_strided_slice %23 {offsets = [2, 0], sizes = [1, 512], strides = [1, 1]} : vector<9x512xf32> to vector<1x512xf32>
    %280 = vector.broadcast %279 : vector<1x512xf32> to vector<8x512xf32>
    %281 = arith.mulf %278, %280 : vector<8x512xf32>
    %c160 = arith.constant 160 : index
    %c0_189 = arith.constant 0 : index
    %282 = vector.load %arg9[%c160, %c0_189] : memref<216x512xf32, #tpu.memory_space<vmem>>, vector<8x512xf32>
    tpu.vector_store %arg9[%c160, %c0_189], %281 {strides = array<i32>} : memref<216x512xf32, #tpu.memory_space<vmem>>, vector<8x512xf32>,
    %c0_190 = arith.constant 0 : index
    %c191_191 = arith.constant 191 : index
    %283 = vector.load %arg7[%c0_190, %c191_191] : memref<8x768xf32, #tpu.memory_space<vmem>>, vector<8x512xf32>
    %284 = vector.extract_strided_slice %23 {offsets = [3, 0], sizes = [1, 512], strides = [1, 1]} : vector<9x512xf32> to vector<1x512xf32>
    %285 = vector.broadcast %284 : vector<1x512xf32> to vector<8x512xf32>
    %286 = arith.mulf %283, %285 : vector<8x512xf32>
    %c168 = arith.constant 168 : index
    %c0_192 = arith.constant 0 : index
    %287 = vector.load %arg9[%c168, %c0_192] : memref<216x512xf32, #tpu.memory_space<vmem>>, vector<8x512xf32>
    tpu.vector_store %arg9[%c168, %c0_192], %286 {strides = array<i32>} : memref<216x512xf32, #tpu.memory_space<vmem>>, vector<8x512xf32>,
    %c0_193 = arith.constant 0 : index
    %c192_194 = arith.constant 192 : index
    %288 = vector.load %arg7[%c0_193, %c192_194] : memref<8x768xf32, #tpu.memory_space<vmem>>, vector<8x512xf32>
    %c176 = arith.constant 176 : index
    %c0_195 = arith.constant 0 : index
    %289 = vector.load %arg9[%c176, %c0_195] : memref<216x512xf32, #tpu.memory_space<vmem>>, vector<8x512xf32>
    tpu.vector_store %arg9[%c176, %c0_195], %288 {strides = array<i32>} : memref<216x512xf32, #tpu.memory_space<vmem>>, vector<8x512xf32>,
    %c0_196 = arith.constant 0 : index
    %c193_197 = arith.constant 193 : index
    %290 = vector.load %arg7[%c0_196, %c193_197] : memref<8x768xf32, #tpu.memory_space<vmem>>, vector<8x512xf32>
    %291 = vector.extract_strided_slice %23 {offsets = [5, 0], sizes = [1, 512], strides = [1, 1]} : vector<9x512xf32> to vector<1x512xf32>
    %292 = vector.broadcast %291 : vector<1x512xf32> to vector<8x512xf32>
    %293 = arith.mulf %290, %292 : vector<8x512xf32>
    %c184_198 = arith.constant 184 : index
    %c0_199 = arith.constant 0 : index
    %294 = vector.load %arg9[%c184_198, %c0_199] : memref<216x512xf32, #tpu.memory_space<vmem>>, vector<8x512xf32>
    tpu.vector_store %arg9[%c184_198, %c0_199], %293 {strides = array<i32>} : memref<216x512xf32, #tpu.memory_space<vmem>>, vector<8x512xf32>,
    %c0_200 = arith.constant 0 : index
    %c199_201 = arith.constant 199 : index
    %295 = vector.load %arg7[%c0_200, %c199_201] : memref<8x768xf32, #tpu.memory_space<vmem>>, vector<8x512xf32>
    %296 = vector.extract_strided_slice %23 {offsets = [6, 0], sizes = [1, 512], strides = [1, 1]} : vector<9x512xf32> to vector<1x512xf32>
    %297 = vector.broadcast %296 : vector<1x512xf32> to vector<8x512xf32>
    %298 = arith.mulf %295, %297 : vector<8x512xf32>
    %c192_202 = arith.constant 192 : index
    %c0_203 = arith.constant 0 : index
    %299 = vector.load %arg9[%c192_202, %c0_203] : memref<216x512xf32, #tpu.memory_space<vmem>>, vector<8x512xf32>
    tpu.vector_store %arg9[%c192_202, %c0_203], %298 {strides = array<i32>} : memref<216x512xf32, #tpu.memory_space<vmem>>, vector<8x512xf32>,
    %c0_204 = arith.constant 0 : index
    %c200_205 = arith.constant 200 : index
    %300 = vector.load %arg7[%c0_204, %c200_205] : memref<8x768xf32, #tpu.memory_space<vmem>>, vector<8x512xf32>
    %301 = vector.extract_strided_slice %23 {offsets = [7, 0], sizes = [1, 512], strides = [1, 1]} : vector<9x512xf32> to vector<1x512xf32>
    %302 = vector.broadcast %301 : vector<1x512xf32> to vector<8x512xf32>
    %303 = arith.mulf %300, %302 : vector<8x512xf32>
    %c200_206 = arith.constant 200 : index
    %c0_207 = arith.constant 0 : index
    %304 = vector.load %arg9[%c200_206, %c0_207] : memref<216x512xf32, #tpu.memory_space<vmem>>, vector<8x512xf32>
    tpu.vector_store %arg9[%c200_206, %c0_207], %303 {strides = array<i32>} : memref<216x512xf32, #tpu.memory_space<vmem>>, vector<8x512xf32>,
    %c0_208 = arith.constant 0 : index
    %c201_209 = arith.constant 201 : index
    %305 = vector.load %arg7[%c0_208, %c201_209] : memref<8x768xf32, #tpu.memory_space<vmem>>, vector<8x512xf32>
    %306 = vector.extract_strided_slice %23 {offsets = [8, 0], sizes = [1, 512], strides = [1, 1]} : vector<9x512xf32> to vector<1x512xf32>
    %307 = vector.broadcast %306 : vector<1x512xf32> to vector<8x512xf32>
    %308 = arith.mulf %305, %307 : vector<8x512xf32>
    %c208 = arith.constant 208 : index
    %c0_210 = arith.constant 0 : index
    %309 = vector.load %arg9[%c208, %c0_210] : memref<216x512xf32, #tpu.memory_space<vmem>>, vector<8x512xf32>
    tpu.vector_store %arg9[%c208, %c0_210], %308 {strides = array<i32>} : memref<216x512xf32, #tpu.memory_space<vmem>>, vector<8x512xf32>,
    %c0_211 = arith.constant 0 : index
    %c0_212 = arith.constant 0 : index
    %310 = vector.load %arg4[%c0_211, %c0_212] : memref<8x216xbf16, #tpu.memory_space<vmem>>, vector<8x216xbf16>
    %c0_213 = arith.constant 0 : index
    %c0_214 = arith.constant 0 : index
    %311 = vector.load %arg9[%c0_213, %c0_214] : memref<216x512xf32, #tpu.memory_space<vmem>>, vector<216x512xf32>
    %312 = arith.truncf %311 : vector<216x512xf32> to vector<216x512xbf16>
    %cst_215 = arith.constant dense<0.000000e+00> : vector<8x512xf32>
    %313 = tpu.matmul %310, %312, %cst_215 {dimension_numbers = #tpu.dot_dimension_numbers<[1], [0], [0], [1], [0, 0, 1, 1], [], []>} : vector<8x216xbf16>, vector<216x512xbf16>, vector<8x512xf32> -> vector<8x512xf32>
    %cst_216 = arith.constant dense<0.000000e+00> : vector<8xf32>
    %314 = vector.multi_reduction <add>, %313, %cst_216 [1] : vector<8x512xf32> to vector<8xf32>
    %315 = vector.shape_cast %314 : vector<8xf32> to vector<8x1xf32>
    %cst_217 = arith.constant 5.120000e+02 : f32
    %316 = vector.broadcast %cst_217 : f32 to vector<8x1xf32>
    %317 = arith.divf %315, %316 : vector<8x1xf32>
    %318 = arith.mulf %313, %313 : vector<8x512xf32>
    %cst_218 = arith.constant dense<0.000000e+00> : vector<8xf32>
    %319 = vector.multi_reduction <add>, %318, %cst_218 [1] : vector<8x512xf32> to vector<8xf32>
    %320 = vector.shape_cast %319 : vector<8xf32> to vector<8x1xf32>
    %cst_219 = arith.constant 5.120000e+02 : f32
    %321 = vector.broadcast %cst_219 : f32 to vector<8x1xf32>
    %322 = arith.divf %320, %321 : vector<8x1xf32>
    %323 = arith.mulf %317, %317 : vector<8x1xf32>
    %324 = arith.subf %322, %323 : vector<8x1xf32>
    %325 = vector.broadcast %317 : vector<8x1xf32> to vector<8x512xf32>
    %326 = arith.subf %313, %325 : vector<8x512xf32>
    %cst_220 = arith.constant 9.99999974E-6 : f32
    %327 = vector.broadcast %cst_220 : f32 to vector<8x1xf32>
    %328 = arith.addf %324, %327 : vector<8x1xf32>
    %329 = math.rsqrt %328 : vector<8x1xf32>
    %330 = vector.broadcast %329 : vector<8x1xf32> to vector<8x512xf32>
    %331 = arith.mulf %326, %330 : vector<8x512xf32>
    %cst_221 = arith.constant 0.000000e+00 : f32
    %332 = vector.broadcast %cst_221 : f32 to vector<8x512xf32>
    %333 = arith.maximumf %331, %332 : vector<8x512xf32>
    %c0_222 = arith.constant 0 : index
    %c0_223 = arith.constant 0 : index
    %c0_224 = arith.constant 0 : index
    %334 = vector.load %arg5[%c0_222, %c0_223, %c0_224] : memref<1x8x512xf32, #tpu.memory_space<vmem>>, vector<1x8x512xf32>
    %335 = vector.shape_cast %334 : vector<1x8x512xf32> to vector<8x512xf32>
    %336 = vector.shape_cast %333 : vector<8x512xf32> to vector<1x8x512xf32>
    tpu.vector_store %arg5[%c0_222, %c0_223, %c0_224], %336 {strides = array<i32>} : memref<1x8x512xf32, #tpu.memory_space<vmem>>, vector<1x8x512xf32>,
    return
  }
  func.func @transform_0(%arg0: i32) -> (i32, i32, i32, i32) {
    %c0_i32 = arith.constant 0 : i32
    %c0_i32_0 = arith.constant 0 : i32
    %c0_i32_1 = arith.constant 0 : i32
    %c0_i32_2 = arith.constant 0 : i32
    return %arg0, %c0_i32, %c0_i32_0, %c0_i32_1 : i32, i32, i32, i32
  }
  func.func @transform_1(%arg0: i32) -> (i32, i32) {
    %c0_i32 = arith.constant 0 : i32
    %c0_i32_0 = arith.constant 0 : i32
    %c0_i32_1 = arith.constant 0 : i32
    return %c0_i32, %c0_i32_0 : i32, i32
  }
  func.func @transform_2(%arg0: i32) -> (i32, i32) {
    %c0_i32 = arith.constant 0 : i32
    %c0_i32_0 = arith.constant 0 : i32
    %c0_i32_1 = arith.constant 0 : i32
    return %c0_i32, %c0_i32_0 : i32, i32
  }
  func.func @transform_3(%arg0: i32) -> (i32, i32) {
    %c0_i32 = arith.constant 0 : i32
    %c0_i32_0 = arith.constant 0 : i32
    %c0_i32_1 = arith.constant 0 : i32
    return %c0_i32, %c0_i32_0 : i32, i32
  }
  func.func @transform_4(%arg0: i32) -> (i32, i32, i32) {
    %c0_i32 = arith.constant 0 : i32
    %c0_i32_0 = arith.constant 0 : i32
    %c0_i32_1 = arith.constant 0 : i32
    return %arg0, %c0_i32, %c0_i32_0 : i32, i32, i32
  }
}

</mosaic_0001>

<bundles_post_ra>
// kernel: down_forward.1
= control target key start
LH: loop header
LB: loop body
LE: loop exit
PB: predicated region body
PF: predicated region fallthrough
CT: control target
= control target key end

     0   :  { %s3748_s15 = smov 0   ;;  %s6003_s0 = inlined_call_operand.vmem [shape: f32[2,8,4,512], index: 0, kind: input, shape index: {}]   ;;  %s6004_s1 = inlined_call_operand.vmem [shape: f32[9,512], index: 1, kind: input, shape index: {}]   ;;  %s6005_s2 = inlined_call_operand.vmem [shape: bf16[8,108], index: 2, kind: input, shape index: {}]   ;;  %s6006_s3 = inlined_call_operand.vmem [shape: bf16[8,216], index: 3, kind: input, shape index: {}]   ;;  %s6007_s4 = inlined_call_operand.vmem [shape: f32[2,8,512], index: 4, kind: output, shape index: {}]  }
   0x1 LB: > { %s3309_s16 = sadd.s32 4294967295, %s3702_s15   ;;  %p3313_p0 = scmp.ge.s32.totalorder %s3702_s15, 1  ;;  %s3702_s15 = sphi %s3748_s15, %s14_s15  }
   0x2   : > { %p162_p1 = scmp.lt.s32.totalorder %s3702_s15, 3 }
   0x4   : > { %p163_p2 = pnand %p3313_p0, %p162_p1 }
   0x6   : > { %166 = sbr.rel (%p163_p2) target bundleno = 1531 (0x5fb), region = 36 }
   0xb   : > { %v3332_v0 = vld [vmem:[%s6004_s1 + $0x20] ss:$0 sm:$0xff]  ;;  %v3333_v1 = vld [vmem:[%s6004_s1 + $0x28] ss:$0 sm:$0xff]  ;;  %v251_v2 = vlaneseq  ;;  %v3334_v4 = vld [vmem:[%s6004_s1 + $0x30] ss:$0 sm:$0xff] }
   0xc   : > { %v3762_v3 = vcombine.low %v3332_v0, %v3333_v1  ;;  %v3335_v5 = vld [vmem:[%s6004_s1 + $0x38] ss:$0 sm:$0xff]  ;;  %v3773_v6 = vld [vmem:[%s6004_s1] sm:$0xff]  ;;  %s3704_s27 = smov 73   ;;  %v3784_v9 = vld [vmem:[%s6004_s1 + $0x8] sm:$0xff]  ;;  %v6008_v12 = vmov 0.0  }
   0xd   : > { %v3775_v7 = vshrl.u32 %v251_v2, 7  ;;  %v3779_v8 = vcombine.low %v3334_v4, %v3335_v5  ;;  %v3789_v10 = vld [vmem:[%s6004_s1 + $0x10] sm:$0xff]  ;;  %v3794_v11 = vld [vmem:[%s6004_s1 + $0x18] sm:$0xff]  ;;  %244 = vst [vmem:[#allocation2] sm:$0xf] %v6008_v12  ;;  %p188_p3 = scmp.lt.s32.totalorder %s3309_s16, 1 }
   0xe   : > { %786 = vrot.lane.b32.xlu1 %v3762_v3, %s3704_s27  ;;  %245 = vst [vmem:[#allocation2 + $0x14] sm:$0xf] %v6008_v12  ;;  %s3706_s8 = smov 72   ;;  %s3707_s9 = smov 71   ;;  %vm305_vm0 = vcmask 596992   ;;  %vm6070_vm1 = vcmask 1043456  }
   0xf   : > { %v698_v13 = vsub.s32 7, %v3775_v7  ;;  %v631_v14 = vsub.s32 6, %v3775_v7  ;;  %v462_v15 = vsub.s32 3, %v3775_v7  ;;  %v563_v22 = vsub.s32 5, %v3775_v7  ;;  %s6237_s16 = smov (!%p188_p3, %s3309_s16), 1  ;;  %s3708_s14 = smov 63  }
  0x10   : > { %v393_v33 = vsub.s32 2, %v3775_v7  ;;  %s3348_s10 = sshll.u32 %s6237_s16, 7  ;;  %v323_v37 = vsub.s32 1, %v3775_v7  ;;  %s3709_s17 = smov 65   ;;  %vm6072_vm2 = vcmask 72704   ;;  %vm488_vm3 = vcmask 515072  }
  0x11   : > { %v3802_v16 = vrot.slane %v3773_v6, %v698_v13  ;;  %v3805_v17 = vrot.slane %v3784_v9, %v698_v13  ;;  %v3808_v18 = vrot.slane %v3789_v10, %v698_v13  ;;  %v3811_v19 = vrot.slane %v3794_v11, %v698_v13  ;;  %s3877_s13 = scalar_lea.vmem %s6003_s0, %s3348_s10  ;;  %s3710_s18 = smov 57  }
  0x12   : > { %788 = vrot.lane.b32.xlu1 %v3779_v8, %s3704_s27  ;;  %v3816_v20 = vrot.slane %v3773_v6, %v631_v14  ;;  %v3819_v21 = vrot.slane %v3784_v9, %v631_v14  ;;  %v3827_v24 = vrot.slane %v3789_v10, %v462_v15  ;;  %v3830_v25 = vrot.slane %v3794_v11, %v462_v15  ;;  %v199_v38 = vld [vmem:[%s3877_s13] sm:$0xff]  ;;  %v3318_v39 = vld [vmem:[%s3877_s13 + $0x10] sm:$0xff]  ;;  %v200_v52 = vld [vmem:[%s3877_s13 + $0x8] sm:$0xff]  ;;  %s3711_s19 = smov 56   ;;  %s3712_s20 = smov 9  }
  0x13   : > { %6094 = vst [vmem:[#allocation6_spill] sm:$0xff] %v3802_v16  ;;  %6095 = vst [vmem:[#allocation7_spill] sm:$0xff] %v3805_v17  ;;  %v3824_v23 = vcombine.low %v3802_v16, %v3805_v17  ;;  %v3842_v27 = vcombine.low %v3808_v18, %v3811_v19  ;;  %v3845_v28 = vrot.slane %v3789_v10, %v631_v14  ;;  %v3320_v40 = vld [vmem:[%s3877_s13 + $0x20] sm:$0xff]  ;;  %v3322_v45 = vld [vmem:[%s3877_s13 + $0x30] sm:$0xff]  ;;  %s3713_s21 = smov 8   ;;  %s3714_s22 = smov 55  }
  0x14   : > { %6096 = vst [vmem:[#allocation8_spill] sm:$0xff] %v3808_v18  ;;  %6097 = vst [vmem:[#allocation9_spill] sm:$0xff] %v3811_v19  ;;  %v3836_v26 = vcombine.low %v3816_v20, %v3819_v21  ;;  %v3848_v29 = vrot.slane %v3794_v11, %v631_v14  ;;  %v3858_v30 = vcombine.low %v3827_v24, %v3830_v25  ;;  %v3324_v46 = vld [vmem:[%s3877_s13 + $0x40] sm:$0xff]  ;;  %v3326_v47 = vld [vmem:[%s3877_s13 + $0x50] sm:$0xff]  ;;  %s3715_s23 = smov 7   ;;  %s3716_s24 = smov 1  }
  0x15   : > { %6098 = vst [vmem:[#allocation10_spill] sm:$0xff] %v3816_v20  ;;  %6099 = vst [vmem:[#allocation11_spill] sm:$0xff] %v3819_v21  ;;  %718 = vrot.lane.b32.xlu0 %v3824_v23, %s3706_s8  ;;  %v3861_v31 = vrot.slane %v3789_v10, %v563_v22  ;;  %v3864_v32 = vrot.slane %v3794_v11, %v563_v22  ;;  %v3869_v34 = vrot.slane %v3773_v6, %v462_v15  ;;  %v3328_v50 = vld [vmem:[%s3877_s13 + $0x60] sm:$0xff]  ;;  %v3330_v51 = vld [vmem:[%s3877_s13 + $0x70] sm:$0xff]  ;;  %s3717_s25 = smov 127   ;;  %s3718_s26 = smov 119  }
  0x16   : > { %6100 = vst [vmem:[#allocation12_spill] sm:$0xff] %v3827_v24  ;;  %6101 = vst [vmem:[#allocation13_spill] sm:$0xff] %v3830_v25  ;;  %651 = vrot.lane.b32.xlu1 %v3836_v26, %s3707_s9  ;;  %v3872_v35 = vrot.slane %v3784_v9, %v462_v15  ;;  %v3883_v36 = vcombine.low %v3845_v28, %v3848_v29  ;;  %v3896_v42 = vrot.slane %v3789_v10, %v393_v33  ;;  %v3319_v57 = vld [vmem:[%s3877_s13 + $0x18] sm:$0xff]  ;;  %v3321_v58 = vld [vmem:[%s3877_s13 + $0x28] sm:$0xff]  ;;  %s3719_s28 = smov 121   ;;  %s3720_s29 = smov 120  }
  0x17   : > { %6102 = vst [vmem:[#allocation14_spill] sm:$0xff] %v3845_v28  ;;  %6103 = vst [vmem:[#allocation15_spill] sm:$0xff] %v3848_v29  ;;  %v3893_v41 = vcombine.low %v3861_v31, %v3864_v32  ;;  %v3899_v43 = vrot.slane %v3794_v11, %v393_v33  ;;  %v204_v44 = vmax.f32 %v199_v38, %v3318_v39  ;;  %v3323_v59 = vld [vmem:[%s3877_s13 + $0x38] sm:$0xff]  ;;  %v3325_v0 = vld [vmem:[%s3877_s13 + $0x48] sm:$0xff]  ;;  %s3721_s30 = smov 64   ;;  %vm444_vm4 = vcmask 580608  }
  0x18   : > { %6104 = vst [vmem:[#allocation16_spill] sm:$0xff] %v3861_v31  ;;  %6105 = vst [vmem:[#allocation17_spill] sm:$0xff] %v3864_v32  ;;  %v212_v48 = vmax.f32 %v3320_v40, %v3322_v45  ;;  %v222_v49 = vmax.f32 %v3324_v46, %v3326_v47  ;;  %v3909_v53 = vcombine.low %v3869_v34, %v3872_v35  ;;  %v3327_v1 = vld [vmem:[%s3877_s13 + $0x58] sm:$0xff]  ;;  %v3329_v2 = vld [vmem:[%s3877_s13 + $0x68] sm:$0xff]  ;;  %vm375_vm5 = vcmask 588800  }
  0x19   : > { %6106 = vst [vmem:[#allocation18_spill] sm:$0xff] %v3869_v34  ;;  %6107 = vst [vmem:[#allocation19_spill] sm:$0xff] %v3872_v35  ;;  %720 = vrot.lane.b32.xlu0 %v3842_v27, %s3706_s8  ;;  %v3912_v54 = vrot.slane %v3773_v6, %v563_v22  ;;  %v3915_v55 = vrot.slane %v3784_v9, %v563_v22  ;;  %v230_v56 = vmax.f32 %v3328_v50, %v3330_v51  ;;  %v3331_v15 = vld [vmem:[%s3877_s13 + $0x78] sm:$0xff]  ;;  %vm514_vm6 = vcmask 531456  }
  0x1a   : > { %484 = vrot.lane.b32.xlu1 %v3858_v30, %s3708_s14  ;;  %6108 = vst [vmem:[#allocation20_spill] sm:$0xff] %v3896_v42  ;;  %6109 = vst [vmem:[#allocation21_spill] sm:$0xff] %v3899_v43  ;;  %v3923_v60 = vrot.slane %v3789_v10, %v323_v37  ;;  %v214_v61 = vmax.f32 %v204_v44, %v212_v48  ;;  %v205_v62 = vmax.f32 %v200_v52, %v3319_v57  ;;  %vm419_vm7 = vcmask 465920  }
  0x1b   : > { %6110 = vst [vmem:[#allocation22_spill] sm:$0xff] %v3912_v54  ;;  %6111 = vst [vmem:[#allocation23_spill] sm:$0xff] %v3915_v55  ;;  %v213_v63 = vmax.f32 %v3321_v58, %v3323_v59  ;;  %v412_v4 = vcombine.low %v3896_v42, %v3899_v43  ;;  %v3933_v5 = vrot.slane %v3794_v11, %v323_v37  ;;  %v253_v52 = vsub.s32 0, %v3775_v7 }
  0x1c   : > { %6112 = vst [vmem:[#allocation24_spill] sm:$0xff] %v3923_v60  ;;  %v232_v13 = vmax.f32 %v222_v49, %v230_v56  ;;  %v223_v14 = vmax.f32 %v3325_v0, %v3327_v1  ;;  %v231_v38 = vmax.f32 %v3329_v2, %v3331_v15  ;;  %v581_v40 = vcombine.low %v3912_v54, %v3915_v55 }
  0x1d   : > { %653 = vrot.lane.b32.xlu0 %v3883_v36, %s3707_s9  ;;  %6113 = vst [vmem:[#allocation25_spill] sm:$0xff] %v3933_v5  ;;  %v215_v22 = vmax.f32 %v205_v62, %v213_v63  ;;  %v3943_v44 = vrot.slane %v3773_v6, %v393_v33  ;;  %v3946_v45 = vrot.slane %v3784_v9, %v393_v33  ;;  %vm349_vm8 = vcmask 457728  }
  0x1e   : > { %585 = vrot.lane.b32.xlu1 %v3893_v41, %s3709_s17  ;;  %v3936_v39 = vmax.f32 %v214_v61, %v232_v13  ;;  %v233_v46 = vmax.f32 %v223_v14, %v231_v38  ;;  %v342_v47 = vcombine.low %v3923_v60, %v3933_v5  ;;  %v3958_v50 = vrot.slane %v3773_v6, %v323_v37 }
  0x1f   : > { %6114 = vst [vmem:[#allocation26_spill] sm:$0xff] %v3943_v44  ;;  %6115 = vst [vmem:[#allocation27_spill] sm:$0xff] %v3946_v45  ;;  %v411_v49 = vcombine.low %v3943_v44, %v3946_v45  ;;  %v3961_v33 = vrot.slane %v3784_v9, %v323_v37  ;;  %v3973_v37 = vrot.slane %v3773_v6, %v253_v52  ;;  %vm6069_vm9 = vcmask 64512  }
  0x20   : > { %246 = vst [vmem:[#allocation2 + $0x4] sm:$0xff] %v3936_v39  ;;  %v3952_v48 = vmax.f32 %v215_v22, %v233_v46  ;;  %6116 = vst [vmem:[#allocation28_spill] sm:$0xff] %v3958_v50  ;;  %v3976_v56 = vrot.slane %v3784_v9, %v253_v52  ;;  %v3988_v57 = vrot.slane %v3794_v11, %v253_v52  ;;  %vm545_vm10 = vcmask 523264  }
  0x21   : > { %482 = vrot.lane.b32.xlu0 %v3909_v53, %s3708_s14  ;;  %6117 = vst [vmem:[#allocation29_spill] sm:$0xff] %v3961_v33  ;;  %v341_v51 = vcombine.low %v3958_v50, %v3961_v33  ;;  %6118 = vst [vmem:[#allocation30_spill] sm:$0xff] %v3973_v37  ;;  %vm279_vm11 = vcmask 449536   ;;  %vm980_vm12 = vcmask 1039360   ;;  %vm1005_vm13 = vcmask 7168  }
  0x22   : > { %415 = vrot.lane.b32.xlu1 %v412_v4, %s3710_s18  ;;  %247 = vst [vmem:[#allocation2 + $0xc] sm:$0xff] %v3952_v48  ;;  %6119 = vst [vmem:[#allocation31_spill] sm:$0xff] %v3976_v56  ;;  %v271_v7 = vcombine.low %v3973_v37, %v3976_v56  ;;  %v1445_v37 = vld [vmem:[#allocation2 + $0x14] sm:$0xf]  ;;  %vm6068_vm14 = vcmask 56320   ;;  %vm6071_vm15 = vcmask 973824  }
  0x23   : > { %6121 = vst [vmem:[#allocation33_spill] sm:$0xff] %v3988_v57 }
  0x25   : > { %583 = vrot.lane.b32.xlu0 %v581_v40, %s3709_s17 }
  0x26   : > { %345 = vrot.lane.b32.xlu1 %v342_v47, %s3711_s19 }
  0x29   : > { %413 = vrot.lane.b32.xlu0 %v411_v49, %s3710_s18 }
  0x2a   : > { %1171 = vrot.lane.b32.xlu1 %v3779_v8, %s3712_s20  ;;  %v3985_v8 = vrot.slane %v3789_v10, %v253_v52 }
  0x2c   : > { %6120 = vst [vmem:[#allocation32_spill] sm:$0xff] %v3985_v8  ;;  %v272_v6 = vcombine.low %v3985_v8, %v3988_v57 }
  0x2d   : > { %343 = vrot.lane.b32.xlu0 %v341_v51, %s3711_s19 }
  0x2e   : > { %1124 = vrot.lane.b32.xlu1 %v3824_v23, %s3713_s21  ;;  %v1479_v23 = vld [vmem:[#allocation2 + $0x14] sm:$0xf] }
  0x31   : > { %1169 = vrot.lane.b32.xlu0 %v3762_v3, %s3712_s20  ;;  %v1352_v3 = vcombine.high %v3936_v39, %v3936_v39 }
  0x32   : > { %1126 = vrot.lane.b32.xlu1 %v3842_v27, %s3713_s21 }
  0x35   : > { %273 = vrot.lane.b32.xlu0 %v271_v7, %s3714_s22 }
  0x36   : > { %1080 = vrot.lane.b32.xlu1 %v3883_v36, %s3715_s23 }
  0x39   : > { %275 = vrot.lane.b32.xlu0 %v272_v6, %s3714_s22 }
  0x3a   : > { %1033 = vrot.lane.b32.xlu1 %v581_v40, %s3716_s24 }
  0x3d   : > { %1078 = vrot.lane.b32.xlu0 %v3836_v26, %s3715_s23 }
  0x3e   : > { %1035 = vrot.lane.b32.xlu1 %v3893_v41, %s3716_s24 }
  0x41   : > { %974 = vrot.lane.b32.xlu0 %v3909_v53, %s3717_s25 }
  0x42   : > { %833 = vrot.lane.b32.xlu1 %v272_v6, %s3718_s26 }
  0x45   : > { %976 = vrot.lane.b32.xlu0 %v3858_v30, %s3717_s25 }
  0x46   : > { %928 = vrot.lane.b32.xlu1 %v412_v4, %s3719_s28 }
  0x49   : > { %831 = vrot.lane.b32.xlu0 %v271_v7, %s3718_s26 }
  0x4a   : > { %881 = vrot.lane.b32.xlu1 %v342_v47, %s3720_s29 }
  0x4d   : > { %926 = vrot.lane.b32.xlu0 %v411_v49, %s3719_s28 }
  0x4e   : > { %1356 = vrot.lane.b32.xlu1 %v1352_v3, %s3721_s30 }
  0x51   : > { %879 = vrot.lane.b32.xlu0 %v341_v51, %s3720_s29 }
  0x52   : > { %1354 = vrot.lane.b32.xlu1 %v3936_v39, %s3721_s30 }
  0x55   : > { %1358 = vrot.lane.b32.xlu0 %v3952_v48, %s3721_s30 }
  0x80   : > { %v787_v9 = vpop.permute.xlu1 %786 }
  0x81   : > { %v790_v10 = vrot.slane %v787_v9, 4 }
  0x83   : > { %v4023_v27 = vsel %vm305_vm0, %v790_v10, %v787_v9 }
  0x84   : > { %v789_v11 = vpop.permute.xlu1 %788  ;;  %v1480_v58 = vmul.f32 %v4023_v27, %v3936_v39 }
  0x85   : > { %v4020_v26 = vrot.slane %v789_v11, 4 }
  0x87   : > { %v793_v30 = vsel %vm6070_vm1, %v790_v10, %v4020_v26  ;;  %v4027_v36 = vpop.permute.xlu0 %718  ;;  %v1482_v41 = vmul.f32 %v1479_v23, %v4020_v26 }
  0x88   : > { %v4030_v53 = vpop.permute.xlu1 %651  ;;  %v4036_v59 = vsel %vm305_vm0, %v793_v30, %v789_v11 }
  0x89   : > { %1496 = vrot.lane.b32.xlu0 %v1482_v41, %s3714_s22  ;;  %v1481_v63 = vmul.f32 %v4036_v59, %v3952_v48  ;;  %v1486_v41 = vcombine.high %v1480_v58, %v1480_v58 }
  0x8b   : > { %v4038_v61 = vpop.permute.xlu0 %720  ;;  %v1487_v19 = vcombine.high %v1481_v63, %v1481_v63 }
  0x8c   : > { %v4040_v62 = vpop.permute.xlu1 %484  ;;  %v4173_v45 = vrot.slane %v4038_v61, 4 }
  0x8d   : > { %1488 = vrot.lane.b32.xlu0 %v1480_v58, %s3714_s22 }
  0x8e   : > { %6124 = vst [vmem:[#allocation34_spill] sm:$0xff] %v4173_v45 }
  0x8f   : > { %v4045_v0 = vpop.permute.xlu0 %653 }
  0x90   : > { %v4047_v1 = vpop.permute.xlu1 %585  ;;  %v4086_v23 = vrot.slane %v4045_v0, 4 }
  0x91   : > { %1492 = vrot.lane.b32.xlu0 %v1481_v63, %s3714_s22 }
  0x93   : > { %v4050_v2 = vpop.permute.xlu0 %482 }
  0x94   : > { %v4052_v4 = vpop.permute.xlu1 %415 }
  0x97   : > { %v4054_v13 = vpop.permute.xlu0 %583 }
  0x98   : > { %v4056_v14 = vpop.permute.xlu1 %345 }
  0x9b   : > { %v414_v15 = vpop.permute.xlu0 %413 }
  0x9c   : > { %v4058_v22 = vpop.permute.xlu1 %1171  ;;  %v417_v16 = vrot.slane %v414_v15, 4 }
  0x9d   : > { %v6010_v46 = vrot.slane %v4058_v22, 4 }
  0x9f   : > { %v4060_v38 = vpop.permute.xlu0 %343 }
  0xa0   : > { %v4062_v40 = vpop.permute.xlu1 %1124  ;;  %v6125_v44 = vrot.slane %v4060_v38, 4 }
  0xa2   : > { %v4195_v50 = vsel %vm349_vm8, %v6125_v44, %v4060_v38 }
  0xa3   : > { %v1170_v47 = vpop.permute.xlu0 %1169 }
  0xa4   : > { %v1173_v49 = vrot.slane %v1170_v47, 4  ;;  %v4065_v51 = vpop.permute.xlu1 %1126 }
  0xa5   : > { %v6126_v32 = vrot.slane %v4065_v51, 4 }
  0xa6   : > { %v1175_v52 = vsel %vm6072_vm2, %v1173_v49, %v1170_v47  ;;  %v1176_v7 = vsel %vm6070_vm1, %v1173_v49, %v6010_v46  ;;  %v1412_v47 = vld [vmem:[#allocation2 + $0x14] sm:$0xf]  ;;  %v722_v46 = vrot.slane %v4027_v36, 4 }
  0xa7   : > { %v4072_v6 = vmul.f32 %v1175_v52, %v3936_v39  ;;  %v1177_v3 = vsel %vm6072_vm2, %v1176_v7, %v4058_v22  ;;  %v4076_v9 = vpop.permute.xlu0 %273  ;;  %v1415_v12 = vmul.f32 %v1412_v47, %v4086_v23 }
  0xa8   : > { %v4079_v10 = vmul.f32 %v1177_v3, %v3952_v48  ;;  %v4081_v11 = vpop.permute.xlu1 %1080  ;;  %v655_v3 = vrot.slane %v4030_v53, 4  ;;  %v4123_v63 = vsel %vm375_vm5, %v722_v46, %v4027_v36  ;;  %v725_v33 = vsel %vm6070_vm1, %v722_v46, %v4173_v45 }
  0xa9   : > { %1192 = vrot.lane.b32.xlu1 %v4072_v6, %s3718_s26  ;;  %v277_v29 = vrot.slane %v4076_v9, 4  ;;  %v4218_v46 = vmul.f32 %v4195_v50, %v3936_v39 }
  0xaa   : > { %v1188_v30 = vcombine.low %v4079_v10, %v4079_v10  ;;  %v4102_v58 = vsel %vm444_vm4, %v655_v3, %v4030_v53  ;;  %v658_v36 = vsel %vm6070_vm1, %v655_v3, %v4086_v23  ;;  %v4163_v3 = vsel %vm419_vm7, %v417_v16, %v414_v15 }
  0xab   : > { %v4090_v49 = vpop.permute.xlu0 %275  ;;  %v4119_v53 = vmul.f32 %v4102_v58, %v3936_v39  ;;  %v4158_v8 = vsel %vm444_vm4, %v658_v36, %v4045_v0  ;;  %v1128_v15 = vrot.slane %v4062_v40, 4 }
  0xac   : > { %1194 = vrot.lane.b32.xlu0 %v1188_v30, %s3718_s26  ;;  %v4094_v7 = vpop.permute.xlu1 %1033  ;;  %v6122_v30 = vrot.slane %v4050_v2, 4  ;;  %v4179_v0 = vmul.f32 %v4158_v8, %v3952_v48  ;;  %v4214_v35 = vrot.slane %v4090_v49, 4 }
  0xad   : > { %1490 = vrot.lane.b32.xlu1 %v1486_v41, %s3714_s22  ;;  %v1131_v44 = vsel %vm6070_vm1, %v1128_v15, %v6126_v32  ;;  %v1419_v31 = vcombine.high %v4119_v53, %v4119_v53 }
  0xae   : > { %v4110_v57 = vsel %vm488_vm3, %v6122_v30, %v4050_v2  ;;  %v1132_v28 = vsel %vm6069_vm9, %v1131_v44, %v4065_v51  ;;  %v282_v20 = vsel %vm6070_vm1, %v277_v29, %v4214_v35 }
  0xaf   : > { %v4104_v52 = vpop.permute.xlu0 %1078  ;;  %v4127_v30 = vmul.f32 %v4110_v57, %v3936_v39  ;;  %v4240_v21 = vmul.f32 %v1132_v28, %v3952_v48  ;;  %v4244_v55 = vsel %vm279_vm11, %v282_v20, %v4090_v49 }
  0xb0   : > { %1429 = vrot.lane.b32.xlu0 %v1415_v12, %s3710_s18  ;;  %v4114_v47 = vpop.permute.xlu1 %1035  ;;  %v6123_v12 = vrot.slane %v4054_v13, 4  ;;  %v4259_v20 = vmul.f32 %v4244_v55, %v3952_v48 }
  0xb1   : > { %1494 = vrot.lane.b32.xlu1 %v1487_v19, %s3714_s22  ;;  %v4138_v19 = vrot.slane %v4052_v4, 4 }
  0xb2   : > { %v4135_v18 = vsel %vm514_vm6, %v6123_v12, %v4054_v13  ;;  %v4150_v12 = vmul.f32 %v4123_v63, %v3936_v39 }
  0xb3   : > { %v4129_v41 = vpop.permute.xlu0 %974  ;;  %v4154_v43 = vmul.f32 %v4135_v18, %v3936_v39  ;;  %v421_v56 = vsel %vm6070_vm1, %v417_v16, %v4138_v19  ;;  %v1282_v16 = vmul.f32 %v4163_v3, %v3936_v39 }
  0xb4   : > { %1421 = vrot.lane.b32.xlu0 %v4119_v53, %s3710_s18  ;;  %v4144_v17 = vpop.permute.xlu1 %833  ;;  %v4187_v42 = vsel %vm419_vm7, %v421_v56, %v4052_v4  ;;  %v1448_v56 = vmul.f32 %v1445_v37, %v4173_v45  ;;  %v4224_v37 = vsel %vm375_vm5, %v725_v33, %v4038_v61  ;;  %v1452_v49 = vcombine.low %v4150_v12, %v4150_v12 }
  0xb5   : > { %1326 = vrot.lane.b32.xlu1 %v4127_v30, %s3709_s17  ;;  %v4207_v4 = vmul.f32 %v4187_v42, %v3952_v48  ;;  %v1447_v33 = vmul.f32 %v4224_v37, %v3952_v48  ;;  %v6127_v53 = vrot.slane %v4050_v2, 4  ;;  %v1130_v45 = vsel %vm6069_vm9, %v1128_v15, %v4062_v40 }
  0xb6   : > { %v1454_v34 = vcombine.low %v1448_v56, %v1448_v56  ;;  %v1288_v2 = vcombine.high %v1282_v16, %v1282_v16  ;;  %v4292_v15 = vrot.slane %v4056_v14, 4  ;;  %vm932_vm9 = vcmask 990208  }
  0xb7   : > { %v4160_v5 = vpop.permute.xlu0 %976 }
  0xb8   : > { %1457 = vrot.lane.b32.xlu0 %v4150_v12, %s3711_s19  ;;  %v4170_v25 = vpop.permute.xlu1 %928  ;;  %v4281_v12 = vmul.f32 %v1130_v45, %v3936_v39  ;;  %v1385_v45 = vcombine.low %v4154_v43, %v4154_v43 }
  0xb9   : > { %1390 = vrot.lane.b32.xlu1 %v4154_v43, %s3708_s14 }
  0xbb   : > { %v4189_v60 = vpop.permute.xlu0 %831 }
  0xbc   : > { %1425 = vrot.lane.b32.xlu0 %v4179_v0, %s3710_s18  ;;  %v4199_v36 = vpop.permute.xlu1 %881 }
  0xbd   : > { %1290 = vrot.lane.b32.xlu1 %v1282_v16, %s3707_s9 }
  0xbf   : > { %v4220_v24 = vpop.permute.xlu0 %926 }
  0xc0   : > { %1294 = vrot.lane.b32.xlu0 %v4207_v4, %s3707_s9  ;;  %v1357_v32 = vpop.permute.xlu1 %1356 }
  0xc1   : > { %1259 = vrot.lane.b32.xlu1 %v4218_v46, %s3706_s8 }
  0xc3   : > { %v4236_v61 = vpop.permute.xlu0 %879 }
  0xc4   : > { %1463 = vrot.lane.b32.xlu0 %v1454_v34, %s3711_s19  ;;  %v1355_v44 = vpop.permute.xlu1 %1354  ;;  %v4253_v34 = vrot.slane %v4040_v62, 4 }
  0xc5   : > { %1461 = vrot.lane.b32.xlu1 %v1447_v33, %s3711_s19  ;;  %v1364_v56 = vsel %vm545_vm10, %v1355_v44, %v1357_v32 }
  0xc6   : > { %1372 = vst [vmem:[#allocation4 + $0x70] sm:$0xf] %v1364_v56  ;;  %v490_v44 = vsel %vm6070_vm1, %v6127_v53, %v4253_v34  ;;  %v4271_v56 = vrot.slane %v4047_v1, 4 }
  0xc7   : > { %v4250_v54 = vpop.permute.xlu0 %1358 }
  0xc8   : > { %1148 = vrot.lane.b32.xlu0 %v4240_v21, %s3720_s29  ;;  %v1365_v28 = vsel %vm545_vm10, %v1357_v32, %v4250_v54  ;;  %v4285_v32 = vsel %vm488_vm3, %v490_v44, %v4040_v62 }
  0xc9   : > { %1423 = vrot.lane.b32.xlu1 %v1419_v31, %s3710_s18  ;;  %1373 = vst [vmem:[#allocation4 + $0x78] sm:$0xf] %v1365_v28  ;;  %v1321_v31 = vcombine.low %v4127_v30, %v4127_v30  ;;  %v6128_v28 = vrot.slane %v4054_v13, 4  ;;  %v1316_v62 = vmul.f32 %v4285_v32, %v3952_v48  ;;  %v1142_v30 = vcombine.high %v4281_v12, %v4281_v12 }
  0xcb   : > { %v590_v40 = vsel %vm6070_vm1, %v6128_v28, %v4271_v56  ;;  %v1322_v43 = vcombine.low %v1316_v62, %v1316_v62 }
  0xcc   : > { %1227 = vrot.lane.b32.xlu0 %v4259_v20, %s3704_s27 }
  0xcd   : > { %1455 = vrot.lane.b32.xlu1 %v1452_v49, %s3711_s19  ;;  %v4296_v49 = vsel %vm279_vm11, %v277_v29, %v4076_v9  ;;  %v4312_v29 = vsel %vm514_vm6, %v590_v40, %v4047_v1  ;;  %v6129_v9 = vrot.slane %v4060_v38, 4  ;;  %v1281_v40 = vld [vmem:[#allocation2 + $0x14] sm:$0xf] }
  0xce   : > { %v4306_v13 = vmul.f32 %v4296_v49, %v3936_v39  ;;  %v1380_v53 = vmul.f32 %v4312_v29, %v3952_v48 }
  0xcf   : > { %v351_v16 = vsel %vm6070_vm1, %v6129_v9, %v4292_v15  ;;  %v1289_v9 = vcombine.high %v4207_v4, %v4207_v4  ;;  %v979_v4 = vrot.slane %v4160_v5, 4 }
  0xd0   : > { %1324 = vrot.lane.b32.xlu0 %v1321_v31, %s3709_s17  ;;  %v1221_v44 = vcombine.high %v4306_v13, %v4306_v13  ;;  %v4326_v1 = vsel %vm349_vm8, %v351_v16, %v4056_v14  ;;  %v1386_v38 = vcombine.low %v1380_v53, %v1380_v53  ;;  %v1420_v14 = vcombine.high %v4179_v0, %v4179_v0 }
  0xd1   : > { %1292 = vrot.lane.b32.xlu1 %v1288_v2, %s3707_s9  ;;  %v4332_v31 = vmul.f32 %v4326_v1, %v3952_v48  ;;  %v1453_v2 = vcombine.low %v1447_v33, %v1447_v33  ;;  %v1353_v0 = vcombine.high %v3952_v48, %v3952_v48 }
  0xd3   : > { %v1255_v28 = vcombine.low %v4332_v31, %v4332_v31 }
  0xd4   : > { %1388 = vrot.lane.b32.xlu0 %v1385_v45, %s3708_s14  ;;  %v1314_v45 = vld [vmem:[#allocation2 + $0x14] sm:$0xf] }
  0xd5   : > { %1146 = vrot.lane.b32.xlu1 %v1142_v30, %s3720_s29  ;;  %v1284_v30 = vmul.f32 %v1281_v40, %v4138_v19  ;;  %v1317_v33 = vmul.f32 %v1314_v45, %v4253_v34  ;;  %v1038_v40 = vrot.slane %v4114_v47, 4  ;;  %v1018_v45 = vld [vmem:[#allocation2 + $0x4] sm:$0xff] }
  0xd6   : > { %1027 = vst [vmem:[#allocation4 + $0xf8] sm:$0xf0] %v1018_v45 }
  0xd7   : > { %v1323_v16 = vcombine.low %v1317_v33, %v1317_v33  ;;  %v1083_v33 = vrot.slane %v4081_v11, 4 }
  0xd8   : > { %1328 = vrot.lane.b32.xlu0 %v1322_v43, %s3709_s17  ;;  %v1378_v43 = vld [vmem:[#allocation2 + $0x14] sm:$0xf] }
  0xd9   : > { %1225 = vrot.lane.b32.xlu1 %v1221_v44, %s3704_s27  ;;  %v1348_v44 = vld [vmem:[#allocation2 + $0x14] sm:$0xf] }
  0xdc   : > { %1392 = vrot.lane.b32.xlu0 %v1386_v38, %s3708_s14  ;;  %v1381_v38 = vmul.f32 %v1378_v43, %v4271_v56 }
  0xdd   : > { %1459 = vrot.lane.b32.xlu1 %v1453_v2, %s3711_s19 }
  0xde   : > { %v1387_v2 = vcombine.low %v1381_v38, %v1381_v38 }
  0xe0   : > { %1261 = vrot.lane.b32.xlu0 %v1255_v28, %s3706_s8  ;;  %v978_v28 = vrot.slane %v4129_v41, 4 }
  0xe1   : > { %1427 = vrot.lane.b32.xlu1 %v1420_v14, %s3710_s18  ;;  %v1187_v14 = vcombine.low %v4072_v6, %v4072_v6  ;;  %v4374_v6 = vld [vmem:[#allocation2] sm:$0xff] }
  0xe4   : > { %1298 = vrot.lane.b32.xlu0 %v1284_v30, %s3707_s9  ;;  %v981_v30 = vsel %vm980_vm12, %v978_v28, %v4129_v41  ;;  %v1254_v41 = vcombine.low %v4218_v46, %v4218_v46 }
  0xe5   : > { %1296 = vrot.lane.b32.xlu1 %v1289_v9, %s3707_s9 }
  0xe8   : > { %1332 = vrot.lane.b32.xlu0 %v1323_v16, %s3709_s17  ;;  %v1082_v16 = vrot.slane %v4104_v52, 4 }
  0xe9   : > { %1330 = vrot.lane.b32.xlu1 %v1316_v62, %s3709_s17  ;;  %v982_v62 = vsel %vm6070_vm1, %v978_v28, %v979_v4 }
  0xea   : > { %v983_v9 = vsel %vm980_vm12, %v982_v62, %v4160_v5  ;;  %v1085_v38 = vsel %vm6070_vm1, %v1082_v16, %v1083_v33 }
  0xeb   : > { %v1086_v28 = vsel %vm6068_vm14, %v1085_v38, %v4081_v11  ;;  %v1168_v38 = vld [vmem:[#allocation2 + $0x14] sm:$0xf] }
  0xec   : > { %1362 = vrot.lane.b32.xlu0 %v1348_v44, %s3721_s30  ;;  %v987_v44 = vmul.f32 %v981_v30, %v4374_v6  ;;  %v4408_v30 = vmul.f32 %v1086_v28, %v3952_v48  ;;  %v1214_v28 = vld [vmem:[#allocation2 + $0x14] sm:$0xf] }
  0xed   : > { %1360 = vrot.lane.b32.xlu1 %v1353_v0, %s3721_s30  ;;  %v4382_v0 = vld [vmem:[#allocation2 + $0x8] sm:$0xff] }
  0xf0   : > { %1396 = vrot.lane.b32.xlu0 %v1387_v2, %s3708_s14  ;;  %v4392_v2 = vmul.f32 %v983_v9, %v4382_v0  ;;  %v1097_v9 = vcombine.low %v4408_v30, %v4408_v30 }
  0xf1   : > { %1394 = vrot.lane.b32.xlu1 %v1380_v53, %s3708_s14  ;;  %v1037_v53 = vrot.slane %v4094_v7, 4 }
  0xf3   : > { %v1040_v43 = vsel %vm6070_vm1, %v1037_v53, %v1038_v40 }
  0xf4   : > { %1190 = vrot.lane.b32.xlu0 %v1187_v14, %s3718_s26  ;;  %v1041_v46 = vsel %vm1005_vm13, %v1040_v43, %v4114_v47  ;;  %v993_v14 = vcombine.high %v987_v44, %v987_v44  ;;  %v1123_v43 = vld [vmem:[#allocation2 + $0x14] sm:$0xf] }
  0xf5   : > { %1144 = vrot.lane.b32.xlu1 %v4281_v12, %s3720_s29  ;;  %v1039_v12 = vsel %vm1005_vm13, %v1037_v53, %v4094_v7  ;;  %v4404_v7 = vmul.f32 %v1041_v46, %v3952_v48  ;;  %v6130_v48 = vrot.slane %v4065_v51, 4  ;;  %v1143_v46 = vcombine.high %v4240_v21, %v4240_v21 }
  0xf6   : > { %v1045_v62 = vmul.f32 %v1039_v12, %v3936_v39  ;;  %v1022_v51 = vcombine.low %v1018_v45, %v1018_v45  ;;  %v1222_v21 = vcombine.high %v4259_v20, %v4259_v20  ;;  %v836_v45 = vrot.slane %v4144_v17, 4 }
  0xf7   : > { %v1138_v12 = vmul.f32 %v6130_v48, %v1123_v43  ;;  %v883_v20 = vrot.slane %v4236_v61, 4 }
  0xf8   : > { %1257 = vrot.lane.b32.xlu0 %v1254_v41, %s3706_s8  ;;  %v1051_v53 = vcombine.high %v1045_v62, %v1045_v62  ;;  %1026 = vst [vmem:[#allocation4 + $0xe8] sm:$0xf0] %v1022_v51 }
  0xf9   : > { %1223 = vrot.lane.b32.xlu1 %v4306_v13, %s3704_s27  ;;  %v1084_v13 = vsel %vm6068_vm14, %v1082_v16, %v4104_v52  ;;  %v6131_v52 = vrot.slane %v4058_v22, 4  ;;  %v1217_v22 = vmul.f32 %v1214_v28, %v4214_v35  ;;  %vm885_vm14 = vcmask 982016  }
  0xfa   : > { %v1090_v41 = vmul.f32 %v1084_v13, %v3936_v39  ;;  %v884_v28 = vrot.slane %v4199_v36, 4 }
  0xfb   : > { %v1183_v16 = vmul.f32 %v6131_v52, %v1168_v38  ;;  %v4444_v38 = vmul.f32 %v4023_v27, %v4374_v6  ;;  %v886_v52 = vsel %vm885_vm14, %v883_v20, %v4236_v61 }
  0xfc   : > { %999 = vrot.lane.b32.xlu0 %v4392_v2, %s3716_s24  ;;  %v4471_v61 = vmul.f32 %v886_v52, %v4374_v6 }
  0xfd   : > { %997 = vrot.lane.b32.xlu1 %v993_v14, %s3716_s24  ;;  %v1189_v39 = vcombine.low %v1183_v16, %v1183_v16  ;;  %v1247_v14 = vld [vmem:[#allocation2 + $0x14] sm:$0xf] }
  0xfe   : > { %v1250_v13 = vmul.f32 %v1247_v14, %v4292_v15 }
 0x100   : > { %1057 = vrot.lane.b32.xlu0 %v4404_v7, %s3717_s25 }
 0x101   : > { %1055 = vrot.lane.b32.xlu1 %v1051_v53, %s3717_s25  ;;  %v1497_v53 = vpop.permute.xlu0 %1496 }
 0x104   : > { %1103 = vrot.lane.b32.xlu0 %v1097_v9, %s3719_s28  ;;  %v1256_v9 = vcombine.low %v1250_v13, %v1250_v13  ;;  %v4483_v13 = vmul.f32 %v4036_v59, %v4382_v0  ;;  %v887_v59 = vsel %vm6070_vm1, %v883_v20, %v884_v28 }
 0x105   : > { %1101 = vrot.lane.b32.xlu1 %v1090_v41, %s3719_s28  ;;  %v1489_v43 = vpop.permute.xlu0 %1488 }
 0x108   : > { %1152 = vrot.lane.b32.xlu0 %v1138_v12, %s3720_s29 }
 0x109   : > { %1150 = vrot.lane.b32.xlu1 %v1143_v46, %s3720_s29  ;;  %v1493_v12 = vpop.permute.xlu0 %1492  ;;  %v1096_v46 = vcombine.low %v1090_v41, %v1090_v41 }
 0x10c   : > { %1198 = vrot.lane.b32.xlu0 %v1189_v39, %s3718_s26  ;;  %v931_v39 = vrot.slane %v4170_v25, 4 }
 0x10d   : > { %1196 = vrot.lane.b32.xlu1 %v4079_v10, %s3718_s26  ;;  %v835_v10 = vrot.slane %v4189_v60, 4 }
 0x10f   : > { %v839_v48 = vsel %vm6070_vm1, %v835_v10, %v836_v45  ;;  %v838_v27 = vsel %vm6071_vm15, %v835_v10, %v4189_v60 }
 0x110   : > { %1231 = vrot.lane.b32.xlu0 %v1217_v22, %s3704_s27  ;;  %v4468_v60 = vmul.f32 %v838_v27, %v4374_v6 }
 0x111   : > { %1229 = vrot.lane.b32.xlu1 %v1222_v21, %s3704_s27  ;;  %v1019_v21 = vld [vmem:[#allocation2 + $0xc] sm:$0xff] }
 0x112   : > { %1029 = vst [vmem:[#allocation4 + $0xb8] sm:$0xf0] %v1019_v21  ;;  %v850_v47 = vcombine.low %v4468_v60, %v4468_v60 }
 0x114   : > { %1265 = vrot.lane.b32.xlu0 %v1256_v9, %s3706_s8 }
 0x115   : > { %1263 = vrot.lane.b32.xlu1 %v4332_v31, %s3706_s8  ;;  %v804_v31 = vcombine.high %v4444_v38, %v4444_v38 }
 0x118   : > { %1053 = vrot.lane.b32.xlu0 %v1045_v62, %s3717_s25  ;;  %v840_v62 = vsel %vm6071_vm15, %v839_v48, %v4144_v17  ;;  %v1023_v48 = vcombine.low %v1019_v21, %v1019_v21 }
 0x119   : > { %995 = vrot.lane.b32.xlu1 %v987_v44, %s3716_s24  ;;  %v930_v44 = vrot.slane %v4220_v24, 4  ;;  %v4476_v14 = vmul.f32 %v840_v62, %v4382_v0 }
 0x11a   : > { %1028 = vst [vmem:[#allocation4 + $0x190] sm:$0xf0] %v1023_v48 }
 0x11b   : > { %v4458_v16 = vpop.permute.xlu1 %1192  ;;  %v933_v52 = vsel %vm932_vm9, %v930_v44, %v4220_v24 }
 0x11c   : > { %808 = vrot.lane.b32.xlu0 %v804_v31, %s3714_s22  ;;  %v934_v31 = vsel %vm6070_vm1, %v930_v44, %v931_v39  ;;  %v939_v24 = vmul.f32 %v933_v52, %v4374_v6  ;;  %v1052_v52 = vcombine.high %v4404_v7, %v4404_v7  ;;  %vm1599_vm1 = vcmask 1045504  }
 0x11d   : > { %1099 = vrot.lane.b32.xlu1 %v1096_v46, %s3719_s28  ;;  %v851_v46 = vcombine.low %v4476_v14, %v4476_v14  ;;  %v935_v20 = vsel %vm932_vm9, %v934_v31, %v4170_v25 }
 0x11e   : > { %v4473_v41 = vpop.permute.xlu0 %1194 }
 0x11f   : > { %v1201_v51 = vsel %vm6071_vm15, %v4458_v16, %v4473_v41  ;;  %v1491_v22 = vpop.permute.xlu1 %1490 }
 0x120   : > { %1209 = vst [vmem:[#allocation4 + $0x68] sm:$0xf0] %v1201_v51  ;;  %v1498_v9 = vsel %vm279_vm11, %v1489_v43, %v1491_v22  ;;  %v1499_v10 = vsel %vm279_vm11, %v1491_v22, %v1493_v12  ;;  %855 = vrot.lane.b32.xlu0 %v4468_v60, %s3712_s20  ;;  %v898_v43 = vcombine.high %v4471_v61, %v4471_v61 }
 0x121   : > { %1506 = vst [vmem:[#allocation4 + $0x58] sm:$0xf] %v1498_v9  ;;  %1507 = vst [vmem:[#allocation4 + $0xf0] sm:$0xf] %v1499_v10  ;;  %810 = vrot.lane.b32.xlu1 %v4483_v13, %s3714_s22  ;;  %v888_v51 = vsel %vm885_vm14, %v887_v59, %v4199_v36  ;;  %v4515_v9 = vmul.f32 %v935_v20, %v4382_v0  ;;  %v1077_v20 = vld [vmem:[#allocation2 + $0x14] sm:$0xf] }
 0x122   : > { %v4499_v27 = vpop.permute.xlu0 %1429  ;;  %v4518_v10 = vmul.f32 %v888_v51, %v4382_v0  ;;  %v1032_v51 = vld [vmem:[#allocation2 + $0x14] sm:$0xf] }
 0x123   : > { %v1495_v62 = vpop.permute.xlu1 %1494  ;;  %v946_v31 = vcombine.low %v4515_v9, %v4515_v9  ;;  %v1047_v7 = vmul.f32 %v1038_v40, %v1032_v51 }
 0x124   : > { %v1500_v22 = vsel %vm279_vm11, %v1493_v12, %v1495_v62  ;;  %v1501_v21 = vsel %vm279_vm11, %v1495_v62, %v1497_v53  ;;  %902 = vrot.lane.b32.xlu0 %v898_v43, %s3713_s21  ;;  %v994_v53 = vcombine.high %v4392_v2, %v4392_v2  ;;  %v973_v43 = vld [vmem:[#allocation2 + $0x10] sm:$0xf]  ;;  %v899_v17 = vcombine.high %v4518_v10, %v4518_v10 }
 0x125   : > { %1508 = vst [vmem:[#allocation4 + $0x30] sm:$0xf] %v1500_v22  ;;  %1509 = vst [vmem:[#allocation4 + $0x198] sm:$0xf] %v1501_v21  ;;  %857 = vrot.lane.b32.xlu1 %v851_v46, %s3712_s20  ;;  %v989_v2 = vmul.f32 %v979_v4, %v973_v43  ;;  %v1092_v21 = vmul.f32 %v1083_v33, %v1077_v20  ;;  %v4585_v20 = vmul.f32 %v4374_v6, %v4135_v18 }
 0x126   : > { %v1422_v44 = vpop.permute.xlu0 %1421 }
 0x127   : > { %v4520_v48 = vpop.permute.xlu1 %1326  ;;  %v1098_v4 = vcombine.low %v1092_v21, %v1092_v21 }
 0x128   : > { %950 = vrot.lane.b32.xlu0 %v939_v24, %s3715_s23 }
 0x129   : > { %904 = vrot.lane.b32.xlu1 %v4518_v10, %s3713_s21 }
 0x12a   : > { %v4527_v12 = vpop.permute.xlu0 %1457 }
 0x12b   : > { %v4531_v59 = vpop.permute.xlu1 %1390 }
 0x12c   : > { %1001 = vrot.lane.b32.xlu0 %v994_v53, %s3716_s24 }
 0x12d   : > { %952 = vrot.lane.b32.xlu1 %v946_v31, %s3715_s23 }
 0x12e   : > { %v4537_v46 = vpop.permute.xlu0 %1425 }
 0x12f   : > { %v1291_v62 = vpop.permute.xlu1 %1290 }
 0x130   : > { %1059 = vrot.lane.b32.xlu0 %v1052_v52, %s3717_s25 }
 0x131   : > { %1003 = vrot.lane.b32.xlu1 %v989_v2, %s3716_s24  ;;  %v945_v2 = vcombine.low %v939_v24, %v939_v24  ;;  %v4589_v24 = vmul.f32 %v4382_v0, %v4312_v29 }
 0x132   : > { %v4543_v22 = vpop.permute.xlu0 %1294 }
 0x133   : > { %v4549_v53 = vpop.permute.xlu1 %1259 }
 0x134   : > { %1105 = vrot.lane.b32.xlu0 %v4408_v30, %s3719_s28 }
 0x135   : > { %1061 = vrot.lane.b32.xlu1 %v1047_v7, %s3717_s25 }
 0x136   : > { %v1464_v5 = vpop.permute.xlu0 %1463 }
 0x137   : > { %v4554_v31 = vpop.permute.xlu1 %1461 }
 0x138   : > { %v1468_v43 = vsel %vm349_vm8, %v4554_v31, %v1464_v5  ;;  %806 = vrot.lane.b32.xlu0 %v4444_v38, %s3714_s22  ;;  %v533_v38 = vcombine.high %v4374_v6, %v4374_v6 }
 0x139   : > { %1476 = vst [vmem:[#allocation4 + $0x170] sm:$0xf0] %v1468_v43  ;;  %1107 = vrot.lane.b32.xlu1 %v1098_v4, %s3719_s28 }
 0x13a   : > { %v4561_v11 = vpop.permute.xlu0 %1148 }
 0x13b   : > { %v1424_v40 = vpop.permute.xlu1 %1423 }
 0x13c   : > { %v1431_v33 = vsel %vm419_vm7, %v1422_v44, %v1424_v40  ;;  %v1432_v30 = vsel %vm419_vm7, %v1424_v40, %v4537_v46  ;;  %900 = vrot.lane.b32.xlu0 %v4471_v61, %s3713_s21  ;;  %v4581_v61 = vmul.f32 %v4374_v6, %v4102_v58  ;;  %v4615_v40 = vmul.f32 %v4374_v6, %v4123_v63 }
 0x13d   : > { %1439 = vst [vmem:[#allocation4 + $0x128] sm:$0xf] %v1431_v33  ;;  %1440 = vst [vmem:[#allocation4 + $0x38] sm:$0xf] %v1432_v30  ;;  %853 = vrot.lane.b32.xlu1 %v850_v47, %s3712_s20  ;;  %v4621_v30 = vmul.f32 %v4224_v37, %v4382_v0 }
 0x13e   : > { %v4573_v52 = vpop.permute.xlu0 %1227  ;;  %v669_v18 = vcombine.high %v4581_v61, %v4581_v61 }
 0x13f   : > { %v1456_v60 = vpop.permute.xlu1 %1455 }
 0x140   : > { %v1465_v44 = vsel %vm349_vm8, %v1456_v60, %v4527_v12  ;;  %537 = vrot.lane.b32.xlu0 %v533_v38, %s3721_s30  ;;  %v4625_v38 = vmul.f32 %v4382_v0, %v4158_v8  ;;  %v805_v8 = vcombine.high %v4483_v13, %v4483_v13  ;;  %v763_v13 = vld [vmem:[#allocation2 + $0x10] sm:$0xf] }
 0x141   : > { %1473 = vst [vmem:[#allocation4 + $0x128] sm:$0xf0] %v1465_v44  ;;  %948 = vrot.lane.b32.xlu1 %v945_v2, %s3715_s23 }
 0x142   : > { %v1325_v51 = vpop.permute.xlu0 %1324 }
 0x143   : > { %v1334_v21 = vsel %vm514_vm6, %v1325_v51, %v4520_v48  ;;  %v1293_v7 = vpop.permute.xlu1 %1292 }
 0x144   : > { %1342 = vst [vmem:[#allocation4 + $0x10] sm:$0xf0] %v1334_v21  ;;  %v1300_v5 = vsel %vm444_vm4, %v1291_v62, %v1293_v7  ;;  %v1301_v58 = vsel %vm444_vm4, %v1293_v7, %v4543_v22  ;;  %606 = vrot.lane.b32.xlu0 %v4585_v20, %s3708_s14  ;;  %v602_v62 = vcombine.low %v4589_v24, %v4589_v24  ;;  %v830_v21 = vld [vmem:[#allocation2 + $0x10] sm:$0xf] }
 0x145   : > { %1308 = vst [vmem:[#allocation4 + $0x10] sm:$0xf] %v1300_v5  ;;  %1309 = vst [vmem:[#allocation4 + $0x100] sm:$0xf] %v1301_v58  ;;  %539 = vrot.lane.b32.xlu1 %v4382_v0, %s3721_s30 }
 0x146   : > { %v1389_v29 = vpop.permute.xlu0 %1388 }
 0x147   : > { %v1398_v4 = vsel %vm488_vm3, %v1389_v29, %v4531_v59  ;;  %v4604_v43 = vpop.permute.xlu1 %1146  ;;  %v800_v29 = vmul.f32 %v4020_v26, %v763_v13  ;;  %v1563_v26 = vld [vmem:[#allocation4 + $0x58] sm:$0xf] }
 0x148   : > { %1406 = vst [vmem:[#allocation4 + $0x70] sm:$0xf0] %v1398_v4  ;;  %v1155_v47 = vsel %vm885_vm14, %v4604_v43, %v4561_v11  ;;  %673 = vrot.lane.b32.xlu0 %v669_v18, %s3710_s18 }
 0x149   : > { %1163 = vst [vmem:[#allocation4 + $0x68] sm:$0xf] %v1155_v47  ;;  %608 = vrot.lane.b32.xlu1 %v602_v62, %s3708_s14  ;;  %v1559_v62 = vld [vmem:[#allocation4 + $0x128] sm:$0xff] }
 0x14a   : > { %v4617_v33 = vpop.permute.xlu0 %1328 }
 0x14b   : > { %v1335_v2 = vsel %vm514_vm6, %v4520_v48, %v4617_v33  ;;  %v4630_v60 = vpop.permute.xlu1 %1225  ;;  %v737_v48 = vcombine.low %v4621_v30, %v4621_v30 }
 0x14c   : > { %1343 = vst [vmem:[#allocation4 + $0x100] sm:$0xf0] %v1335_v2  ;;  %v1234_v63 = vsel %vm305_vm0, %v4630_v60, %v4573_v52  ;;  %741 = vrot.lane.b32.xlu0 %v4615_v40, %s3711_s19  ;;  %v878_v2 = vld [vmem:[#allocation2 + $0x10] sm:$0xf]  ;;  %v1551_v25 = vld [vmem:[#allocation4 + $0x10] sm:$0xff] }
 0x14d   : > { %1242 = vst [vmem:[#allocation4 + $0xa8] sm:$0xf] %v1234_v63  ;;  %675 = vrot.lane.b32.xlu1 %v4625_v38, %s3710_s18 }
 0x14e   : > { %v4641_v37 = vpop.permute.xlu0 %1392 }
 0x14f   : > { %v1399_v44 = vsel %vm488_vm3, %v4531_v59, %v4641_v37  ;;  %v1460_v51 = vpop.permute.xlu1 %1459  ;;  %v846_v59 = vmul.f32 %v836_v45, %v830_v21 }
 0x150   : > { %1407 = vst [vmem:[#allocation4 + $0x78] sm:$0xf0] %v1399_v44  ;;  %v1466_v7 = vsel %vm349_vm8, %v4527_v12, %v1460_v51  ;;  %v1467_v5 = vsel %vm349_vm8, %v1460_v51, %v4554_v31  ;;  %812 = vrot.lane.b32.xlu0 %v805_v8, %s3714_s22  ;;  %v925_v51 = vld [vmem:[#allocation2 + $0x10] sm:$0xf] }
 0x151   : > { %1474 = vst [vmem:[#allocation4 + $0x38] sm:$0xf0] %v1466_v7  ;;  %1475 = vst [vmem:[#allocation4 + $0x88] sm:$0xf0] %v1467_v5  ;;  %743 = vrot.lane.b32.xlu1 %v737_v48, %s3711_s19  ;;  %v852_v47 = vcombine.low %v846_v59, %v846_v59  ;;  %v1564_v48 = vld [vmem:[#allocation4 + $0xf0] sm:$0xf]  ;;  %v894_v5 = vmul.f32 %v884_v28, %v878_v2 }
 0x152   : > { %v4654_v58 = vpop.permute.xlu0 %1261 }
 0x153   : > { %v1268_v18 = vsel %vm375_vm5, %v4549_v53, %v4654_v58  ;;  %v1428_v12 = vpop.permute.xlu1 %1427  ;;  %v1552_v7 = vld [vmem:[#allocation4 + $0x100] sm:$0xff] }
 0x154   : > { %1276 = vst [vmem:[#allocation4 + $0xa8] sm:$0xf0] %v1268_v18  ;;  %v1433_v31 = vsel %vm419_vm7, %v4537_v46, %v1428_v12  ;;  %v1434_v4 = vsel %vm419_vm7, %v1428_v12, %v4499_v27  ;;  %859 = vrot.lane.b32.xlu0 %v4476_v14, %s3712_s20  ;;  %v1591_v46 = vpack.c.bf16 %v1563_v26, %v1559_v62  ;;  %v1566_v18 = vld [vmem:[#allocation4 + $0x198] sm:$0xf]  ;;  %v1555_v12 = vld [vmem:[#allocation4 + $0x70] sm:$0xff] }
 0x155   : > { %1441 = vst [vmem:[#allocation4 + $0x88] sm:$0xf] %v1433_v31  ;;  %1442 = vst [vmem:[#allocation4 + $0x170] sm:$0xf] %v1434_v4  ;;  %814 = vrot.lane.b32.xlu1 %v800_v29, %s3714_s22  ;;  %v1565_v29 = vld [vmem:[#allocation4 + $0x30] sm:$0xf]  ;;  %v941_v31 = vmul.f32 %v931_v39, %v925_v51 }
 0x156   : > { %v1299_v45 = vpop.permute.xlu0 %1298  ;;  %v1601_v13 = vsel %vm1599_vm1, %v1591_v46, 0 }
 0x157   : > { %v1297_v63 = vpop.permute.xlu1 %1296  ;;  %v1556_v44 = vld [vmem:[#allocation4 + $0x78] sm:$0xff]  ;;  %v947_v46 = vcombine.low %v941_v31, %v941_v31 }
 0x158   : > { %v1302_v27 = vsel %vm444_vm4, %v4543_v22, %v1297_v63  ;;  %v1303_v8 = vsel %vm444_vm4, %v1297_v63, %v1299_v45  ;;  %906 = vrot.lane.b32.xlu0 %v899_v17, %s3713_s21  ;;  %v1560_v14 = vld [vmem:[#allocation4 + $0x38] sm:$0xff]  ;;  %v1588_v59 = vpack.c.bf16 %v1556_v44, %v1552_v7 }
 0x159   : > { %1310 = vst [vmem:[#allocation4 + $0x160] sm:$0xf] %v1302_v27  ;;  %1311 = vst [vmem:[#allocation4 + $0x20] sm:$0xf] %v1303_v8  ;;  %861 = vrot.lane.b32.xlu1 %v852_v47, %s3712_s20  ;;  %v1592_v10 = vpack.c.bf16 %v1564_v48, %v1560_v14  ;;  %v1587_v47 = vpack.c.bf16 %v1555_v12, %v1551_v25  ;;  %v4698_v48 = vmul.f32 %v4374_v6, %v4296_v49 }
 0x15a   : > { %v1333_v21 = vpop.permute.xlu0 %1332  ;;  %v4769_v25 = vmul.f32 %v4382_v0, %v4285_v32 }
 0x15b   : > { %3336 = vmatprep.subr.msk.bf16.mxu0 %vm1599_vm1, %v1592_v10  ;;  %v1331_v22 = vpop.permute.xlu1 %1330  ;;  %v1548_v17 = vld [vmem:[#allocation4 + $0xa8] sm:$0xff]  ;;  %v293_v49 = vcombine.high %v4698_v48, %v4698_v48 }
 0x15c   : > { %v1336_v4 = vsel %vm514_vm6, %v4617_v33, %v1331_v22  ;;  %v1337_v62 = vsel %vm514_vm6, %v1331_v22, %v1333_v21  ;;  %1615 = vmatpush1.bf16.msra.mxu0 %v1601_v13  ;;  %954 = vrot.lane.b32.xlu0 %v4515_v9, %s3715_s23  ;;  %v1562_v36 = vld [vmem:[#allocation4 + $0x170] sm:$0xff]  ;;  %v1561_v28 = vld [vmem:[#allocation4 + $0x88] sm:$0xff]  ;;  %v4720_v22 = vmul.f32 %v4374_v6, %v4163_v3 }
 0x15d   : > { %1344 = vst [vmem:[#allocation4 + $0x160] sm:$0xf0] %v1336_v4  ;;  %1345 = vst [vmem:[#allocation4 + $0x20] sm:$0xf0] %v1337_v62  ;;  %1616 = vmatprep.subr.bf16.mxu0 %v1588_v59  ;;  %908 = vrot.lane.b32.xlu1 %v894_v5, %s3713_s21  ;;  %v1594_v45 = vpack.c.bf16 %v1566_v18, %v1562_v36  ;;  %v1593_v39 = vpack.c.bf16 %v1565_v29, %v1561_v28  ;;  %v1544_v33 = vld [vmem:[#allocation4 + $0x68] sm:$0xff] }
 0x15e   : > { %v1363_v26 = vpop.permute.xlu0 %1362  ;;  %v1584_v9 = vpack.c.bf16 %v1548_v17, %v1544_v33  ;;  %v4734_v18 = vmul.f32 %v4382_v0, %v4326_v1  ;;  %v432_v1 = vcombine.high %v4720_v22, %v4720_v22  ;;  %v4759_v28 = vmul.f32 %v4374_v6, %v4110_v57 }
 0x15f   : > { %3338 = vmatprep.subr.msk.bf16.mxu1 %vm1599_vm1, %v1594_v45  ;;  %v1361_v2 = vpop.permute.xlu1 %1360  ;;  %v1607_v63 = vsel %vm1599_vm1, %v1593_v39, 0  ;;  %v4765_v45 = vmul.f32 %v4382_v0, %v4187_v42  ;;  %v534_v57 = vcombine.high %v4382_v0, %v4382_v0  ;;  %vm6133_vm1 = vcmask 64512  }
 0x160   : > { %v1366_v27 = vsel %vm545_vm10, %v4250_v54, %v1361_v2  ;;  %v1367_v8 = vsel %vm545_vm10, %v1361_v2, %v1363_v26  ;;  %1617 = vmatpush1.bf16.msra.mxu0 %v1587_v47  ;;  %1656 = vmatpush1.bf16.msra.mxu1 %v1607_v63  ;;  %v601_v54 = vcombine.low %v4585_v20, %v4585_v20  ;;  %v560_v2 = vld [vmem:[#allocation2 + $0x10] sm:$0xf] }
 0x161   : > { %1374 = vst [vmem:[#allocation4 + $0xa0] sm:$0xf] %v1366_v27  ;;  %1375 = vst [vmem:[#allocation4 + $0x158] sm:$0xf] %v1367_v8  ;;  %535 = vrot.lane.b32.xlu0 %v4374_v6, %s3721_s30  ;;  %1618 = vmatprep.subr.bf16.mxu0 %v1584_v9  ;;  %v363_v62 = vcombine.low %v4734_v18, %v4734_v18 }
 0x162   : > { %956 = vrot.lane.b32.xlu1 %v947_v46, %s3715_s23  ;;  %v1397_v14 = vpop.permute.xlu0 %1396  ;;  %v529_v46 = vld [vmem:[#allocation2 + $0x10] sm:$0xf] }
 0x163   : > { %v1395_v44 = vpop.permute.xlu1 %1394 }
 0x164   : > { %v1400_v51 = vsel %vm488_vm3, %v4641_v37, %v1395_v44  ;;  %v1401_v10 = vsel %vm488_vm3, %v1395_v44, %v1397_v14  ;;  %v736_v37 = vcombine.low %v4615_v40, %v4615_v40  ;;  %v1554_v59 = vld [vmem:[#allocation4 + $0x20] sm:$0xff]  ;;  %v597_v14 = vmul.f32 %v4271_v56, %v560_v2 }
 0x165   : > { %1408 = vst [vmem:[#allocation4 + $0xa0] sm:$0xf0] %v1400_v51  ;;  %1409 = vst [vmem:[#allocation4 + $0x158] sm:$0xf0] %v1401_v10  ;;  %671 = vrot.lane.b32.xlu0 %v4581_v61, %s3710_s18  ;;  %v670_v51 = vcombine.high %v4625_v38, %v4625_v38 }
 0x166   : > { %604 = vrot.lane.b32.xlu1 %v601_v54, %s3708_s14  ;;  %v1191_v21 = vpop.permute.xlu0 %1190 }
 0x167   : > { %v1200_v7 = vsel %vm6071_vm15, %v1191_v21, %v4458_v16  ;;  %v1145_v20 = vpop.permute.xlu1 %1144  ;;  %v4724_v16 = vmul.f32 %v4374_v6, %v4195_v50  ;;  %v1553_v50 = vld [vmem:[#allocation4 + $0x160] sm:$0xff]  ;;  %v603_v21 = vcombine.low %v597_v14, %v597_v14  ;;  %v459_v14 = vld [vmem:[#allocation2 + $0x10] sm:$0xf] }
 0x168   : > { %1208 = vst [vmem:[#allocation4] sm:$0xf0] %v1200_v7  ;;  %v1154_v5 = vsel %vm885_vm14, %v1145_v20, %v4604_v43  ;;  %v4730_v43 = vmul.f32 %v4382_v0, %v4244_v55  ;;  %v502_v0 = vcombine.low %v4769_v25, %v4769_v25  ;;  %v628_v7 = vld [vmem:[#allocation2 + $0x10] sm:$0xf] }
 0x169   : > { %1162 = vst [vmem:[#allocation4] sm:$0xf] %v1154_v5  ;;  %297 = vrot.lane.b32.xlu0 %v293_v49, %s3704_s27  ;;  %v695_v20 = vld [vmem:[#allocation2 + $0x10] sm:$0xf] }
 0x16a   : > { %739 = vrot.lane.b32.xlu1 %v736_v37, %s3711_s19  ;;  %v1258_v61 = vpop.permute.xlu0 %1257 }
 0x16b   : > { %v1267_v40 = vsel %vm375_vm5, %v1258_v61, %v4549_v53  ;;  %v1224_v13 = vpop.permute.xlu1 %1223  ;;  %v665_v61 = vmul.f32 %v4086_v23, %v628_v7 }
 0x16c   : > { %1275 = vst [vmem:[#allocation4 + $0x40] sm:$0xf0] %v1267_v40  ;;  %v1233_v3 = vsel %vm305_vm0, %v1224_v13, %v4630_v60  ;;  %v1558_v12 = vld [vmem:[#allocation4 + $0x158] sm:$0xff]  ;;  %v1557_v29 = vld [vmem:[#allocation4 + $0xa0] sm:$0xff] }
 0x16d   : > { %1241 = vst [vmem:[#allocation4 + $0x40] sm:$0xf] %v1233_v3  ;;  %367 = vrot.lane.b32.xlu0 %v4724_v16, %s3706_s8  ;;  %v1590_v53 = vpack.c.bf16 %v1558_v12, %v1554_v59  ;;  %v1589_v31 = vpack.c.bf16 %v1557_v29, %v1553_v50  ;;  %v6132_v40 = vld [vmem:[#allocation34_spill] sm:$0xff] }
 0x16e   : > { %299 = vrot.lane.b32.xlu1 %v4730_v43, %s3704_s27  ;;  %v4742_v55 = vpop.permute.xlu0 %999  ;;  %v732_v13 = vmul.f32 %v6132_v40, %v695_v20  ;;  %v6136_v20 = vld [vmem:[#allocation16_spill] sm:$0xff] }
 0x16f   : > { %1657 = vmatprep.subr.bf16.mxu1 %v1590_v53  ;;  %v4746_v4 = vpop.permute.xlu1 %997  ;;  %v362_v53 = vcombine.low %v4724_v16, %v4724_v16  ;;  %v501_v16 = vcombine.low %v4759_v28, %v4759_v28 }
 0x170   : > { %v1007_v60 = vsel %vm1005_vm13, %v4746_v4, %v4742_v55  ;;  %1658 = vmatpush1.bf16.msra.mxu1 %v1589_v31  ;;  %v1543_v26 = vld [vmem:[#allocation4] sm:$0xff]  ;;  %v738_v50 = vcombine.low %v732_v13, %v732_v13  ;;  %v294_v31 = vcombine.high %v4730_v43, %v4730_v43 }
 0x171   : > { %1015 = vst [vmem:[#allocation4 + $0xf8] sm:$0xf] %v1007_v60  ;;  %436 = vrot.lane.b32.xlu0 %v432_v1, %s3707_s9 }
 0x172   : > { %369 = vrot.lane.b32.xlu1 %v363_v62, %s3706_s8  ;;  %v4755_v36 = vpop.permute.xlu0 %1057 }
 0x173   : > { %v4761_v17 = vpop.permute.xlu1 %1055 }
 0x174   : > { %v1064_v39 = vsel %vm980_vm12, %v4761_v17, %v4755_v36  ;;  %v1547_v47 = vld [vmem:[#allocation4 + $0x40] sm:$0xff] }
 0x175   : > { %1072 = vst [vmem:[#allocation4 + $0xc0] sm:$0xf] %v1064_v39  ;;  %506 = vrot.lane.b32.xlu0 %v4759_v28, %s3709_s17  ;;  %v1583_v6 = vpack.c.bf16 %v1547_v47, %v1543_v26  ;;  %v250_v47 = vld [vmem:[#allocation2 + $0x10] sm:$0xf] }
 0x176   : > { %438 = vrot.lane.b32.xlu1 %v4765_v45, %s3707_s9  ;;  %v4780_v42 = vpop.permute.xlu0 %1103 }
 0x177   : > { %1619 = vmatpush1.bf16.msra.mxu0 %v1583_v6  ;;  %v4782_v32 = vpop.permute.xlu1 %1101 }
 0x178   : > { %v1110_v33 = vsel %vm932_vm9, %v4782_v32, %v4780_v42  ;;  %v1536_v49 = vld [vmem:[#allocation4 + $0xf8] sm:$0xff] }
 0x179   : > { %1118 = vst [vmem:[#allocation4 + $0xc0] sm:$0xf0] %v1110_v33  ;;  %541 = vrot.lane.b32.xlu0 %v534_v57, %s3721_s30  ;;  %v320_v57 = vld [vmem:[#allocation2 + $0x10] sm:$0xf] }
 0x17a   : > { %508 = vrot.lane.b32.xlu1 %v502_v0, %s3709_s17  ;;  %v1153_v63 = vpop.permute.xlu0 %1152  ;;  %v358_v33 = vmul.f32 %v4292_v15, %v320_v57 }
 0x17b   : > { %v1151_v9 = vpop.permute.xlu1 %1150 }
 0x17c   : > { %v1156_v27 = vsel %vm885_vm14, %v4561_v11, %v1151_v9  ;;  %v1157_v8 = vsel %vm885_vm14, %v1151_v9, %v1153_v63  ;;  %v433_v63 = vcombine.high %v4765_v45, %v4765_v45  ;;  %v3722_v9 = vmov 0  }
 0x17d   : > { %1164 = vst [vmem:[#allocation4 + $0x148] sm:$0xf] %v1156_v27  ;;  %1165 = vst [vmem:[#allocation4 + $0x8] sm:$0xf] %v1157_v8  ;;  %610 = vrot.lane.b32.xlu0 %v4589_v24, %s3708_s14  ;;  %1644 = vmatprep.mubr.bf16.mxu0 %v3722_v9  ;;  %v364_v15 = vcombine.low %v358_v33, %v358_v33  ;;  %v390_v8 = vld [vmem:[#allocation2 + $0x10] sm:$0xf] }
 0x17e   : > { %543 = vrot.lane.b32.xlu1 %v529_v46, %s3721_s30  ;;  %v1199_v44 = vpop.permute.xlu0 %1198  ;;  %1685 = vmatprep.mubr.bf16.mxu1 %v3722_v9  ;;  %v6149_v9 = vld [vmem:[#allocation28_spill] sm:$0xff] }
 0x17f   : > { %v1197_v54 = vpop.permute.xlu1 %1196 }
 0x180   : > { %v1202_v10 = vsel %vm6071_vm15, %v4473_v41, %v1197_v54  ;;  %v1203_v11 = vsel %vm6071_vm15, %v1197_v54, %v1199_v44  ;;  %v1540_v56 = vld [vmem:[#allocation4 + $0xc0] sm:$0xff]  ;;  %vm6134_vm15 = vcmask 56320  }
 0x181   : > { %1210 = vst [vmem:[#allocation4 + $0x148] sm:$0xf0] %v1202_v10  ;;  %1211 = vst [vmem:[#allocation4 + $0x8] sm:$0xf0] %v1203_v11  ;;  %677 = vrot.lane.b32.xlu0 %v670_v51, %s3710_s18  ;;  %v1580_v24 = vpack.c.bf16 %v1540_v56, %v1536_v49  ;;  %v428_v51 = vmul.f32 %v4138_v19, %v390_v8  ;;  %v497_v10 = vmul.f32 %v4253_v34, %v459_v14  ;;  %v6135_v19 = vld [vmem:[#allocation22_spill] sm:$0xff] }
 0x182   : > { %612 = vrot.lane.b32.xlu1 %v603_v21, %s3708_s14  ;;  %v1232_v37 = vpop.permute.xlu0 %1231  ;;  %v6150_v8 = vld [vmem:[#allocation26_spill] sm:$0xff] }
 0x183   : > { %1620 = vmatprep.subr.bf16.mxu0 %v1580_v24  ;;  %v1230_v38 = vpop.permute.xlu1 %1229  ;;  %v503_v24 = vcombine.low %v497_v10, %v497_v10  ;;  %v6152_v10 = vld [vmem:[#allocation20_spill] sm:$0xff] }
 0x184   : > { %v1235_v41 = vsel %vm305_vm0, %v4573_v52, %v1230_v38  ;;  %v1236_v5 = vsel %vm305_vm0, %v1230_v38, %v1232_v37  ;;  %v6137_v38 = vld [vmem:[#allocation23_spill] sm:$0xff] }
 0x185   : > { %1243 = vst [vmem:[#allocation4 + $0xd0] sm:$0xf] %v1235_v41  ;;  %1244 = vst [vmem:[#allocation4 + $0x1a0] sm:$0xf] %v1236_v5  ;;  %745 = vrot.lane.b32.xlu0 %v4621_v30, %s3711_s19 }
 0x186   : > { %679 = vrot.lane.b32.xlu1 %v665_v61, %s3710_s18  ;;  %v1266_v59 = vpop.permute.xlu0 %1265 }
 0x187   : > { %v1264_v3 = vpop.permute.xlu1 %1263 }
 0x188   : > { %v1269_v12 = vsel %vm375_vm5, %v4654_v58, %v1264_v3  ;;  %v1270_v52 = vsel %vm375_vm5, %v1264_v3, %v1266_v59  ;;  %v1546_v60 = vld [vmem:[#allocation4 + $0x8] sm:$0xff] }
 0x189   : > { %1277 = vst [vmem:[#allocation4 + $0xd0] sm:$0xf0] %v1269_v12  ;;  %1278 = vst [vmem:[#allocation4 + $0x1a0] sm:$0xf0] %v1270_v52  ;;  %295 = vrot.lane.b32.xlu0 %v4698_v48, %s3704_s27  ;;  %v6138_v59 = vld [vmem:[#allocation11_spill] sm:$0xff]  ;;  %v6139_v12 = vld [vmem:[#allocation10_spill] sm:$0xff] }
 0x18a   : > { %747 = vrot.lane.b32.xlu1 %v738_v50, %s3711_s19  ;;  %v1054_v23 = vpop.permute.xlu0 %1053 }
 0x18b   : > { %v1063_v30 = vsel %vm980_vm12, %v1054_v23, %v4761_v17  ;;  %v996_v29 = vpop.permute.xlu1 %995  ;;  %v1545_v17 = vld [vmem:[#allocation4 + $0x148] sm:$0xff]  ;;  %v6140_v23 = vld [vmem:[#allocation18_spill] sm:$0xff] }
 0x18c   : > { %1071 = vst [vmem:[#allocation4 + $0x90] sm:$0xf] %v1063_v30  ;;  %v1006_v58 = vsel %vm1005_vm13, %v996_v29, %v4746_v4  ;;  %v6141_v29 = vld [vmem:[#allocation14_spill] sm:$0xff] }
 0x18d   : > { %1014 = vst [vmem:[#allocation4 + $0xe8] sm:$0xf] %v1006_v58  ;;  %434 = vrot.lane.b32.xlu0 %v4720_v22, %s3707_s9 }
 0x18e   : > { %365 = vrot.lane.b32.xlu1 %v362_v53, %s3706_s8  ;;  %v4828_v48 = vpop.permute.xlu0 %808 }
 0x18f   : > { %v1100_v1 = vpop.permute.xlu1 %1099 }
 0x190   : > { %v1109_v62 = vsel %vm932_vm9, %v1100_v1, %v4782_v32  ;;  %v1550_v4 = vld [vmem:[#allocation4 + $0x1a0] sm:$0xff]  ;;  %v1549_v39 = vld [vmem:[#allocation4 + $0xd0] sm:$0xff]  ;;  %v289_v32 = vmul.f32 %v4214_v35, %v250_v47  ;;  %v6146_v47 = vld [vmem:[#allocation15_spill] sm:$0xff] }
 0x191   : > { %1117 = vst [vmem:[#allocation4 + $0x90] sm:$0xf0] %v1109_v62  ;;  %301 = vrot.lane.b32.xlu0 %v294_v31, %s3704_s27  ;;  %v1586_v22 = vpack.c.bf16 %v1550_v4, %v1546_v60  ;;  %v1585_v26 = vpack.c.bf16 %v1549_v39, %v1545_v17  ;;  %v6143_v31 = vld [vmem:[#allocation12_spill] sm:$0xff]  ;;  %v6144_v60 = vld [vmem:[#allocation19_spill] sm:$0xff] }
 0x192   : > { %504 = vrot.lane.b32.xlu1 %v501_v16, %s3709_s17  ;;  %v4838_v43 = vpop.permute.xlu0 %855 }
 0x193   : > { %1659 = vmatprep.subr.bf16.mxu1 %v1586_v22  ;;  %v4840_v6 = vpop.permute.xlu1 %810 }
 0x194   : > { %v817_v28 = vsel %vm279_vm11, %v4828_v48, %v4840_v6  ;;  %1660 = vmatpush1.bf16.msra.mxu1 %v1585_v26  ;;  %v1535_v46 = vld [vmem:[#allocation4 + $0xe8] sm:$0xff] }
 0x195   : > { %825 = vst [vmem:[#allocation4 + $0x188] sm:$0xf] %v817_v28  ;;  %371 = vrot.lane.b32.xlu0 %v4734_v18, %s3706_s8  ;;  %v6147_v28 = vld [vmem:[#allocation17_spill] sm:$0xff] }
 0x196   : > { %303 = vrot.lane.b32.xlu1 %v289_v32, %s3704_s27  ;;  %v4850_v0 = vpop.permute.xlu0 %902 }
 0x197   : > { %v4852_v2 = vpop.permute.xlu1 %857 }
 0x198   : > { %v865_v35 = vsel %vm6072_vm2, %v4838_v43, %v4852_v2  ;;  %v1539_v27 = vld [vmem:[#allocation4 + $0x90] sm:$0xff] }
 0x199   : > { %873 = vst [vmem:[#allocation4 + $0x188] sm:$0xf0] %v865_v35  ;;  %440 = vrot.lane.b32.xlu0 %v433_v63, %s3707_s9  ;;  %v1579_v18 = vpack.c.bf16 %v1539_v27, %v1535_v46 }
 0x19a   : > { %373 = vrot.lane.b32.xlu1 %v364_v15, %s3706_s8  ;;  %v951_v44 = vpop.permute.xlu0 %950 }
 0x19b   : > { %1621 = vmatpush1.bf16.msra.mxu0 %v1579_v18  ;;  %v4861_v45 = vpop.permute.xlu1 %904 }
 0x19c   : > { %v912_v54 = vsel %vm6133_vm1, %v4850_v0, %v4861_v45 }
 0x19d   : > { %920 = vst [vmem:[#allocation4 + $0x1a8] sm:$0xf] %v912_v54  ;;  %510 = vrot.lane.b32.xlu0 %v4769_v25, %s3709_s17 }
 0x19e   : > { %442 = vrot.lane.b32.xlu1 %v428_v51, %s3707_s9  ;;  %v1002_v11 = vpop.permute.xlu0 %1001 }
 0x19f   : > { %v1008_v21 = vsel %vm1005_vm13, %v4742_v55, %v1002_v11  ;;  %v4873_v49 = vpop.permute.xlu1 %952 }
 0x1a0   : > { %1016 = vst [vmem:[#allocation4 + $0x190] sm:$0xf] %v1008_v21  ;;  %v960_v56 = vsel %vm6134_vm15, %v951_v44, %v4873_v49  ;;  %vm6142_vm15 = vmmov %vm6133_vm1  ;;  %vm6145_vm1 = vcmask 56320   ;;  %v6153_v21 = vld [vmem:[#allocation27_spill] sm:$0xff] }
 0x1a1   : > { %968 = vst [vmem:[#allocation4 + $0x1a8] sm:$0xf0] %v960_v56  ;;  %2414 = vrot.lane.b32.xlu0 %v6135_v19, %s3716_s24 }
 0x1a2   : > { %512 = vrot.lane.b32.xlu1 %v503_v24, %s3709_s17  ;;  %v1060_v34 = vpop.permute.xlu0 %1059 }
 0x1a3   : > { %v1065_v25 = vsel %vm980_vm12, %v4755_v36, %v1060_v34  ;;  %v1004_v7 = vpop.permute.xlu1 %1003  ;;  %v1528_v36 = vld [vmem:[#allocation4 + $0x188] sm:$0xff] }
 0x1a4   : > { %1073 = vst [vmem:[#allocation4 + $0x178] sm:$0xf] %v1065_v25  ;;  %v1009_v55 = vsel %vm1005_vm13, %v1002_v11, %v1004_v7  ;;  %v4959_v25 = vld [vmem:[%s6004_s1 + $0x20] ss:$0 sm:$0xff] }
 0x1a5   : > { %1017 = vst [vmem:[#allocation4 + $0xb8] sm:$0xf] %v1009_v55  ;;  %2418 = vrot.lane.b32.xlu0 %v6136_v20, %s3716_s24  ;;  %v6154_v55 = vld [vmem:[#allocation13_spill] sm:$0xff] }
 0x1a6   : > { %v1106_v37 = vpop.permute.xlu0 %1105  ;;  %2416 = vrot.lane.b32.xlu1 %v6137_v38, %s3716_s24 }
 0x1a7   : > { %v1111_v41 = vsel %vm932_vm9, %v4780_v42, %v1106_v37  ;;  %v1062_v5 = vpop.permute.xlu1 %1061  ;;  %v1537_v26 = vld [vmem:[#allocation4 + $0x190] sm:$0xff] }
 0x1a8   : > { %1119 = vst [vmem:[#allocation4 + $0x178] sm:$0xf0] %v1111_v41  ;;  %v1066_v61 = vsel %vm980_vm12, %v1060_v34, %v1062_v5  ;;  %v1532_v40 = vld [vmem:[#allocation4 + $0x1a8] sm:$0xff]  ;;  %v4971_v5 = vld [vmem:[%s6004_s1 + $0x30] ss:$0 sm:$0xff] }
 0x1a9   : > { %1074 = vst [vmem:[#allocation4 + $0xc8] sm:$0xf] %v1066_v61  ;;  %v1576_v13 = vpack.c.bf16 %v1532_v40, %v1528_v36  ;;  %2469 = vrot.lane.b32.xlu0 %v6138_v59, %s3715_s23  ;;  %v4978_v36 = vld [vmem:[%s6004_s1 + $0x28] ss:$0 sm:$0xff] }
 0x1aa   : > { %v807_v3 = vpop.permute.xlu0 %806  ;;  %2467 = vrot.lane.b32.xlu1 %v6139_v12, %s3715_s23 }
 0x1ab   : > { %v816_v52 = vsel %vm279_vm11, %v807_v3, %v4828_v48  ;;  %v1108_v50 = vpop.permute.xlu1 %1107  ;;  %1622 = vmatprep.subr.bf16.mxu0 %v1576_v13 }
 0x1ac   : > { %824 = vst [vmem:[#allocation4 + $0xe0] sm:$0xf] %v816_v52  ;;  %v1112_v42 = vsel %vm932_vm9, %v1106_v37, %v1108_v50  ;;  %v1538_v17 = vld [vmem:[#allocation4 + $0xb8] sm:$0xff] }
 0x1ad   : > { %1120 = vst [vmem:[#allocation4 + $0xc8] sm:$0xf0] %v1112_v42  ;;  %2353 = vrot.lane.b32.xlu0 %v6140_v23, %s3717_s25  ;;  %v6155_v42 = vld [vmem:[#allocation31_spill] sm:$0xff] }
 0x1ae   : > { %v901_v30 = vpop.permute.xlu0 %900  ;;  %2471 = vrot.lane.b32.xlu1 %v6141_v29, %s3715_s23 }
 0x1af   : > { %v911_v53 = vsel %vm6142_vm15, %v901_v30, %v4850_v0  ;;  %v854_v58 = vpop.permute.xlu1 %853  ;;  %v1541_v62 = vld [vmem:[#allocation4 + $0x178] sm:$0xff] }
 0x1b0   : > { %919 = vst [vmem:[#allocation4 + $0x80] sm:$0xf] %v911_v53  ;;  %v864_v48 = vsel %vm6072_vm2, %v854_v58, %v4838_v43  ;;  %v1581_v43 = vpack.c.bf16 %v1541_v62, %v1537_v26  ;;  %v6148_v0 = vld [vmem:[#allocation29_spill] sm:$0xff]  ;;  %v6156_v53 = vld [vmem:[#allocation30_spill] sm:$0xff]  ;;  %v6158_v62 = vld [vmem:[#allocation32_spill] sm:$0xff] }
 0x1b1   : > { %872 = vst [vmem:[#allocation4 + $0xe0] sm:$0xf0] %v864_v48  ;;  %2357 = vrot.lane.b32.xlu0 %v6143_v31, %s3717_s25 }
 0x1b2   : > { %v4907_v1 = vpop.permute.xlu0 %537  ;;  %2355 = vrot.lane.b32.xlu1 %v6144_v60, %s3717_s25 }
 0x1b3   : > { %v949_v16 = vpop.permute.xlu1 %948 }
 0x1b4   : > { %v959_v4 = vsel %vm6145_vm1, %v949_v16, %v951_v44  ;;  %v1542_v39 = vld [vmem:[#allocation4 + $0xc8] sm:$0xff]  ;;  %v6151_v44 = vld [vmem:[#allocation24_spill] sm:$0xff]  ;;  %v6157_v16 = vld [vmem:[#allocation25_spill] sm:$0xff] }
 0x1b5   : > { %967 = vst [vmem:[#allocation4 + $0x80] sm:$0xf0] %v959_v4  ;;  %v1582_v22 = vpack.c.bf16 %v1542_v39, %v1538_v17  ;;  %2473 = vrot.lane.b32.xlu0 %v6146_v47, %s3715_s23 }
 0x1b6   : > { %v4914_v57 = vpop.permute.xlu0 %606  ;;  %2420 = vrot.lane.b32.xlu1 %v6147_v28, %s3716_s24 }
 0x1b7   : > { %1661 = vmatprep.subr.bf16.mxu1 %v1582_v22  ;;  %v4918_v32 = vpop.permute.xlu1 %539  ;;  %v6160_v22 = vld [vmem:[#allocation21_spill] sm:$0xff] }
 0x1b8   : > { %v547_v33 = vsel %vm545_vm10, %v4907_v1, %v4918_v32  ;;  %1662 = vmatpush1.bf16.msra.mxu1 %v1581_v43  ;;  %v1527_v46 = vld [vmem:[#allocation4 + $0xe0] sm:$0xff] }
 0x1b9   : > { %555 = vst [vmem:[#allocation4 + $0x110] sm:$0xf] %v547_v33  ;;  %2249 = vrot.lane.b32.xlu0 %v6148_v0, %s3720_s29 }
 0x1ba   : > { %v4925_v63 = vpop.permute.xlu0 %673  ;;  %2247 = vrot.lane.b32.xlu1 %v6149_v9, %s3720_s29 }
 0x1bb   : > { %v4929_v35 = vpop.permute.xlu1 %608 }
 0x1bc   : > { %v615_v15 = vsel %vm488_vm3, %v4914_v57, %v4929_v35  ;;  %v1531_v27 = vld [vmem:[#allocation4 + $0x80] sm:$0xff] }
 0x1bd   : > { %623 = vst [vmem:[#allocation4 + $0x110] sm:$0xf0] %v615_v15  ;;  %v1575_v18 = vpack.c.bf16 %v1531_v27, %v1527_v46  ;;  %2300 = vrot.lane.b32.xlu0 %v6150_v8, %s3719_s28 }
 0x1be   : > { %v4936_v14 = vpop.permute.xlu0 %741  ;;  %2251 = vrot.lane.b32.xlu1 %v6151_v44, %s3720_s29 }
 0x1bf   : > { %1623 = vmatpush1.bf16.msra.mxu0 %v1575_v18  ;;  %v4940_v54 = vpop.permute.xlu1 %675 }
 0x1c0   : > { %v682_v51 = vsel %vm419_vm7, %v4925_v63, %v4940_v54 }
 0x1c1   : > { %690 = vst [vmem:[#allocation4 + $0x150] sm:$0xf] %v682_v51  ;;  %2304 = vrot.lane.b32.xlu0 %v6152_v10, %s3719_s28  ;;  %v6161_v51 = vld [vmem:[#allocation7_spill] sm:$0xff] }
 0x1c2   : > { %v813_v11 = vpop.permute.xlu0 %812  ;;  %2302 = vrot.lane.b32.xlu1 %v6153_v21, %s3719_s28 }
 0x1c3   : > { %v818_v56 = vsel %vm279_vm11, %v4840_v6, %v813_v11  ;;  %v4951_v24 = vpop.permute.xlu1 %743 }
 0x1c4   : > { %826 = vst [vmem:[#allocation4 + $0x138] sm:$0xf] %v818_v56  ;;  %v750_v34 = vsel %vm349_vm8, %v4936_v14, %v4951_v24  ;;  %v1520_v3 = vld [vmem:[#allocation4 + $0x110] sm:$0xff] }
 0x1c5   : > { %758 = vst [vmem:[#allocation4 + $0x150] sm:$0xf0] %v750_v34  ;;  %2141 = vrot.lane.b32.xlu0 %v4959_v25, %s3704_s27 }
 0x1c6   : > { %v860_v7 = vpop.permute.xlu0 %859  ;;  %2359 = vrot.lane.b32.xlu1 %v6154_v55, %s3717_s25 }
 0x1c7   : > { %v866_v6 = vsel %vm6072_vm2, %v4852_v2, %v860_v7  ;;  %v815_v37 = vpop.permute.xlu1 %814 }
 0x1c8   : > { %874 = vst [vmem:[#allocation4 + $0x138] sm:$0xf0] %v866_v6  ;;  %v819_v41 = vsel %vm279_vm11, %v813_v11, %v815_v37  ;;  %v6163_v6 = vld [vmem:[#allocation8_spill] sm:$0xff] }
 0x1c9   : > { %827 = vst [vmem:[#allocation4 + $0x140] sm:$0xf] %v819_v41  ;;  %2145 = vrot.lane.b32.xlu0 %v4971_v5, %s3704_s27 }
 0x1ca   : > { %v907_v61 = vpop.permute.xlu0 %906  ;;  %2143 = vrot.lane.b32.xlu1 %v4978_v36, %s3704_s27 }
 0x1cb   : > { %v913_v2 = vsel %vm6142_vm15, %v4861_v45, %v907_v61  ;;  %v862_v40 = vpop.permute.xlu1 %861 }
 0x1cc   : > { %921 = vst [vmem:[#allocation4 + $0x1b8] sm:$0xf] %v913_v2  ;;  %v867_v13 = vsel %vm6072_vm2, %v860_v7, %v862_v40  ;;  %v1524_v52 = vld [vmem:[#allocation4 + $0x150] sm:$0xff]  ;;  %vm6159_vm2 = vmmov %vm6145_vm1  ;;  %v5029_v7 = vld [vmem:[%s6004_s1 + $0x38] ss:$0 sm:$0xff] }
 0x1cd   : > { %875 = vst [vmem:[#allocation4 + $0x140] sm:$0xf0] %v867_v13  ;;  %v1572_v50 = vpack.c.bf16 %v1524_v52, %v1520_v3  ;;  %2196 = vrot.lane.b32.xlu0 %v6155_v42, %s3718_s26  ;;  %v6164_v3 = vld [vmem:[#allocation33_spill] sm:$0xff] }
 0x1ce   : > { %v955_v30 = vpop.permute.xlu0 %954  ;;  %2194 = vrot.lane.b32.xlu1 %v6156_v53, %s3718_s26 }
 0x1cf   : > { %v961_v58 = vsel %vm6145_vm1, %v4873_v49, %v955_v30  ;;  %v909_v48 = vpop.permute.xlu1 %908  ;;  %1624 = vmatprep.subr.bf16.mxu0 %v1572_v50  ;;  %v1529_v11 = vld [vmem:[#allocation4 + $0x138] sm:$0xff] }
 0x1d0   : > { %969 = vst [vmem:[#allocation4 + $0x1b8] sm:$0xf0] %v961_v58  ;;  %v914_v45 = vsel %vm6142_vm15, %v907_v61, %v909_v48  ;;  %vm6188_vm15 = vmmov %vm6145_vm1 }
 0x1d1   : > { %922 = vst [vmem:[#allocation4 + $0x28] sm:$0xf] %v914_v45  ;;  %2253 = vrot.lane.b32.xlu0 %v6157_v16, %s3720_s29 }
 0x1d2   : > { %2198 = vrot.lane.b32.xlu1 %v6158_v62, %s3718_s26 }
 0x1d3   : > { %v536_v4 = vpop.permute.xlu0 %535 }
 0x1d4   : > { %v546_v17 = vsel %vm545_vm10, %v536_v4, %v4907_v1  ;;  %v957_v39 = vpop.permute.xlu1 %956  ;;  %v6165_v4 = vld [vmem:[#allocation9_spill] sm:$0xff] }
 0x1d5   : > { %554 = vst [vmem:[#allocation4 + $0x180] sm:$0xf] %v546_v17  ;;  %v962_v49 = vsel %vm6159_vm2, %v955_v30, %v957_v39  ;;  %2035 = vrot.lane.b32.xlu0 %v6139_v12, %s3707_s9  ;;  %vm1595_vm2 = vcmask 883712  }
 0x1d6   : > { %970 = vst [vmem:[#allocation4 + $0x28] sm:$0xf0] %v962_v49  ;;  %2306 = vrot.lane.b32.xlu1 %v6160_v22, %s3719_s28 }
 0x1d7   : > { %v672_v26 = vpop.permute.xlu0 %671  ;;  %v1533_v46 = vld [vmem:[#allocation4 + $0x1b8] sm:$0xff] }
 0x1d8   : > { %v681_v43 = vsel %vm419_vm7, %v672_v26, %v4925_v63  ;;  %v605_v33 = vpop.permute.xlu1 %604  ;;  %v1530_v63 = vld [vmem:[#allocation4 + $0x140] sm:$0xff] }
 0x1d9   : > { %689 = vst [vmem:[#allocation4 + $0x120] sm:$0xf] %v681_v43  ;;  %v614_v1 = vsel %vm488_vm3, %v605_v33, %v4914_v57  ;;  %2039 = vrot.lane.b32.xlu0 %v6141_v29, %s3707_s9  ;;  %v6162_v29 = vld [vmem:[#allocation6_spill] sm:$0xff] }
 0x1da   : > { %622 = vst [vmem:[#allocation4 + $0x180] sm:$0xf0] %v614_v1  ;;  %2037 = vrot.lane.b32.xlu1 %v6138_v59, %s3707_s9  ;;  %v1577_v59 = vpack.c.bf16 %v1533_v46, %v1529_v11 }
 0x1db   : > { %v5011_v12 = vpop.permute.xlu0 %297 }
 0x1dc   : > { %v740_v15 = vpop.permute.xlu1 %739 }
 0x1dd   : > { %v749_v27 = vsel %vm349_vm8, %v740_v15, %v4936_v14  ;;  %v1534_v18 = vld [vmem:[#allocation4 + $0x28] sm:$0xff]  ;;  %2090 = vrot.lane.b32.xlu0 %v6161_v51, %s3706_s8 }
 0x1de   : > { %757 = vst [vmem:[#allocation4 + $0x120] sm:$0xf0] %v749_v27  ;;  %v1578_v57 = vpack.c.bf16 %v1534_v18, %v1530_v63  ;;  %2088 = vrot.lane.b32.xlu1 %v6162_v29, %s3706_s8 }
 0x1df   : > { %v5019_v56 = vpop.permute.xlu0 %367 }
 0x1e0   : > { %1663 = vmatprep.subr.bf16.mxu1 %v1578_v57  ;;  %v5021_v34 = vpop.permute.xlu1 %299 }
 0x1e1   : > { %v307_v14 = vsel %vm305_vm0, %v5011_v12, %v5021_v34  ;;  %1664 = vmatpush1.bf16.msra.mxu1 %v1577_v59  ;;  %2147 = vrot.lane.b32.xlu0 %v5029_v7, %s3704_s27  ;;  %v1519_v2 = vld [vmem:[#allocation4 + $0x180] sm:$0xff] }
 0x1e2   : > { %315 = vst [vmem:[#allocation4 + $0x1b0] sm:$0xf] %v307_v14  ;;  %2092 = vrot.lane.b32.xlu1 %v6163_v6, %s3706_s8 }
 0x1e3   : > { %v437_v37 = vpop.permute.xlu0 %436 }
 0x1e4   : > { %v5035_v41 = vpop.permute.xlu1 %369 }
 0x1e5   : > { %v377_v61 = vsel %vm375_vm5, %v5019_v56, %v5035_v41  ;;  %v1523_v40 = vld [vmem:[#allocation4 + $0x120] sm:$0xff]  ;;  %1982 = vrot.lane.b32.xlu0 %v6135_v19, %s3709_s17 }
 0x1e6   : > { %385 = vst [vmem:[#allocation4 + $0x1b0] sm:$0xf0] %v377_v61  ;;  %v1571_v13 = vpack.c.bf16 %v1523_v40, %v1519_v2  ;;  %2200 = vrot.lane.b32.xlu1 %v6164_v3, %s3718_s26 }
 0x1e7   : > { %v5044_v52 = vpop.permute.xlu0 %506 }
 0x1e8   : > { %1625 = vmatpush1.bf16.msra.mxu0 %v1571_v13  ;;  %v5046_v50 = vpop.permute.xlu1 %438 }
 0x1e9   : > { %v446_v30 = vsel %vm444_vm4, %v437_v37, %v5046_v50  ;;  %1986 = vrot.lane.b32.xlu0 %v6136_v20, %s3709_s17 }
 0x1ea   : > { %454 = vst [vmem:[#allocation4 + $0x168] sm:$0xf] %v446_v30  ;;  %1984 = vrot.lane.b32.xlu1 %v6137_v38, %s3709_s17 }
 0x1eb   : > { %v542_v19 = vpop.permute.xlu0 %541 }
 0x1ec   : > { %v548_v58 = vsel %vm545_vm10, %v4918_v32, %v542_v19  ;;  %v5056_v48 = vpop.permute.xlu1 %508 }
 0x1ed   : > { %556 = vst [vmem:[#allocation4 + $0x118] sm:$0xf] %v548_v58  ;;  %v516_v45 = vsel %vm514_vm6, %v5044_v52, %v5056_v48  ;;  %2094 = vrot.lane.b32.xlu0 %v6165_v4, %s3706_s8 }
 0x1ee   : > { %524 = vst [vmem:[#allocation4 + $0x168] sm:$0xf0] %v516_v45  ;;  %2041 = vrot.lane.b32.xlu1 %v6146_v47, %s3707_s9 }
 0x1ef   : > { %v611_v20 = vpop.permute.xlu0 %610 }
 0x1f0   : > { %v616_v38 = vsel %vm488_vm3, %v4929_v35, %v611_v20  ;;  %v544_v17 = vpop.permute.xlu1 %543  ;;  %v1512_v35 = vld [vmem:[#allocation4 + $0x1b0] sm:$0xff] }
 0x1f1   : > { %624 = vst [vmem:[#allocation4 + $0x118] sm:$0xf0] %v616_v38  ;;  %v549_v32 = vsel %vm545_vm10, %v542_v19, %v544_v17  ;;  %1846 = vrot.lane.b32.xlu0 %v6153_v21, %s3710_s18 }
 0x1f2   : > { %557 = vst [vmem:[#allocation4 + $0x98] sm:$0xf] %v549_v32  ;;  %1844 = vrot.lane.b32.xlu1 %v6150_v8, %s3710_s18 }
 0x1f3   : > { %v678_v39 = vpop.permute.xlu0 %677 }
 0x1f4   : > { %v683_v49 = vsel %vm419_vm7, %v4940_v54, %v678_v39  ;;  %v613_v47 = vpop.permute.xlu1 %612 }
 0x1f5   : > { %691 = vst [vmem:[#allocation4 + $0x108] sm:$0xf] %v683_v49  ;;  %v617_v26 = vsel %vm488_vm3, %v611_v20, %v613_v47  ;;  %v1516_v43 = vld [vmem:[#allocation4 + $0x168] sm:$0xff]  ;;  %1897 = vrot.lane.b32.xlu0 %v6140_v23, %s3708_s14 }
 0x1f6   : > { %625 = vst [vmem:[#allocation4 + $0x98] sm:$0xf0] %v617_v26  ;;  %v1568_v33 = vpack.c.bf16 %v1516_v43, %v1512_v35  ;;  %1848 = vrot.lane.b32.xlu1 %v6152_v10, %s3710_s18 }
 0x1f7   : > { %v746_v21 = vpop.permute.xlu0 %745 }
 0x1f8   : > { %v751_v8 = vsel %vm349_vm8, %v4951_v24, %v746_v21  ;;  %v680_v1 = vpop.permute.xlu1 %679  ;;  %1626 = vmatprep.subr.bf16.mxu0 %v1568_v33 }
 0x1f9   : > { %759 = vst [vmem:[#allocation4 + $0x108] sm:$0xf0] %v751_v8  ;;  %v684_v54 = vsel %vm419_vm7, %v678_v39, %v680_v1  ;;  %1901 = vrot.lane.b32.xlu0 %v6143_v31, %s3708_s14 }
 0x1fa   : > { %692 = vst [vmem:[#allocation4 + $0x60] sm:$0xf] %v684_v54  ;;  %1899 = vrot.lane.b32.xlu1 %v6144_v60, %s3708_s14 }
 0x1fb   : > { %v296_v23 = vpop.permute.xlu0 %295 }
 0x1fc   : > { %v306_v10 = vsel %vm305_vm0, %v296_v23, %v5011_v12  ;;  %v748_v15 = vpop.permute.xlu1 %747 }
 0x1fd   : > { %314 = vst [vmem:[#allocation4 + $0xb0] sm:$0xf] %v306_v10  ;;  %v752_v24 = vsel %vm349_vm8, %v746_v21, %v748_v15  ;;  %1738 = vrot.lane.b32.xlu0 %v6156_v53, %s3714_s22  ;;  %v1522_v57 = vld [vmem:[#allocation4 + $0x98] sm:$0xff] }
 0x1fe   : > { %760 = vst [vmem:[#allocation4 + $0x60] sm:$0xf0] %v752_v24  ;;  %1988 = vrot.lane.b32.xlu1 %v6147_v28, %s3709_s17 }
 0x1ff   : > { %v435_v31 = vpop.permute.xlu0 %434 }
 0x200   : > { %v445_v46 = vsel %vm444_vm4, %v435_v31, %v437_v37  ;;  %v366_v27 = vpop.permute.xlu1 %365  ;;  %v1525_v63 = vld [vmem:[#allocation4 + $0x108] sm:$0xff] }
 0x201   : > { %453 = vst [vmem:[#allocation4 + $0x50] sm:$0xf] %v445_v46  ;;  %v376_v60 = vsel %vm375_vm5, %v366_v27, %v5019_v56  ;;  %1742 = vrot.lane.b32.xlu0 %v6158_v62, %s3714_s22  ;;  %v1521_v56 = vld [vmem:[#allocation4 + $0x118] sm:$0xff] }
 0x202   : > { %384 = vst [vmem:[#allocation4 + $0xb0] sm:$0xf0] %v376_v60  ;;  %1740 = vrot.lane.b32.xlu1 %v6155_v42, %s3714_s22  ;;  %v1573_v59 = vpack.c.bf16 %v1525_v63, %v1521_v56 }
 0x203   : > { %v302_v53 = vpop.permute.xlu0 %301 }
 0x204   : > { %v308_v12 = vsel %vm305_vm0, %v5021_v34, %v302_v53  ;;  %v505_v28 = vpop.permute.xlu1 %504 }
 0x205   : > { %316 = vst [vmem:[#allocation4 + $0xd8] sm:$0xf] %v308_v12  ;;  %v515_v18 = vsel %vm514_vm6, %v505_v28, %v5044_v52  ;;  %v1526_v11 = vld [vmem:[#allocation4 + $0x60] sm:$0xff]  ;;  %1793 = vrot.lane.b32.xlu0 %v6148_v0, %s3711_s19 }
 0x206   : > { %523 = vst [vmem:[#allocation4 + $0x50] sm:$0xf0] %v515_v18  ;;  %v1574_v62 = vpack.c.bf16 %v1526_v11, %v1522_v57  ;;  %1791 = vrot.lane.b32.xlu1 %v6149_v9, %s3711_s19 }
 0x207   : > { %v372_v42 = vpop.permute.xlu0 %371 }
 0x208   : > { %v378_v34 = vsel %vm375_vm5, %v5035_v41, %v372_v42  ;;  %v304_v14 = vpop.permute.xlu1 %303  ;;  %1665 = vmatprep.subr.bf16.mxu1 %v1574_v62 }
 0x209   : > { %386 = vst [vmem:[#allocation4 + $0xd8] sm:$0xf0] %v378_v34  ;;  %v309_v37 = vsel %vm305_vm0, %v302_v53, %v304_v14  ;;  %1666 = vmatpush1.bf16.msra.mxu1 %v1573_v59  ;;  %1850 = vrot.lane.b32.xlu0 %v6160_v22, %s3710_s18  ;;  %v1511_v2 = vld [vmem:[#allocation4 + $0xb0] sm:$0xff] }
 0x20a   : > { %317 = vst [vmem:[#allocation4 + $0x18] sm:$0xf] %v309_v37  ;;  %1795 = vrot.lane.b32.xlu1 %v6151_v44, %s3711_s19 }
 0x20b   : > { %v441_v0 = vpop.permute.xlu0 %440 }
 0x20c   : > { %v447_v9 = vsel %vm444_vm4, %v5046_v50, %v441_v0  ;;  %v374_v61 = vpop.permute.xlu1 %373  ;;  %v1510_v50 = vld [vmem:[%s6005_s2] sm:$0xf] }
 0x20d   : > { %455 = vst [vmem:[#allocation4 + $0x130] sm:$0xf] %v447_v9  ;;  %v379_v41 = vsel %vm375_vm5, %v372_v42, %v374_v61  ;;  %v1515_v40 = vld [vmem:[#allocation4 + $0x50] sm:$0xff]  ;;  %1744 = vrot.lane.b32.xlu0 %v6164_v3, %s3714_s22 }
 0x20e   : > { %387 = vst [vmem:[#allocation4 + $0x18] sm:$0xf0] %v379_v41  ;;  %v1567_v13 = vpack.c.bf16 %v1515_v40, %v1511_v2  ;;  %1903 = vrot.lane.b32.xlu1 %v6154_v55, %s3708_s14 }
 0x20f   : > { %v511_v22 = vpop.permute.xlu0 %510 }
 0x210   : > { %v517_v44 = vsel %vm514_vm6, %v5056_v48, %v511_v22  ;;  %v443_v52 = vpop.permute.xlu1 %442  ;;  %1627 = vmatpush1.bf16.msra.mxu0 %v1567_v13  ;;  %v1513_v38 = vld [vmem:[#allocation4 + $0xd8] sm:$0xff] }
 0x211   : > { %525 = vst [vmem:[#allocation4 + $0x130] sm:$0xf0] %v517_v44  ;;  %v448_v30 = vsel %vm444_vm4, %v441_v0, %v443_v52  ;;  %2520 = vrot.lane.b32.xlu0 %v6162_v29, %s3713_s21 }
 0x212   : > { %456 = vst [vmem:[#allocation4 + $0x48] sm:$0xf] %v448_v30  ;;  %1797 = vrot.lane.b32.xlu1 %v6157_v16, %s3711_s19 }
 0x213   : > { %3337 = vmatmul.mubr.msk.bf16.vlgmr.msra.gmra.mxu0 %vm1595_vm2, %v1510_v50  ;;  %v5133_v55 = vpop.permute.xlu0 %2414 }
 0x214   : > { %v513_v3 = vpop.permute.xlu1 %512 }
 0x215   : > { %v518_v19 = vsel %vm514_vm6, %v511_v22, %v513_v3  ;;  %v1514_v16 = vld [vmem:[#allocation4 + $0x18] sm:$0xff] }
 0x216   : > { %526 = vst [vmem:[#allocation4 + $0x48] sm:$0xf0] %v518_v19  ;;  %2522 = vrot.lane.b32.xlu1 %v6161_v51, %s3713_s21 }
 0x217   : > { %v5138_v58 = vpop.permute.xlu0 %2418 }
 0x218   : > { %v5142_v29 = vpop.permute.xlu1 %2416  ;;  %v1517_v48 = vld [vmem:[#allocation4 + $0x130] sm:$0xff] }
 0x219   : > { %v1569_v32 = vpack.c.bf16 %v1517_v48, %v1513_v38 }
 0x21a   : > { %2573 = vrot.lane.b32.xlu1 %v4959_v25, %s3712_s20 }
 0x21b   : > { %v5144_v17 = vpop.permute.xlu0 %2469 }
 0x21c   : > { %v5146_v39 = vpop.permute.xlu1 %2467 }
 0x21d   : > { %v1518_v45 = vld [vmem:[#allocation4 + $0x48] sm:$0xff] }
 0x21e   : > { %v1570_v20 = vpack.c.bf16 %v1518_v45, %v1514_v16 }
 0x21f   : > { %v5149_v51 = vpop.permute.xlu0 %2353 }
 0x220   : > { %1667 = vmatprep.subr.bf16.mxu1 %v1570_v20  ;;  %v5151_v49 = vpop.permute.xlu1 %2471 }
 0x221   : > { %1668 = vmatpush1.bf16.msra.mxu1 %v1569_v32 }
 0x223   : > { %v5153_v25 = vpop.permute.xlu0 %2357 }
 0x224   : > { %3339 = vmatmul.mubr.msk.bf16.vlgmr.msra.gmra.mxu1 %vm1595_vm2, %v1510_v50  ;;  %v5155_v47 = vpop.permute.xlu1 %2355  ;;  %vm6189_vm2 = vmmov %vm6145_vm1 }
 0x227   : > { %v5157_v26 = vpop.permute.xlu0 %2473 }
 0x228   : > { %v5159_v35 = vpop.permute.xlu1 %2420 }
 0x22b   : > { %v5161_v43 = vpop.permute.xlu0 %2249 }
 0x22c   : > { %v5163_v33 = vpop.permute.xlu1 %2247 }
 0x22f   : > { %v5165_v21 = vpop.permute.xlu0 %2300 }
 0x230   : > { %v5167_v8 = vpop.permute.xlu1 %2251 }
 0x233   : > { %v5169_v1 = vpop.permute.xlu0 %2304 }
 0x234   : > { %v5171_v54 = vpop.permute.xlu1 %2302 }
 0x237   : > { %v5173_v23 = vpop.permute.xlu0 %2141 }
 0x238   : > { %v5175_v10 = vpop.permute.xlu1 %2359 }
 0x23b   : > { %v5177_v15 = vpop.permute.xlu0 %2145 }
 0x23c   : > { %6166 = vst [vmem:[#allocation34_spill] sm:$0xff] %v5177_v15  ;;  %v5179_v24 = vpop.permute.xlu1 %2143 }
 0x23f   : > { %v5181_v31 = vpop.permute.xlu0 %2196 }
 0x240   : > { %v5183_v46 = vpop.permute.xlu1 %2194 }
 0x243   : > { %v5185_v27 = vpop.permute.xlu0 %2253 }
 0x244   : > { %v5187_v60 = vpop.permute.xlu1 %2198 }
 0x247   : > { %v5189_v53 = vpop.permute.xlu0 %2035 }
 0x248   : > { %6167 = vst [vmem:[#allocation22_spill] sm:$0xff] %v5189_v53  ;;  %v5191_v12 = vpop.permute.xlu1 %2306 }
 0x24b   : > { %v5193_v28 = vpop.permute.xlu0 %2039 }
 0x24c   : > { %6168 = vst [vmem:[#allocation16_spill] sm:$0xff] %v5193_v28  ;;  %v5195_v63 = vpop.permute.xlu1 %2037 }
 0x24d   : > { %6169 = vst [vmem:[#allocation23_spill] sm:$0xff] %v5195_v63 }
 0x24f   : > { %v5197_v18 = vpop.permute.xlu0 %2090 }
 0x250   : > { %v5201_v11 = vpop.permute.xlu1 %2088 }
 0x253   : > { %v5199_v57 = vpop.permute.xlu0 %2147 }
 0x254   : > { %6170 = vst [vmem:[#allocation11_spill] sm:$0xff] %v5199_v57  ;;  %v5205_v56 = vpop.permute.xlu1 %2092 }
 0x257   : > { %v5203_v62 = vpop.permute.xlu0 %1982 }
 0x258   : > { %6171 = vst [vmem:[#allocation10_spill] sm:$0xff] %v5203_v62  ;;  %v5211_v34 = vpop.permute.xlu1 %2200 }
 0x25b   : > { %v5207_v42 = vpop.permute.xlu0 %1986 }
 0x25c   : > { %6172 = vst [vmem:[#allocation18_spill] sm:$0xff] %v5207_v42  ;;  %v5215_v37 = vpop.permute.xlu1 %1984 }
 0x25d   : > { %6174 = vst [vmem:[#allocation12_spill] sm:$0xff] %v5215_v37 }
 0x25f   : > { %v5209_v59 = vpop.permute.xlu0 %2094 }
 0x260   : > { %6173 = vst [vmem:[#allocation14_spill] sm:$0xff] %v5209_v59  ;;  %v5217_v0 = vpop.permute.xlu1 %2041 }
 0x261   : > { %6175 = vst [vmem:[#allocation19_spill] sm:$0xff] %v5217_v0 }
 0x263   : > { %v5213_v14 = vpop.permute.xlu0 %1846 }
 0x264   : > { %v5221_v61 = vpop.permute.xlu1 %1844 }
 0x267   : > { %v5219_v9 = vpop.permute.xlu0 %1897 }
 0x268   : > { %v5225_v2 = vpop.permute.xlu1 %1848 }
 0x269   : > { %6177 = vst [vmem:[#allocation17_spill] sm:$0xff] %v5225_v2  ;;  %v5230_v40 = vsel %vm419_vm7, %v5213_v14, %v5225_v2 }
 0x26b   : > { %v5223_v41 = vpop.permute.xlu0 %1901 }
 0x26c   : > { %6176 = vst [vmem:[#allocation15_spill] sm:$0xff] %v5223_v41  ;;  %v5232_v13 = vpop.permute.xlu1 %1899 }
 0x26d   : > { %v5237_v22 = vsel %vm488_vm3, %v5232_v13, %v5223_v41 }
 0x26f   : > { %v5239_v44 = vpop.permute.xlu0 %1738 }
 0x270   : > { %v5241_v52 = vpop.permute.xlu1 %1988 }
 0x271   : > { %6178 = vst [vmem:[#allocation29_spill] sm:$0xff] %v5241_v52 }
 0x273   : > { %v5243_v50 = vpop.permute.xlu0 %1742 }
 0x274   : > { %6179 = vst [vmem:[#allocation28_spill] sm:$0xff] %v5243_v50  ;;  %v5245_v30 = vpop.permute.xlu1 %1740 }
 0x275   : > { %v5250_v3 = vsel %vm279_vm11, %v5245_v30, %v5243_v50 }
 0x277   : > { %v5254_v48 = vpop.permute.xlu0 %1793 }
 0x278   : > { %v5252_v19 = vpop.permute.xlu1 %1791 }
 0x27c   : > { %v5256_v16 = vpop.permute.xlu1 %1795 }
 0x27d   : > { %6180 = vst [vmem:[#allocation26_spill] sm:$0xff] %v5256_v16  ;;  %v5261_v45 = vsel %vm349_vm8, %v5254_v48, %v5256_v16 }
 0x2d3   : > { %v1646_v20 = vpop.f32.mrf.mxu0 }
 0x2d4   : > { %v1701_v41 = vmul.f32 %v1646_v20, %v1646_v20 }
 0x2d5   : > { %v1648_v38 = vpop.f32.mrf.mxu0 }
 0x2d6   : > { %v1702_v0 = vmul.f32 %v1648_v38, %v1648_v38  ;;  %v1694_v52 = vadd.f32 %v1648_v38, %v1646_v20 }
 0x2d7   : > { %v1650_v32 = vpop.f32.mrf.mxu0 }
 0x2d8   : > { %v1705_v28 = vadd.f32 %v1702_v0, %v1701_v41  ;;  %v2434_v0 = vmul.f32 0.0, %v5159_v35 }
 0x2d9   : > { %v1651_v2 = vpop.f32.mrf.mxu0 }
 0x2e4   : > { %v1687_v50 = vpop.f32.mrf.mxu1 }
 0x2e5   : > { %v1695_v42 = vadd.f32 %v1694_v52, %v1687_v50  ;;  %v1703_v62 = vmul.f32 %v1687_v50, %v1687_v50 }
 0x2e6   : > { %v1689_v37 = vpop.f32.mrf.mxu1 }
 0x2e7   : > { %v1706_v53 = vadd.f32 %v1705_v28, %v1703_v62  ;;  %v1696_v63 = vadd.f32 %v1695_v42, %v1689_v37  ;;  %v1704_v57 = vmul.f32 %v1689_v37, %v1689_v37 }
 0x2e8   : > { %v1691_v59 = vpop.f32.mrf.mxu1 }
 0x2e9   : > { %1697 = vadd.xlane.f32.xlu0 %v1696_v63  ;;  %v1707_v15 = vadd.f32 %v1706_v53, %v1704_v57 }
 0x2ea   : > { %v1692_v16 = vpop.f32.mrf.mxu1 }
 0x2eb   : > { %1708 = vadd.xlane.f32.xlu1 %v1707_v15  ;;  %v2487_v15 = vmul.f32 0.0, %v5157_v26 }
 0x2fc   : > { %2577 = vrot.lane.b32.xlu1 %v4971_v5, %s3712_s20  ;;  %v5277_v5 = vpop.permute.xlu1 %1903 }
 0x2ff   : > { %2524 = vrot.lane.b32.xlu0 %v6163_v6, %s3713_s21  ;;  %v5279_v6 = vpop.permute.xlu0 %1850 }
 0x300   : > { %2579 = vrot.lane.b32.xlu1 %v5029_v7, %s3712_s20  ;;  %6181 = vst [vmem:[#allocation24_spill] sm:$0xff] %v5279_v6  ;;  %v5281_v53 = vpop.permute.xlu1 %1797 }
 0x301   : > { %6182 = vst [vmem:[#allocation20_spill] sm:$0xff] %v5281_v53 }
 0x303   : > { %2575 = vrot.lane.b32.xlu0 %v4978_v36, %s3712_s20  ;;  %v5283_v7 = vpop.permute.xlu0 %1744 }
 0x304   : > { %2448 = vrot.lane.b32.xlu1 %v2434_v0, %s3717_s25  ;;  %6183 = vst [vmem:[#allocation27_spill] sm:$0xff] %v5283_v7  ;;  %v5285_v28 = vpop.permute.xlu1 %2522 }
 0x305   : > { %6184 = vst [vmem:[#allocation13_spill] sm:$0xff] %v5285_v28 }
 0x307   : > { %2526 = vrot.lane.b32.xlu0 %v6165_v4, %s3713_s21  ;;  %v5287_v36 = vpop.permute.xlu0 %2520 }
 0x308   : > { %6185 = vst [vmem:[#allocation31_spill] sm:$0xff] %v5287_v36  ;;  %v5289_v63 = vpop.permute.xlu1 %2573 }
 0x309   : > { %6186 = vst [vmem:[#allocation30_spill] sm:$0xff] %v5289_v63 }
 0x30b   : > { %2501 = vrot.lane.b32.xlu0 %v2487_v15, %s3719_s28 }
 0x372   : > { %v1698_v57 = vpop.xlane.xlu0 %1697 }
 0x373   : > { %v1700_v4 = vmul.f32 0.001953125, %v1698_v57 }
 0x374   : > { %v1709_v62 = vpop.xlane.xlu1 %1708 }
 0x375   : > { %v1710_v42 = vmul.f32 0.001953125, %v1709_v62  ;;  %v1711_v59 = vmul.f32 %v1700_v4, %v1700_v4  ;;  %v1713_v52 = vsub.f32 %v1646_v20, %v1700_v4  ;;  %v1714_v16 = vsub.f32 %v1648_v38, %v1700_v4 }
 0x376   : > { %v1715_v32 = vsub.f32 %v1687_v50, %v1700_v4  ;;  %v1716_v15 = vsub.f32 %v1689_v37, %v1700_v4  ;;  %v2422_v62 = vsel %vm1005_vm13, %v5133_v55, %v5142_v29  ;;  %v2423_v37 = vsel %vm1005_vm13, %v5142_v29, %v5138_v58 }
 0x377   : > { %v1712_v41 = vsub.f32 %v1710_v42, %v1711_v59  ;;  %v6187_v29 = vmov 0.0   ;;  %v2361_v59 = vsel %vm980_vm12, %v5149_v51, %v5155_v47 }
 0x379   : > { %v1717_v2 = vadd.f32 1e-05, %v1712_v41 }
 0x37b   : > { %3688 = vrsqrt.f32 %v1717_v2 }
 0x388   : > { %v3689_v0 = vpop.eup %3688 }
 0x389   : > { %v1719_v7 = vmul.f32 %v3689_v0, %v1713_v52  ;;  %v1720_v53 = vmul.f32 %v3689_v0, %v1714_v16  ;;  %v1721_v28 = vmul.f32 %v3689_v0, %v1715_v32  ;;  %v1722_v6 = vmul.f32 %v3689_v0, %v1716_v15 }
 0x38a   : > { %v2255_v52 = vsel %vm885_vm14, %v5163_v33, %v5161_v43 }
 0x38b   : > { %v5291_v36 = vmax.f32 %v1719_v7, 0.0  ;;  %v5293_v63 = vmax.f32 %v1720_v53, 0.0  ;;  %v5295_v57 = vmax.f32 %v1721_v28, 0.0  ;;  %v5300_v42 = vmax.f32 %v1722_v6, 0.0 }
 0x38c   : > { %v2424_v53 = vsel %vm1005_vm13, %v5138_v58, %v5159_v35  ;;  %v2362_v58 = vsel %vm980_vm12, %v5155_v47, %v5153_v25  ;;  %v2256_v47 = vsel %vm885_vm14, %v5161_v43, %v5167_v8  ;;  %v2476_v43 = vsel %vm6188_vm15, %v5144_v17, %v5151_v49 }
 0x38d   : > { %v3377_v50 = vpack.i.bf16 %v5293_v63, %v5291_v36  ;;  %v2431_v20 = vmul.f32 %v2422_v62, %v5293_v63  ;;  %v2432_v38 = vmul.f32 %v2423_v37, %v5295_v57  ;;  %v2430_v6 = vmul.f32 %v5133_v55, %v5291_v36 }
 0x38e   : > { %v2433_v28 = vmul.f32 %v2424_v53, %v5300_v42  ;;  %v3382_v4 = vpack.i.bf16 %v5295_v57, %v6187_v29  ;;  %v2370_v55 = vmul.f32 %v2361_v59, %v5291_v36  ;;  %v2371_v41 = vmul.f32 %v2362_v58, %v5293_v63 }
 0x38f   : > { %3378 = vrot.lane.b32.xlu1 %v3377_v50, %s3721_s30  ;;  %v3402_v7 = vpack.i.bf16 %v2432_v38, %v2431_v20  ;;  %v3387_v2 = vpack.i.bf16 %v5293_v63, %v5300_v42  ;;  %v2264_v32 = vmul.f32 %v2255_v52, %v5291_v36  ;;  %v2265_v0 = vmul.f32 %v2256_v47, %v5293_v63 }
 0x390   : > { %v3412_v35 = vpack.i.bf16 %v2433_v28, %v2430_v6  ;;  %v3422_v16 = vpack.i.bf16 %v2371_v41, %v2370_v55  ;;  %v3392_v15 = vpack.i.bf16 %v5291_v36, %v5295_v57  ;;  %v2475_v62 = vsel %vm6145_vm1, %v5146_v39, %v5144_v17 }
 0x391   : > { %3403 = vrot.lane.b32.xlu0 %v3402_v7, %s3717_s25  ;;  %v5353_v37 = vsel %vm488_vm3, %v5219_v9, %v5232_v13  ;;  %v3432_v50 = vpack.i.bf16 %v2265_v0, %v2264_v32  ;;  %v3397_v20 = vpack.i.bf16 %v6187_v29, %v5300_v42  ;;  %v2484_v38 = vmul.f32 %v2475_v62, %v5293_v63 }
 0x392   : > { %v2485_v53 = vmul.f32 %v2476_v43, %v5295_v57  ;;  %v5361_v7 = vmul.f32 %v5353_v37, %v5291_v36  ;;  %v2477_v17 = vsel %vm6189_vm2, %v5151_v49, %v5157_v26  ;;  %v2310_v13 = vsel %vm932_vm9, %v5169_v1, %v5191_v12 }
 0x393   : > { %3383 = vrot.lane.b32.xlu1 %v3382_v4, %s3721_s30  ;;  %v5372_v6 = vmul.f32 %v5237_v22, %v5293_v63  ;;  %v5377_v28 = vsel %vm419_vm7, %v5221_v61, %v5213_v14  ;;  %v5382_v29 = vsel %vm279_vm11, %v5239_v44, %v5245_v30  ;;  %v5387_v49 = vsel %vm349_vm8, %v5252_v19, %v5254_v48 }
 0x394   : > { %v2373_v26 = vmul.f32 %v5175_v10, %v5300_v42  ;;  %v2319_v4 = vmul.f32 %v2310_v13, %v5295_v57  ;;  %v5397_v59 = vmul.f32 %v5377_v28, %v5291_v36  ;;  %v5401_v30 = vmul.f32 %v5230_v40, %v5293_v63 }
 0x395   : > { %3413 = vrot.lane.b32.xlu0 %v3412_v35, %s3717_s25  ;;  %v3522_v14 = vpack.i.bf16 %v5372_v6, %v5361_v7  ;;  %v3407_v48 = vpack.i.bf16 %v2485_v53, %v2484_v38  ;;  %v2483_v58 = vmul.f32 %v5146_v39, %v5291_v36  ;;  %v2486_v35 = vmul.f32 %v2477_v17, %v5300_v42 }
 0x396   : > { %v5408_v55 = vmul.f32 %v5387_v49, %v5291_v36  ;;  %v2316_v41 = vmul.f32 0.0, %v5165_v21  ;;  %v5416_v52 = vmul.f32 %v5261_v45, %v5293_v63  ;;  %v5420_v39 = vmul.f32 %v5382_v29, %v5291_v36 }
 0x397   : > { %3388 = vrot.lane.b32.xlu1 %v3387_v2, %s3721_s30  ;;  %v3517_v2 = vpack.i.bf16 %v5401_v30, %v5397_v59  ;;  %v2363_v47 = vsel %vm980_vm12, %v5153_v25, %v5175_v10  ;;  %vm6190_vm1 = vcmask 973824   ;;  %v5434_v0 = vmul.f32 %v5250_v3, %v5293_v63  ;;  %v6207_v59 = vld [vmem:[#allocation20_spill] sm:$0xff]  ;;  %v6208_v30 = vld [vmem:[#allocation26_spill] sm:$0xff] }
 0x398   : > { %vm6191_vm15 = vmmov %vm6190_vm1  ;;  %v3547_v25 = vpack.i.bf16 %v5416_v52, %v5408_v55  ;;  %v3417_v10 = vpack.i.bf16 %v2486_v35, %v2483_v58  ;;  %v2308_v38 = vsel %vm932_vm9, %v5165_v21, %v5171_v54  ;;  %v2309_v53 = vsel %vm932_vm9, %v5171_v54, %v5169_v1 }
 0x399   : > { %3423 = vrot.lane.b32.xlu0 %v3422_v16, %s3716_s24  ;;  %v2202_v16 = vsel %vm6190_vm1, %v5183_v46, %v5181_v31  ;;  %v2203_v32 = vsel %vm6191_vm15, %v5181_v31, %v5187_v60  ;;  %v3542_v31 = vpack.i.bf16 %v5434_v0, %v5420_v39  ;;  %vm6192_vm2 = vmmov %vm6190_vm1  ;;  %v2257_v21 = vsel %vm885_vm14, %v5167_v8, %v5185_v27 }
 0x39a   : > { %v2211_v62 = vmul.f32 %v2202_v16, %v5291_v36  ;;  %v2212_v43 = vmul.f32 %v2203_v32, %v5293_v63  ;;  %v2320_v1 = vmul.f32 %v5191_v12, %v5300_v42  ;;  %v2266_v58 = vmul.f32 %v2257_v21, %v5295_v57  ;;  %v6197_v21 = vld [vmem:[#allocation22_spill] sm:$0xff] }
 0x39b   : > { %3393 = vrot.lane.b32.xlu1 %v3392_v15, %s3721_s30  ;;  %v3447_v15 = vpack.i.bf16 %v2319_v4, %v2316_v41  ;;  %v2318_v4 = vmul.f32 %v2309_v53, %v5293_v63  ;;  %v2210_v35 = vmul.f32 0.0, %v5183_v46  ;;  %v5472_v41 = vsel %vm305_vm0, %v5173_v23, %v5179_v24  ;;  %v6193_v46 = vld [vmem:[#allocation34_spill] sm:$0xff] }
 0x39c   : > { %v3457_v17 = vpack.i.bf16 %v2212_v43, %v2211_v62  ;;  %v2096_v8 = vsel %vm375_vm5, %v5201_v11, %v5197_v18  ;;  %v5480_v12 = vsel %vm375_vm5, %v5197_v18, %v5205_v56  ;;  %v2158_v62 = vmul.f32 %v5472_v41, %v5291_v36 }
 0x39d   : > { %3433 = vrot.lane.b32.xlu0 %v3432_v50, %s3713_s21  ;;  %v2372_v50 = vmul.f32 %v2363_v47, %v5295_v57  ;;  %v2105_v16 = vmul.f32 %v2096_v8, %v5291_v36  ;;  %v2106_v32 = vmul.f32 %v5480_v12, %v5293_v63  ;;  %v2214_v53 = vmul.f32 %v5211_v34, %v5300_v42 }
 0x39e   : > { %v1913_v6 = vmul.f32 0.0, %v5219_v9  ;;  %v1754_v39 = vmul.f32 0.0, %v5239_v44  ;;  %vm6213_vm1 = vcmask 64512  }
 0x39f   : > { %3398 = vrot.lane.b32.xlu1 %v3397_v20, %s3721_s30  ;;  %v2369_v20 = vmul.f32 0.0, %v5149_v51  ;;  %v2204_v51 = vsel %vm6192_vm2, %v5187_v60, %v5211_v34  ;;  %v2263_v60 = vmul.f32 0.0, %v5163_v33  ;;  %v5486_v33 = vsel %vm305_vm0, %v5179_v24, %v6193_v46  ;;  %v6198_v34 = vld [vmem:[#allocation12_spill] sm:$0xff]  ;;  %vm6214_vm15 = vmmov %vm6213_vm1 }
 0x3a0   : > { %v2213_v54 = vmul.f32 %v2204_v51, %v5295_v57  ;;  %v2159_v18 = vmul.f32 %v5486_v33, %v5293_v63  ;;  %v3477_v43 = vpack.i.bf16 %v2106_v32, %v2105_v16  ;;  %v6196_v51 = vld [vmem:[#allocation23_spill] sm:$0xff]  ;;  %vm6215_vm2 = vcmask 72704  }
 0x3a1   : > { %2387 = vrot.lane.b32.xlu0 %v2373_v26, %s3716_s24  ;;  %v3427_v13 = vpack.i.bf16 %v2372_v50, %v2369_v20  ;;  %v2317_v26 = vmul.f32 %v2308_v38, %v5291_v36  ;;  %v6195_v20 = vld [vmem:[#allocation11_spill] sm:$0xff] }
 0x3a2   : > { %v3467_v47 = vpack.i.bf16 %v2213_v54, %v2210_v35  ;;  %v3452_v24 = vpack.i.bf16 %v2159_v18, %v2158_v62  ;;  %v5507_v38 = vsel %vm305_vm0, %v6193_v46, %v6195_v20  ;;  %v6199_v54 = vld [vmem:[#allocation10_spill] sm:$0xff]  ;;  %v6201_v35 = vld [vmem:[#allocation16_spill] sm:$0xff] }
 0x3a3   : > { %3408 = vrot.lane.b32.xlu1 %v3407_v48, %s3719_s28  ;;  %v3437_v48 = vpack.i.bf16 %v2318_v4, %v2317_v26  ;;  %v2104_v26 = vmul.f32 0.0, %v5201_v11  ;;  %v2157_v4 = vmul.f32 0.0, %v5173_v23 }
 0x3a5   : > { %3448 = vrot.lane.b32.xlu0 %v3447_v15, %s3715_s23  ;;  %v3442_v15 = vpack.i.bf16 %v2266_v58, %v2263_v60  ;;  %v6200_v58 = vld [vmem:[#allocation18_spill] sm:$0xff]  ;;  %v5535_v60 = vsel %vm444_vm4, %v6196_v51, %v6201_v35 }
 0x3a6   : > { %v2053_v62 = vmul.f32 %v5535_v60, %v5293_v63 }
 0x3a7   : > { %3418 = vrot.lane.b32.xlu1 %v3417_v10, %s3719_s28  ;;  %v6194_v10 = vld [vmem:[#allocation14_spill] sm:$0xff] }
 0x3a8   : > { %v5501_v50 = vsel %vm375_vm5, %v5205_v56, %v6194_v10  ;;  %v2160_v56 = vmul.f32 %v5507_v38, %v5295_v57 }
 0x3a9   : > { %3458 = vrot.lane.b32.xlu0 %v3457_v17, %s3712_s20  ;;  %v2107_v17 = vmul.f32 %v5501_v50, %v5295_v57 }
 0x3aa   : > { %v3462_v32 = vpack.i.bf16 %v2160_v56, %v2157_v4  ;;  %v6202_v56 = vld [vmem:[#allocation29_spill] sm:$0xff]  ;;  %v6203_v4 = vld [vmem:[#allocation19_spill] sm:$0xff] }
 0x3ab   : > { %3428 = vrot.lane.b32.xlu1 %v3427_v13, %s3716_s24  ;;  %v2267_v13 = vmul.f32 %v5185_v27, %v5300_v42  ;;  %v5529_v27 = vsel %vm514_vm6, %v6198_v34, %v6200_v58  ;;  %v3492_v46 = vpack.i.bf16 %v2107_v17, %v2104_v26  ;;  %v2161_v17 = vmul.f32 %v6195_v20, %v5300_v42 }
 0x3ac   : > { %v2000_v16 = vmul.f32 %v5529_v27, %v5293_v63  ;;  %v5556_v26 = vsel %vm514_vm6, %v6200_v58, %v6202_v56  ;;  %v2051_v58 = vmul.f32 0.0, %v6197_v21 }
 0x3ad   : > { %2334 = vrot.lane.b32.xlu0 %v2320_v1, %s3715_s23  ;;  %v2043_v1 = vsel %vm444_vm4, %v6197_v21, %v6196_v51 }
 0x3af   : > { %3438 = vrot.lane.b32.xlu1 %v3437_v48, %s3715_s23  ;;  %v1990_v48 = vsel %vm514_vm6, %v6199_v54, %v6198_v34  ;;  %v2001_v34 = vmul.f32 %v5556_v26, %v5295_v57 }
 0x3b1   : > { %3468 = vrot.lane.b32.xlu0 %v3467_v47, %s3712_s20  ;;  %v1999_v47 = vmul.f32 %v1990_v48, %v5291_v36 }
 0x3b3   : > { %3443 = vrot.lane.b32.xlu1 %v3442_v15, %s3713_s21  ;;  %v2052_v15 = vmul.f32 %v2043_v1, %v5291_v36  ;;  %v3497_v18 = vpack.i.bf16 %v2000_v16, %v1999_v47  ;;  %v1998_v47 = vmul.f32 0.0, %v6199_v54 }
 0x3b5   : > { %3478 = vrot.lane.b32.xlu0 %v3477_v43, %s3711_s19  ;;  %v2108_v43 = vmul.f32 %v6194_v10, %v5300_v42  ;;  %v3512_v16 = vpack.i.bf16 %v2001_v34, %v1998_v47  ;;  %v2738_v47 = vmul.f32 %v5353_v37, %v5293_v63  ;;  %v6209_v37 = vld [vmem:[#allocation27_spill] sm:$0xff] }
 0x3b7   : > { %3453 = vrot.lane.b32.xlu1 %v3452_v24, %s3714_s22  ;;  %v2881_v24 = vmul.f32 %v2096_v8, %v5293_v63  ;;  %v5562_v8 = vsel %vm444_vm4, %v6201_v35, %v6203_v4  ;;  %v2055_v35 = vmul.f32 %v6203_v4, %v5300_v42 }
 0x3b9   : > { %2228 = vrot.lane.b32.xlu0 %v2214_v53, %s3712_s20  ;;  %v3472_v53 = vpack.i.bf16 %v2053_v62, %v2052_v15  ;;  %v3507_v51 = vpack.i.bf16 %v2881_v24, %v2108_v43  ;;  %v2844_v15 = vmul.f32 %v2043_v1, %v5293_v63  ;;  %v2002_v62 = vmul.f32 %v6202_v56, %v5300_v42  ;;  %v6204_v24 = vld [vmem:[#allocation15_spill] sm:$0xff]  ;;  %v6205_v1 = vld [vmem:[#allocation24_spill] sm:$0xff] }
 0x3bb   : > { %2281 = vrot.lane.b32.xlu1 %v2267_v13, %s3713_s21  ;;  %v2917_v13 = vmul.f32 %v5173_v23, %v5291_v36  ;;  %v2054_v23 = vmul.f32 %v5562_v8, %v5295_v57  ;;  %v3502_v43 = vpack.i.bf16 %v2844_v15, %v2055_v35  ;;  %v1807_v15 = vmul.f32 0.0, %v5252_v19 }
 0x3bd   : > { %3493 = vrot.lane.b32.xlu0 %v3492_v46, %s3711_s19  ;;  %v3482_v46 = vpack.i.bf16 %v2917_v13, %v2161_v17  ;;  %v6206_v17 = vld [vmem:[#allocation17_spill] sm:$0xff] }
 0x3be   : > { %v5593_v13 = vsel %vm419_vm7, %v6206_v17, %v6205_v1 }
 0x3bf   : > { %3463 = vrot.lane.b32.xlu1 %v3462_v32, %s3714_s22  ;;  %v3487_v32 = vpack.i.bf16 %v2054_v23, %v2051_v58  ;;  %v1863_v7 = vmul.f32 %v5593_v13, %v5295_v57  ;;  %v1917_v23 = vmul.f32 %v5277_v5, %v5300_v42  ;;  %v1864_v58 = vmul.f32 %v6205_v1, %v5300_v42 }
 0x3c1   : > { %3498 = vrot.lane.b32.xlu0 %v3497_v18, %s3708_s14  ;;  %v2807_v18 = vmul.f32 %v1990_v48, %v5293_v63 }
 0x3c3   : > { %3473 = vrot.lane.b32.xlu1 %v3472_v53, %s3710_s18  ;;  %v5587_v53 = vsel %vm488_vm3, %v6204_v24, %v5277_v5  ;;  %v2627_v24 = vmul.f32 %v5382_v29, %v5293_v63 }
 0x3c4   : > { %v1916_v48 = vmul.f32 %v5587_v53, %v5295_v57 }
 0x3c5   : > { %3508 = vrot.lane.b32.xlu0 %v3507_v51, %s3711_s19  ;;  %v3527_v51 = vpack.i.bf16 %v2807_v18, %v2002_v62  ;;  %v2664_v62 = vmul.f32 %v5387_v49, %v5293_v63  ;;  %v2918_v49 = vmul.f32 %v5472_v41, %v5293_v63  ;;  %v2921_v41 = vmul.f32 0.0, %v6195_v20 }
 0x3c6   : > { %v3537_v34 = vpack.i.bf16 %v1916_v48, %v1913_v6  ;;  %v2845_v48 = vmul.f32 %v5535_v60, %v5295_v57  ;;  %v2919_v6 = vmul.f32 %v5486_v33, %v5295_v57  ;;  %v2882_v60 = vmul.f32 %v5480_v12, %v5295_v57 }
 0x3c7   : > { %3483 = vrot.lane.b32.xlu1 %v3482_v46, %s3714_s22  ;;  %v2847_v12 = vmul.f32 0.0, %v6203_v4 }
 0x3c9   : > { %3513 = vrot.lane.b32.xlu0 %v3512_v16, %s3708_s14  ;;  %v2701_v16 = vmul.f32 %v5377_v28, %v5293_v63  ;;  %v3557_v28 = vpack.i.bf16 %v2738_v47, %v1917_v23  ;;  %v2525_v47 = vpop.permute.xlu0 %2524 }
 0x3cb   : > { %3488 = vrot.lane.b32.xlu1 %v3487_v32, %s3710_s18  ;;  %v6210_v32 = vld [vmem:[#allocation28_spill] sm:$0xff]  ;;  %v3552_v52 = vpack.i.bf16 %v2701_v16, %v1864_v58  ;;  %v2883_v58 = vmul.f32 %v5501_v50, %v5300_v42  ;;  %v5682_v16 = vpop.permute.xlu1 %2577  ;;  %v2737_v50 = vmul.f32 %v5219_v9, %v5291_v36  ;;  %v2809_v9 = vmul.f32 %v5556_v26, %v5300_v42 }
 0x3cc   : > { %v5632_v35 = vsel %vm279_vm11, %v6210_v32, %v6209_v37 }
 0x3cd   : > { %3523 = vrot.lane.b32.xlu0 %v3522_v14, %s3709_s17  ;;  %v1860_v14 = vmul.f32 0.0, %v5221_v61  ;;  %v2576_v4 = vpop.permute.xlu0 %2575 }
 0x3cf   : > { %3503 = vrot.lane.b32.xlu1 %v3502_v43, %s3710_s18  ;;  %v3532_v46 = vpack.i.bf16 %v1863_v7, %v1860_v14  ;;  %v1758_v43 = vmul.f32 %v6209_v37, %v5300_v42  ;;  %v2920_v14 = vmul.f32 %v5507_v38, %v5300_v42  ;;  %v2808_v38 = vmul.f32 %v5529_v27, %v5295_v57 }
 0x3d0   : > { %v2700_v27 = vmul.f32 %v5221_v61, %v5291_v36  ;;  %v2626_v61 = vmul.f32 %v5239_v44, %v5291_v36 }
 0x3d1   : > { %3528 = vrot.lane.b32.xlu0 %v3527_v51, %s3708_s14  ;;  %v2843_v51 = vmul.f32 %v6197_v21, %v5291_v36  ;;  %v3572_v7 = vpack.i.bf16 %v2627_v24, %v1758_v43  ;;  %v2880_v21 = vmul.f32 %v5201_v11, %v5291_v36  ;;  %v3597_v33 = vpack.i.bf16 %v2921_v41, %v2920_v14  ;;  %v2527_v44 = vpop.permute.xlu0 %2526 }
 0x3d2   : > { %v2846_v11 = vmul.f32 %v5562_v8, %v5300_v42  ;;  %v2702_v8 = vmul.f32 %v5230_v40, %v5295_v57  ;;  %v2628_v40 = vmul.f32 %v5250_v3, %v5295_v57  ;;  %v2704_v3 = vmul.f32 0.0, %v6205_v1 }
 0x3d3   : > { %3518 = vrot.lane.b32.xlu1 %v3517_v2, %s3707_s9  ;;  %v5623_v2 = vsel %vm349_vm8, %v6208_v30, %v6207_v59  ;;  %v3587_v29 = vpack.i.bf16 %v2843_v51, %v2845_v48  ;;  %v3592_v23 = vpack.i.bf16 %v2880_v21, %v2882_v60  ;;  %v2884_v30 = vmul.f32 0.0, %v6194_v10  ;;  %v5700_v10 = vpop.permute.xlu1 %2579 }
 0x3d4   : > { %v1810_v55 = vmul.f32 %v5623_v2, %v5295_v57  ;;  %v2630_v14 = vmul.f32 0.0, %v6209_v37 }
 0x3d5   : > { %3538 = vrot.lane.b32.xlu0 %v3537_v34, %s3709_s17  ;;  %v3582_v34 = vpack.i.bf16 %v2919_v6, %v2918_v49  ;;  %v3612_v32 = vpack.i.bf16 %v2884_v30, %v2883_v58  ;;  %v2629_v49 = vmul.f32 %v5632_v35, %v5300_v42  ;;  %v2741_v6 = vmul.f32 0.0, %v5277_v5 }
 0x3d6   : > { %v3567_v0 = vpack.i.bf16 %v1810_v55, %v1807_v15  ;;  %v3617_v55 = vpack.i.bf16 %v2700_v27, %v2702_v8  ;;  %v2810_v15 = vmul.f32 0.0, %v6202_v56  ;;  %v2665_v56 = vmul.f32 %v5261_v45, %v5295_v57 }
 0x3d7   : > { %3533 = vrot.lane.b32.xlu1 %v3532_v46, %s3707_s9  ;;  %v2806_v46 = vmul.f32 %v6199_v54, %v5291_v36  ;;  %v3607_v54 = vpack.i.bf16 %v2847_v12, %v2846_v11  ;;  %v5722_v43 = vpop.permute.xlu1 %2448  ;;  %v2582_v45 = vsel %vm6215_vm2, %v2576_v4, %v5682_v16  ;;  %v3662_v37 = vpack.i.bf16 %v2630_v14, %v2629_v49 }
 0x3d8   : > { %v2591_v60 = vmul.f32 %v2582_v45, %v5295_v57  ;;  %v2666_v11 = vmul.f32 %v5623_v2, %v5300_v42  ;;  %v2667_v58 = vmul.f32 0.0, %v6207_v59  ;;  %v2540_v30 = vmul.f32 0.0, %v2527_v44 }
 0x3d9   : > { %3548 = vrot.lane.b32.xlu0 %v3547_v25, %s3706_s8  ;;  %v1757_v25 = vmul.f32 %v5632_v35, %v5295_v57  ;;  %v3602_v20 = vpack.i.bf16 %v2806_v46, %v2808_v38 }
 0x3db   : > { %3543 = vrot.lane.b32.xlu1 %v3542_v31, %s3704_s27  ;;  %v1811_v31 = vmul.f32 %v6207_v59, %v5300_v42  ;;  %v3562_v18 = vpack.i.bf16 %v1757_v25, %v1754_v39  ;;  %v3632_v25 = vpack.i.bf16 %v2626_v61, %v2628_v40  ;;  %v6211_v39 = vld [vmem:[#allocation13_spill] sm:$0xff]  ;;  %v3667_v59 = vpack.i.bf16 %v2667_v58, %v2666_v11 }
 0x3dc   : > { %v2529_v26 = vsel %vm6214_vm15, %v6211_v39, %v2525_v47  ;;  %vm6217_vm15 = vmmov %vm6215_vm2 }
 0x3dd   : > { %3558 = vrot.lane.b32.xlu0 %v3557_v28, %s3709_s17  ;;  %v3577_v17 = vpack.i.bf16 %v2664_v62, %v1811_v31  ;;  %v2739_v28 = vmul.f32 %v5237_v22, %v5295_v57  ;;  %v2703_v22 = vmul.f32 %v5593_v13, %v5300_v42  ;;  %v3627_v62 = vpack.i.bf16 %v2810_v15, %v2809_v9 }
 0x3de   : > { %v2663_v13 = vmul.f32 %v5252_v19, %v5291_v36  ;;  %v2538_v1 = vmul.f32 %v2529_v26, %v5295_v57  ;;  %v2740_v19 = vmul.f32 %v5587_v53, %v5300_v42 }
 0x3df   : > { %3553 = vrot.lane.b32.xlu1 %v3552_v52, %s3707_s9  ;;  %v3622_v52 = vpack.i.bf16 %v2737_v50, %v2739_v28  ;;  %v3642_v24 = vpack.i.bf16 %v2704_v3, %v2703_v22  ;;  %v2593_v22 = vmul.f32 0.0, %v5700_v10 }
 0x3e0   : > { %v3637_v51 = vpack.i.bf16 %v2663_v13, %v2665_v56  ;;  %v3647_v35 = vpack.i.bf16 %v2741_v6, %v2740_v19 }
 0x3e1   : > { %3568 = vrot.lane.b32.xlu0 %v3567_v0, %s3706_s8  ;;  %v6212_v0 = vld [vmem:[#allocation31_spill] sm:$0xff] }
 0x3e2   : > { %v2528_v31 = vsel %vm6213_vm1, %v6212_v0, %v6211_v39  ;;  %v2536_v5 = vmul.f32 %v6212_v0, %v5291_v36 }
 0x3e3   : > { %3563 = vrot.lane.b32.xlu1 %v3562_v18, %s3704_s27  ;;  %v2537_v18 = vmul.f32 %v2528_v31, %v5293_v63 }
 0x3e5   : > { %3578 = vrot.lane.b32.xlu0 %v3577_v17, %s3706_s8  ;;  %v5726_v17 = vpop.permute.xlu0 %2501  ;;  %v3652_v48 = vpack.i.bf16 %v2538_v1, %v2537_v18 }
 0x3e7   : > { %3573 = vrot.lane.b32.xlu1 %v3572_v7, %s3704_s27 }
 0x3e9   : > { %3588 = vrot.lane.b32.xlu0 %v3587_v29, %s3710_s18  ;;  %v2530_v29 = vsel %vm6213_vm1, %v2525_v47, %v2527_v44  ;;  %v2583_v47 = vsel %vm6215_vm2, %v5682_v16, %v5700_v10  ;;  %vm3120_vm1 = vcmask 719872  }
 0x3ea   : > { %v2592_v27 = vmul.f32 %v2583_v47, %v5300_v42 }
 0x3eb   : > { %3583 = vrot.lane.b32.xlu1 %v3582_v34, %s3714_s22  ;;  %v6216_v34 = vld [vmem:[#allocation30_spill] sm:$0xff] }
 0x3ec   : > { %v2581_v53 = vsel %vm6217_vm15, %v6216_v34, %v2576_v4  ;;  %v2589_v16 = vmul.f32 %v6216_v34, %v5291_v36 }
 0x3ed   : > { %3598 = vrot.lane.b32.xlu0 %v3597_v33, %s3714_s22  ;;  %v2590_v21 = vmul.f32 %v2581_v53, %v5293_v63  ;;  %v2539_v33 = vmul.f32 %v2530_v29, %v5300_v42 }
 0x3ef   : > { %3593 = vrot.lane.b32.xlu1 %v3592_v23, %s3711_s19  ;;  %v3657_v38 = vpack.i.bf16 %v2591_v60, %v2590_v21  ;;  %v3672_v12 = vpack.i.bf16 %v2539_v33, %v2536_v5 }
 0x3f1   : > { %3603 = vrot.lane.b32.xlu0 %v3602_v20, %s3708_s14 }
 0x3f3   : > { %3608 = vrot.lane.b32.xlu1 %v3607_v54, %s3710_s18  ;;  %v5768_v54 = vld [vmem:[%s6006_s3] sm:$0xff] }
 0x3f4   : > { %v3341_v2 = vcombine.high %v5768_v54, %v5768_v54 }
 0x3f5   : > { %3613 = vrot.lane.b32.xlu0 %v3612_v32, %s3711_s19 }
 0x3f6   : > { %3343 = vmatprep.mubr.msk.bf16.mxu0 %vm3120_vm1, %v3341_v2  ;;  %3345 = vmatprep.mubr.msk.bf16.mxu1 %vm3120_vm1, %v3341_v2 }
 0x3f7   : > { %3618 = vrot.lane.b32.xlu1 %v3617_v55, %s3707_s9  ;;  %v3677_v55 = vpack.i.bf16 %v2592_v27, %v2589_v16 }
 0x3f9   : > { %3623 = vrot.lane.b32.xlu0 %v3622_v52, %s3709_s17 }
 0x3fb   : > { %3633 = vrot.lane.b32.xlu1 %v3632_v25, %s3704_s27 }
 0x3fd   : > { %3628 = vrot.lane.b32.xlu0 %v3627_v62, %s3708_s14 }
 0x3ff   : > { %3643 = vrot.lane.b32.xlu1 %v3642_v24, %s3707_s9 }
 0x401   : > { %v5732_v7 = vpop.permute.xlu1 %3378  ;;  %3638 = vrot.lane.b32.xlu0 %v3637_v51, %s3706_s8 }
 0x403   : > { %3653 = vrot.lane.b32.xlu1 %v3652_v48, %s3720_s29  ;;  %v5745_v41 = vpop.permute.xlu0 %3403 }
 0x404   : > { %v3406_v15 = vunpack.i.h.bf16 %v5745_v41  ;;  %v3405_v44 = vunpack.i.l.bf16 %v5745_v41 }
 0x405   : > { %v5750_v46 = vpop.permute.xlu1 %3383  ;;  %3648 = vrot.lane.b32.xlu0 %v3647_v35, %s3709_s17 }
 0x406   : > { %v2451_v1 = vsel %vm980_vm12, %v3405_v44, %v3406_v15 }
 0x407   : > { %3663 = vrot.lane.b32.xlu1 %v3662_v37, %s3704_s27  ;;  %v5754_v23 = vpop.permute.xlu0 %3413  ;;  %s3349_s27 = sshll.u32 %s6237_s16, 5 }
 0x408   : > { %v3415_v62 = vunpack.i.l.bf16 %v5754_v23  ;;  %v3416_v10 = vunpack.i.h.bf16 %v5754_v23  ;;  %s197_s18 = scalar_lea.vmem %s6007_s4, %s3349_s27 }
 0x409   : > { %v5761_v20 = vpop.permute.xlu1 %3388  ;;  %3658 = vrot.lane.b32.xlu0 %v3657_v38, %s3718_s26 }
 0x40a   : > { %v3391_v32 = vunpack.i.h.bf16 %v5761_v20  ;;  %v2450_v49 = vsel %vm980_vm12, %v3415_v62, %v3405_v44  ;;  %v2452_v29 = vsel %vm980_vm12, %v3406_v15, %v3416_v10  ;;  %v2453_v5 = vsel %vm980_vm12, %v3416_v10, %v5722_v43 }
 0x40b   : > { %3673 = vrot.lane.b32.xlu1 %v3672_v12, %s3720_s29  ;;  %v3424_v8 = vpop.permute.xlu0 %3423  ;;  %vm6219_vm12 = vcmask 56320  }
 0x40c   : > { %v3426_v13 = vunpack.i.h.bf16 %v3424_v8  ;;  %v3425_v56 = vunpack.i.l.bf16 %v3424_v8 }
 0x40d   : > { %v3394_v4 = vpop.permute.xlu1 %3393  ;;  %3668 = vrot.lane.b32.xlu0 %v3667_v59, %s3706_s8 }
 0x40e   : > { %v3396_v50 = vunpack.i.h.bf16 %v3394_v4  ;;  %v3395_v28 = vunpack.i.l.bf16 %v3394_v4  ;;  %v2390_v6 = vsel %vm1005_vm13, %v3425_v56, %v3426_v13 }
 0x40f   : > { %2554 = vrot.lane.b32.xlu1 %v2540_v30, %s3720_s29  ;;  %v5782_v40 = vpop.permute.xlu0 %3433  ;;  %v3083_v23 = vpack.c.bf16 %v5293_v63, %v2390_v6 }
 0x410   : > { %v5780_v61 = vsel %vm545_vm10, %v3396_v50, %v3391_v32  ;;  %v5785_v52 = vsel %vm545_vm10, %v3391_v32, %v3395_v28  ;;  %v3436_v11 = vunpack.i.h.bf16 %v5782_v40  ;;  %v3435_v47 = vunpack.i.l.bf16 %v5782_v40 }
 0x411   : > { %v5787_v9 = vpop.permute.xlu1 %3398  ;;  %3678 = vrot.lane.b32.xlu0 %v3677_v55, %s3718_s26 }
 0x412   : > { %v3400_v25 = vunpack.i.l.bf16 %v5787_v9 }
 0x413   : > { %v2388_v39 = vpop.permute.xlu0 %2387 }
 0x414   : > { %v5797_v3 = vsel %vm545_vm10, %v3395_v28, %v3400_v25 }
 0x415   : > { %v3409_v0 = vpop.permute.xlu1 %3408  ;;  %2607 = vrot.lane.b32.xlu0 %v2593_v22, %s3718_s26 }
 0x416   : > { %v3411_v31 = vunpack.i.h.bf16 %v3409_v0  ;;  %v3410_v26 = vunpack.i.l.bf16 %v3409_v0 }
 0x417   : > { %v5802_v18 = vpop.permute.xlu0 %3448 }
 0x418   : > { %v2504_v24 = vsel %vm932_vm9, %v3410_v26, %v3411_v31  ;;  %v3451_v62 = vunpack.i.h.bf16 %v5802_v18 }
 0x419   : > { %v3419_v51 = vpop.permute.xlu1 %3418  ;;  %v3087_v19 = vpack.c.bf16 %v2504_v24, %v2451_v1 }
 0x41a   : > { %v3421_v48 = vunpack.i.h.bf16 %v3419_v51  ;;  %v3420_v45 = vunpack.i.l.bf16 %v3419_v51 }
 0x41b   : > { %3136 = vmatprep.subr.bf16.mxu0 %v3087_v19  ;;  %v5811_v53 = vpop.permute.xlu0 %3458 }
 0x41c   : > { %v2505_v14 = vsel %vm932_vm9, %v3411_v31, %v3421_v48  ;;  %v2503_v34 = vsel %vm932_vm9, %v3420_v45, %v3410_v26  ;;  %v2506_v21 = vsel %vm932_vm9, %v3421_v48, %v5726_v17  ;;  %vm6218_vm9 = vcmask 64512  }
 0x41d   : > { %v3086_v60 = vpack.c.bf16 %v2503_v34, %v2450_v49  ;;  %v3088_v41 = vpack.c.bf16 %v2505_v14, %v2452_v29  ;;  %v3429_v35 = vpop.permute.xlu1 %3428  ;;  %v3089_v38 = vpack.c.bf16 %v2506_v21, %v2453_v5  ;;  %v2284_v4 = vsel %vm6218_vm9, %v3435_v47, %v3436_v11  ;;  %vm6221_vm15 = vmmov %vm6218_vm9 }
 0x41e   : > { %v3431_v33 = vunpack.i.h.bf16 %v3429_v35  ;;  %v3430_v37 = vunpack.i.l.bf16 %v3429_v35  ;;  %v3461_v55 = vunpack.i.h.bf16 %v5811_v53  ;;  %vm6222_vm1 = vmmov %vm6218_vm9 }
 0x41f   : > { %3137 = vmatpush1.bf16.msra.mxu0 %v3086_v60  ;;  %v2335_v58 = vpop.permute.xlu0 %2334  ;;  %3177 = vmatprep.subr.bf16.mxu1 %v3089_v38  ;;  %vm6223_vm9 = vmmov %vm6219_vm12 }
 0x420   : > { %v2389_v12 = vsel %vm1005_vm13, %v3430_v37, %v3425_v56  ;;  %v2391_v17 = vsel %vm1005_vm13, %v3426_v13, %v3431_v33  ;;  %3138 = vmatprep.subr.bf16.mxu0 %v3083_v23  ;;  %v2392_v2 = vsel %vm1005_vm13, %v3431_v33, %v2388_v39  ;;  %3178 = vmatpush1.bf16.msra.mxu1 %v3088_v41  ;;  %vm6220_vm13 = vmmov %vm6219_vm12 }
 0x421   : > { %v3082_v43 = vpack.c.bf16 %v5291_v36, %v2389_v12  ;;  %v3084_v16 = vpack.c.bf16 %v5295_v57, %v2391_v17  ;;  %v3439_v63 = vpop.permute.xlu1 %3438  ;;  %v3085_v27 = vpack.c.bf16 %v5300_v42, %v2392_v2  ;;  %v3450_v36 = vunpack.i.l.bf16 %v5802_v18 }
 0x422   : > { %v3441_v8 = vunpack.i.h.bf16 %v3439_v63  ;;  %v3440_v59 = vunpack.i.l.bf16 %v3439_v63  ;;  %v3460_v42 = vunpack.i.l.bf16 %v5811_v53  ;;  %v2339_v19 = vsel %vm6223_vm9, %v3451_v62, %v2335_v58 }
 0x423   : > { %3139 = vmatpush1.bf16.msra.mxu0 %v3082_v43  ;;  %3179 = vmatprep.subr.bf16.mxu1 %v3085_v27  ;;  %v5826_v30 = vpop.permute.xlu0 %3468 }
 0x424   : > { %v2337_v32 = vsel %vm6219_vm12, %v3440_v59, %v3441_v8  ;;  %3180 = vmatpush1.bf16.msra.mxu1 %v3084_v16  ;;  %v2336_v40 = vsel %vm6220_vm13, %v3450_v36, %v3440_v59  ;;  %v2231_v10 = vsel %vm6215_vm2, %v3460_v42, %v3461_v55  ;;  %vm6224_vm12 = vmmov %vm6222_vm1  ;;  %v3470_v6 = vunpack.i.l.bf16 %v5826_v30 }
 0x425   : > { %v3444_v50 = vpop.permute.xlu1 %3443  ;;  %v3079_v28 = vpack.c.bf16 %v2337_v32, %v2284_v4  ;;  %vm6225_vm13 = vmmov %vm6223_vm9  ;;  %v3471_v17 = vunpack.i.h.bf16 %v5826_v30  ;;  %v3381_v30 = vunpack.i.h.bf16 %v5732_v7  ;;  %vm6228_vm9 = vcmask 1043456  }
 0x426   : > { %v3445_v57 = vunpack.i.l.bf16 %v3444_v50  ;;  %v3446_v44 = vunpack.i.h.bf16 %v3444_v50  ;;  %v2338_v45 = vsel %vm6225_vm13, %v3441_v8, %v3451_v62  ;;  %v3380_v50 = vunpack.i.l.bf16 %v5732_v7  ;;  %vm6230_vm13 = vmmov %vm6228_vm9 }
 0x427   : > { %3140 = vmatprep.subr.bf16.mxu0 %v3079_v28  ;;  %v5835_v15 = vpop.permute.xlu0 %3478 }
 0x428   : > { %v2283_v22 = vsel %vm6221_vm15, %v3445_v57, %v3435_v47  ;;  %v2285_v1 = vsel %vm6222_vm1, %v3436_v11, %v3446_v44  ;;  %vm6226_vm15 = vmmov %vm6215_vm2  ;;  %v3481_v21 = vunpack.i.h.bf16 %v5835_v15  ;;  %v3480_v60 = vunpack.i.l.bf16 %v5835_v15 }
 0x429   : > { %v3078_v39 = vpack.c.bf16 %v2336_v40, %v2283_v22  ;;  %v3454_v0 = vpop.permute.xlu1 %3453  ;;  %v3080_v18 = vpack.c.bf16 %v2338_v45, %v2285_v1  ;;  %v2230_v53 = vsel %vm6226_vm15, %v3470_v6, %v3460_v42  ;;  %vm6227_vm1 = vmmov %vm6215_vm2  ;;  %v3385_v15 = vunpack.i.l.bf16 %v5750_v46 }
 0x42a   : > { %v3456_v31 = vunpack.i.h.bf16 %v3454_v0  ;;  %v3455_v26 = vunpack.i.l.bf16 %v3454_v0  ;;  %v2125_v12 = vsel %vm349_vm8, %v3480_v60, %v3481_v21  ;;  %v2232_v28 = vsel %vm6227_vm1, %v3461_v55, %v3471_v17 }
 0x42b   : > { %3141 = vmatpush1.bf16.msra.mxu0 %v3078_v39  ;;  %v2229_v13 = vpop.permute.xlu0 %2228 }
 0x42c   : > { %v2178_v56 = vsel %vm279_vm11, %v3455_v26, %v3456_v31  ;;  %v2233_v8 = vsel %vm6215_vm2, %v3471_v17, %v2229_v13 }
 0x42d   : > { %v2282_v24 = vpop.permute.xlu1 %2281  ;;  %v3075_v51 = vpack.c.bf16 %v2231_v10, %v2178_v56  ;;  %v1966_v56 = vsel %vm545_vm10, %v3380_v50, %v3381_v30  ;;  %v3386_v10 = vunpack.i.h.bf16 %v5750_v46 }
 0x42e   : > { %v2286_v48 = vsel %vm6224_vm12, %v3446_v44, %v2282_v24  ;;  %vm6229_vm12 = vmmov %vm6228_vm9 }
 0x42f   : > { %v3081_v49 = vpack.c.bf16 %v2339_v19, %v2286_v48  ;;  %3142 = vmatprep.subr.bf16.mxu0 %v3075_v51  ;;  %v5845_v29 = vpop.permute.xlu0 %3493  ;;  %v1965_v19 = vsel %vm545_vm10, %v3385_v15, %v3380_v50  ;;  %v3390_v48 = vunpack.i.l.bf16 %v5761_v20 }
 0x430   : > { %v3495_v59 = vunpack.i.l.bf16 %v5845_v29  ;;  %v3496_v55 = vunpack.i.h.bf16 %v5845_v29 }
 0x431   : > { %v3464_v14 = vpop.permute.xlu1 %3463  ;;  %3181 = vmatprep.subr.bf16.mxu1 %v3081_v49 }
 0x432   : > { %v3465_v34 = vunpack.i.l.bf16 %v3464_v14  ;;  %3182 = vmatpush1.bf16.msra.mxu1 %v3080_v18  ;;  %v3466_v23 = vunpack.i.h.bf16 %v3464_v14  ;;  %v2124_v0 = vsel %vm349_vm8, %v3495_v59, %v3480_v60 }
 0x433   : > { %v5851_v35 = vpop.permute.xlu0 %3498 }
 0x434   : > { %v2177_v41 = vsel %vm279_vm11, %v3465_v34, %v3455_v26  ;;  %v2179_v16 = vsel %vm279_vm11, %v3456_v31, %v3466_v23  ;;  %v3501_v63 = vunpack.i.h.bf16 %v5851_v35  ;;  %v3500_v27 = vunpack.i.l.bf16 %v5851_v35 }
 0x435   : > { %v3074_v5 = vpack.c.bf16 %v2230_v53, %v2177_v41  ;;  %v3474_v33 = vpop.permute.xlu1 %3473  ;;  %v3076_v42 = vpack.c.bf16 %v2232_v28, %v2179_v16  ;;  %v2126_v34 = vsel %vm349_vm8, %v3481_v21, %v3496_v55 }
 0x436   : > { %v3476_v37 = vunpack.i.h.bf16 %v3474_v33  ;;  %v3475_v38 = vunpack.i.l.bf16 %v3474_v33  ;;  %v2019_v39 = vsel %vm488_vm3, %v3500_v27, %v3501_v63 }
 0x437   : > { %3143 = vmatpush1.bf16.msra.mxu0 %v3074_v5  ;;  %v5853_v11 = vpop.permute.xlu0 %3508  ;;  %v3067_v51 = vpack.c.bf16 %v2019_v39, %v1966_v56 }
 0x438   : > { %v2072_v47 = vsel %vm419_vm7, %v3475_v38, %v3476_v37  ;;  %v3510_v31 = vunpack.i.l.bf16 %v5853_v11 }
 0x439   : > { %v5858_v58 = vpop.permute.xlu1 %3483  ;;  %v3071_v2 = vpack.c.bf16 %v2125_v12, %v2072_v47 }
 0x43a   : > { %v3485_v43 = vunpack.i.l.bf16 %v5858_v58  ;;  %v2127_v14 = vsel %vm349_vm8, %v3496_v55, %v3510_v31 }
 0x43b   : > { %3144 = vmatprep.subr.bf16.mxu0 %v3071_v2  ;;  %v3514_v4 = vpop.permute.xlu0 %3513  ;;  %v1967_v2 = vsel %vm545_vm10, %v3381_v30, %v3386_v10 }
 0x43c   : > { %v2180_v32 = vsel %vm279_vm11, %v3466_v23, %v3485_v43  ;;  %v3515_v40 = vunpack.i.l.bf16 %v3514_v4  ;;  %v3516_v45 = vunpack.i.h.bf16 %v3514_v4 }
 0x43d   : > { %v3489_v36 = vpop.permute.xlu1 %3488  ;;  %v3077_v57 = vpack.c.bf16 %v2233_v8, %v2180_v32 }
 0x43e   : > { %v3490_v22 = vunpack.i.l.bf16 %v3489_v36  ;;  %v3491_v44 = vunpack.i.h.bf16 %v3489_v36  ;;  %v2018_v1 = vsel %vm488_vm3, %v3515_v40, %v3500_v27 }
 0x43f   : > { %3183 = vmatprep.subr.bf16.mxu1 %v3077_v57  ;;  %v5875_v7 = vpop.permute.xlu0 %3523  ;;  %v3066_v53 = vpack.c.bf16 %v2018_v1, %v1965_v19 }
 0x440   : > { %v2071_v26 = vsel %vm419_vm7, %v3490_v22, %v3475_v38  ;;  %3184 = vmatpush1.bf16.msra.mxu1 %v3076_v42  ;;  %v2073_v49 = vsel %vm419_vm7, %v3476_v37, %v3491_v44  ;;  %v3526_v6 = vunpack.i.h.bf16 %v5875_v7  ;;  %v3525_v18 = vunpack.i.l.bf16 %v5875_v7 }
 0x441   : > { %v3070_v62 = vpack.c.bf16 %v2124_v0, %v2071_v26  ;;  %v5878_v13 = vpop.permute.xlu1 %3503  ;;  %v3072_v35 = vpack.c.bf16 %v2126_v34, %v2073_v49  ;;  %v2020_v37 = vsel %vm488_vm3, %v3501_v63, %v3516_v45  ;;  %v1968_v38 = vsel %vm545_vm10, %v3386_v10, %v3390_v48 }
 0x442   : > { %v3505_v24 = vunpack.i.l.bf16 %v5878_v13  ;;  %v1934_v17 = vsel %vm514_vm6, %v3525_v18, %v3526_v6  ;;  %v3068_v8 = vpack.c.bf16 %v2020_v37, %v1967_v2  ;;  %v3486_v37 = vunpack.i.h.bf16 %v5858_v58 }
 0x443   : > { %3145 = vmatpush1.bf16.msra.mxu0 %v3070_v62  ;;  %v5889_v29 = vpop.permute.xlu0 %3528 }
 0x444   : > { %3146 = vmatprep.subr.bf16.mxu0 %v3067_v51  ;;  %v2074_v46 = vsel %vm419_vm7, %v3491_v44, %v3505_v24  ;;  %v3530_v20 = vunpack.i.l.bf16 %v5889_v29 }
 0x445   : > { %v3519_v60 = vpop.permute.xlu1 %3518  ;;  %v3073_v41 = vpack.c.bf16 %v2127_v14, %v2074_v46 }
 0x446   : > { %v3521_v5 = vunpack.i.h.bf16 %v3519_v60  ;;  %v3520_v33 = vunpack.i.l.bf16 %v3519_v60  ;;  %v2021_v23 = vsel %vm488_vm3, %v3516_v45, %v3530_v20 }
 0x447   : > { %3147 = vmatpush1.bf16.msra.mxu0 %v3066_v53  ;;  %3185 = vmatprep.subr.bf16.mxu1 %v3073_v41  ;;  %v3539_v47 = vpop.permute.xlu0 %3538  ;;  %v3069_v12 = vpack.c.bf16 %v2021_v23, %v1968_v38 }
 0x448   : > { %3186 = vmatpush1.bf16.msra.mxu1 %v3072_v35  ;;  %v1881_v21 = vsel %vm444_vm4, %v3520_v33, %v3521_v5  ;;  %v3540_v43 = vunpack.i.l.bf16 %v3539_v47  ;;  %v3541_v39 = vunpack.i.h.bf16 %v3539_v47 }
 0x449   : > { %v3534_v16 = vpop.permute.xlu1 %3533  ;;  %v3063_v27 = vpack.c.bf16 %v1934_v17, %v1881_v21  ;;  %3187 = vmatprep.subr.bf16.mxu1 %v3069_v12 }
 0x44a   : > { %v3535_v63 = vunpack.i.l.bf16 %v3534_v16  ;;  %v1933_v59 = vsel %vm514_vm6, %v3540_v43, %v3525_v18  ;;  %v3536_v30 = vunpack.i.h.bf16 %v3534_v16  ;;  %v1935_v1 = vsel %vm514_vm6, %v3526_v6, %v3541_v39 }
 0x44b   : > { %3148 = vmatprep.subr.bf16.mxu0 %v3063_v27  ;;  %v3549_v32 = vpop.permute.xlu0 %3548  ;;  %v3511_v16 = vunpack.i.h.bf16 %v5853_v11  ;;  %v3506_v27 = vunpack.i.h.bf16 %v5878_v13 }
 0x44c   : > { %v1880_v4 = vsel %vm444_vm4, %v3535_v63, %v3520_v33  ;;  %3188 = vmatpush1.bf16.msra.mxu1 %v3068_v8  ;;  %v3551_v28 = vunpack.i.h.bf16 %v3549_v32  ;;  %v3550_v36 = vunpack.i.l.bf16 %v3549_v32  ;;  %v1882_v55 = vsel %vm444_vm4, %v3521_v5, %v3536_v30 }
 0x44d   : > { %v3062_v50 = vpack.c.bf16 %v1933_v59, %v1880_v4  ;;  %v3544_v57 = vpop.permute.xlu1 %3543  ;;  %v3064_v48 = vpack.c.bf16 %v1935_v1, %v1882_v55 }
 0x44e   : > { %v3546_v42 = vunpack.i.h.bf16 %v3544_v57  ;;  %v3545_v40 = vunpack.i.l.bf16 %v3544_v57  ;;  %v1828_v44 = vsel %vm375_vm5, %v3550_v36, %v3551_v28 }
 0x44f   : > { %3149 = vmatpush1.bf16.msra.mxu0 %v3062_v50  ;;  %v5903_v22 = vpop.permute.xlu0 %3558 }
 0x450   : > { %v1775_v15 = vsel %vm305_vm0, %v3545_v40, %v3546_v42  ;;  %v3560_v0 = vunpack.i.l.bf16 %v5903_v22 }
 0x451   : > { %v5908_v31 = vpop.permute.xlu1 %3553  ;;  %v3059_v26 = vpack.c.bf16 %v1828_v44, %v1775_v15 }
 0x452   : > { %v3555_v7 = vunpack.i.l.bf16 %v5908_v31  ;;  %v1936_v10 = vsel %vm514_vm6, %v3541_v39, %v3560_v0 }
 0x453   : > { %3150 = vmatprep.subr.bf16.mxu0 %v3059_v26  ;;  %v3569_v62 = vpop.permute.xlu0 %3568 }
 0x454   : > { %v1883_v56 = vsel %vm444_vm4, %v3536_v30, %v3555_v7  ;;  %v3570_v24 = vunpack.i.l.bf16 %v3569_v62  ;;  %v3571_v34 = vunpack.i.h.bf16 %v3569_v62 }
 0x455   : > { %v3564_v51 = vpop.permute.xlu1 %3563  ;;  %v3065_v19 = vpack.c.bf16 %v1936_v10, %v1883_v56 }
 0x456   : > { %v3565_v45 = vunpack.i.l.bf16 %v3564_v51  ;;  %v3566_v49 = vunpack.i.h.bf16 %v3564_v51  ;;  %v1827_v18 = vsel %vm375_vm5, %v3570_v24, %v3550_v36  ;;  %v1829_v38 = vsel %vm375_vm5, %v3551_v28, %v3571_v34 }
 0x457   : > { %3189 = vmatprep.subr.bf16.mxu1 %v3065_v19  ;;  %v5917_v14 = vpop.permute.xlu0 %3578  ;;  %v3531_v36 = vunpack.i.h.bf16 %v5889_v29 }
 0x458   : > { %v1774_v46 = vsel %vm305_vm0, %v3565_v45, %v3545_v40  ;;  %3190 = vmatpush1.bf16.msra.mxu1 %v3064_v48  ;;  %v3580_v20 = vunpack.i.l.bf16 %v5917_v14  ;;  %v1776_v41 = vsel %vm305_vm0, %v3546_v42, %v3566_v49 }
 0x459   : > { %v3058_v53 = vpack.c.bf16 %v1827_v18, %v1774_v46  ;;  %v5920_v60 = vpop.permute.xlu1 %3573  ;;  %v3060_v12 = vpack.c.bf16 %v1829_v38, %v1776_v41 }
 0x45a   : > { %v3575_v6 = vunpack.i.l.bf16 %v5920_v60  ;;  %v1830_v33 = vsel %vm375_vm5, %v3571_v34, %v3580_v20 }
 0x45b   : > { %3151 = vmatpush1.bf16.msra.mxu0 %v3058_v53  ;;  %v3589_v35 = vpop.permute.xlu0 %3588 }
 0x45c   : > { %v1777_v5 = vsel %vm305_vm0, %v3566_v49, %v3575_v6  ;;  %v3591_v21 = vunpack.i.h.bf16 %v3589_v35  ;;  %v3590_v43 = vunpack.i.l.bf16 %v3589_v35 }
 0x45d   : > { %v3584_v23 = vpop.permute.xlu1 %3583  ;;  %v3061_v47 = vpack.c.bf16 %v1830_v33, %v1777_v5 }
 0x45e   : > { %v3586_v17 = vunpack.i.h.bf16 %v3584_v23  ;;  %v3585_v2 = vunpack.i.l.bf16 %v3584_v23  ;;  %v2863_v57 = vsel %vm419_vm7, %v3591_v21, %v3506_v27  ;;  %v2864_v15 = vsel %vm419_vm7, %v3506_v27, %v3590_v43 }
 0x45f   : > { %3191 = vmatprep.subr.bf16.mxu1 %v3061_v47  ;;  %v3599_v63 = vpop.permute.xlu0 %3598  ;;  %v3561_v23 = vunpack.i.h.bf16 %v5903_v22  ;;  %v3556_v47 = vunpack.i.h.bf16 %v5908_v31 }
 0x460   : > { %v2938_v8 = vsel %vm279_vm11, %v3585_v2, %v3586_v17  ;;  %3192 = vmatpush1.bf16.msra.mxu1 %v3060_v12  ;;  %v2937_v58 = vsel %vm279_vm11, %v3486_v37, %v3585_v2  ;;  %v3601_v4 = vunpack.i.h.bf16 %v3599_v63  ;;  %v3600_v32 = vunpack.i.l.bf16 %v3599_v63 }
 0x461   : > { %v3111_v59 = vpack.c.bf16 %v2938_v8, %v2938_v8  ;;  %v3594_v50 = vpop.permute.xlu1 %3593  ;;  %v3110_v28 = vpack.c.bf16 %v2937_v58, %v2937_v58 }
 0x462   : > { %v3596_v42 = vunpack.i.h.bf16 %v3594_v50  ;;  %v3595_v40 = vunpack.i.l.bf16 %v3594_v50  ;;  %v2940_v11 = vsel %vm279_vm11, %v3600_v32, %v3601_v4  ;;  %v2939_v30 = vsel %vm279_vm11, %v3586_v17, %v3600_v32  ;;  %vm6231_vm11 = vmmov %vm6228_vm9 }
 0x463   : > { %3342 = vmatprep.subr.msk.bf16.mxu0 %vm6228_vm9, %v3111_v59  ;;  %v3125_v13 = vsel %vm6229_vm12, %v3110_v28, 0  ;;  %v3113_v44 = vpack.c.bf16 %v2940_v11, %v2940_v11  ;;  %v3604_v0 = vpop.permute.xlu0 %3603  ;;  %v3112_v29 = vpack.c.bf16 %v2939_v30, %v2939_v30  ;;  %v3401_v17 = vunpack.i.h.bf16 %v5787_v9 }
 0x464   : > { %v2900_v39 = vsel %vm349_vm8, %v3596_v42, %v3511_v16  ;;  %3157 = vmatpush2.bf16.msra.mxu0 %v3125_v13  ;;  %v2901_v26 = vsel %vm349_vm8, %v3511_v16, %v3595_v40  ;;  %v3606_v55 = vunpack.i.h.bf16 %v3604_v0  ;;  %v3605_v62 = vunpack.i.l.bf16 %v3604_v0 }
 0x465   : > { %v3106_v7 = vpack.c.bf16 %v2900_v39, %v2863_v57  ;;  %v3609_v56 = vpop.permute.xlu1 %3608  ;;  %v3107_v10 = vpack.c.bf16 %v2901_v26, %v2864_v15  ;;  %3344 = vmatprep.subr.msk.bf16.mxu1 %vm6230_vm13, %v3113_v44  ;;  %v3131_v51 = vsel %vm6231_vm11, %v3112_v29, 0  ;;  %v2792_v4 = vsel %vm545_vm10, %v3400_v25, %v3401_v17 }
 0x466   : > { %v3611_v1 = vunpack.i.h.bf16 %v3609_v56  ;;  %v3610_v24 = vunpack.i.l.bf16 %v3609_v56  ;;  %v2826_v19 = vsel %vm488_vm3, %v3606_v55, %v3531_v36  ;;  %3198 = vmatpush2.bf16.msra.mxu1 %v3131_v51  ;;  %v2827_v48 = vsel %vm488_vm3, %v3531_v36, %v3605_v62 }
 0x467   : > { %3158 = vmatprep.subr.bf16.mxu0 %v3107_v10  ;;  %v3614_v45 = vpop.permute.xlu0 %3613  ;;  %v3103_v49 = vpack.c.bf16 %v2827_v48, %v5785_v52  ;;  %v3102_v53 = vpack.c.bf16 %v2826_v19, %v5780_v61  ;;  %v3581_v11 = vunpack.i.h.bf16 %v5917_v14  ;;  %v3576_v13 = vunpack.i.h.bf16 %v5920_v60 }
 0x468   : > { %3159 = vmatpush2.bf16.msra.mxu0 %v3106_v7  ;;  %v3616_v18 = vunpack.i.h.bf16 %v3614_v45  ;;  %v3615_v46 = vunpack.i.l.bf16 %v3614_v45  ;;  %v2865_v20 = vsel %vm419_vm7, %v3590_v43, %v3610_v24  ;;  %v2866_v6 = vsel %vm419_vm7, %v3610_v24, %v3611_v1 }
 0x469   : > { %v3619_v34 = vpop.permute.xlu1 %3618  ;;  %3160 = vmatprep.subr.bf16.mxu0 %v3103_v49 }
 0x46a   : > { %v2902_v41 = vsel %vm349_vm8, %v3595_v40, %v3615_v46  ;;  %v3621_v35 = vunpack.i.h.bf16 %v3619_v34  ;;  %v3620_v5 = vunpack.i.l.bf16 %v3619_v34  ;;  %v2903_v33 = vsel %vm349_vm8, %v3615_v46, %v3616_v18 }
 0x46b   : > { %v3108_v37 = vpack.c.bf16 %v2902_v41, %v2865_v20  ;;  %v3624_v38 = vpop.permute.xlu0 %3623  ;;  %v3109_v52 = vpack.c.bf16 %v2903_v33, %v2866_v6 }
 0x46c   : > { %3161 = vmatpush2.bf16.msra.mxu0 %v3102_v53  ;;  %v3626_v61 = vunpack.i.h.bf16 %v3624_v38  ;;  %v3625_v12 = vunpack.i.l.bf16 %v3624_v38  ;;  %v2720_v2 = vsel %vm444_vm4, %v3621_v35, %v3556_v47  ;;  %v2721_v16 = vsel %vm444_vm4, %v3556_v47, %v3620_v5 }
 0x46d   : > { %v5953_v21 = vpop.permute.xlu1 %3633  ;;  %3199 = vmatprep.subr.bf16.mxu1 %v3109_v52 }
 0x46e   : > { %v2757_v43 = vsel %vm514_vm6, %v3626_v61, %v3561_v23  ;;  %3200 = vmatpush2.bf16.msra.mxu1 %v3108_v37  ;;  %v2758_v27 = vsel %vm514_vm6, %v3561_v23, %v3625_v12  ;;  %v3636_v32 = vunpack.i.h.bf16 %v5953_v21  ;;  %v3635_v50 = vunpack.i.l.bf16 %v5953_v21 }
 0x46f   : > { %v3098_v8 = vpack.c.bf16 %v2757_v43, %v2720_v2  ;;  %v3629_v22 = vpop.permute.xlu0 %3628  ;;  %v3099_v63 = vpack.c.bf16 %v2758_v27, %v2721_v16 }
 0x470   : > { %v3631_v31 = vunpack.i.h.bf16 %v3629_v22  ;;  %v3630_v58 = vunpack.i.l.bf16 %v3629_v22  ;;  %v2646_v39 = vsel %vm305_vm0, %v3636_v32, %v3576_v13  ;;  %v3340_v32 = vcombine.low %v5768_v54, %v5768_v54 }
 0x471   : > { %v3644_v59 = vpop.permute.xlu1 %3643  ;;  %3162 = vmatprep.subr.bf16.mxu0 %v3099_v63 }
 0x472   : > { %v2828_v28 = vsel %vm488_vm3, %v3605_v62, %v3630_v58  ;;  %3163 = vmatpush2.bf16.msra.mxu0 %v3098_v8  ;;  %v2829_v36 = vsel %vm488_vm3, %v3630_v58, %v3631_v31  ;;  %v3646_v15 = vunpack.i.h.bf16 %v3644_v59  ;;  %v3645_v44 = vunpack.i.l.bf16 %v3644_v59 }
 0x473   : > { %v3104_v57 = vpack.c.bf16 %v2828_v28, %v5797_v3  ;;  %v3639_v42 = vpop.permute.xlu0 %3638  ;;  %v3105_v40 = vpack.c.bf16 %v2829_v36, %v2792_v4  ;;  %v2647_v3 = vsel %vm305_vm0, %v3576_v13, %v3635_v50  ;;  %vm6232_vm3 = vcmask 973824  }
 0x474   : > { %v3641_v9 = vunpack.i.h.bf16 %v3639_v42  ;;  %v3640_v30 = vunpack.i.l.bf16 %v3639_v42  ;;  %v2722_v62 = vsel %vm444_vm4, %v3620_v5, %v3645_v44  ;;  %v2723_v10 = vsel %vm444_vm4, %v3645_v44, %v3646_v15  ;;  %vm6233_vm4 = vmmov %vm6232_vm3 }
 0x475   : > { %v5970_v25 = vpop.permute.xlu1 %3653  ;;  %3201 = vmatprep.subr.bf16.mxu1 %v3105_v40 }
 0x476   : > { %v2683_v0 = vsel %vm375_vm5, %v3641_v9, %v3581_v11  ;;  %3202 = vmatpush2.bf16.msra.mxu1 %v3104_v57  ;;  %v2684_v29 = vsel %vm375_vm5, %v3581_v11, %v3640_v30  ;;  %v3656_v1 = vunpack.i.h.bf16 %v5970_v25  ;;  %v3655_v24 = vunpack.i.l.bf16 %v5970_v25 }
 0x477   : > { %v3094_v26 = vpack.c.bf16 %v2683_v0, %v2646_v39  ;;  %v3649_v14 = vpop.permute.xlu0 %3648  ;;  %v3095_v7 = vpack.c.bf16 %v2684_v29, %v2647_v3 }
 0x478   : > { %v3651_v60 = vunpack.i.h.bf16 %v3649_v14  ;;  %v3650_v55 = vunpack.i.l.bf16 %v3649_v14  ;;  %v2557_v20 = vsel %vm885_vm14, %v3655_v24, %v3656_v1 }
 0x479   : > { %v3664_v56 = vpop.permute.xlu1 %3663  ;;  %3164 = vmatprep.subr.bf16.mxu0 %v3095_v7 }
 0x47a   : > { %v2759_v51 = vsel %vm514_vm6, %v3625_v12, %v3650_v55  ;;  %3165 = vmatpush2.bf16.msra.mxu0 %v3094_v26  ;;  %v2760_v19 = vsel %vm514_vm6, %v3650_v55, %v3651_v60  ;;  %v3665_v34 = vunpack.i.l.bf16 %v3664_v56  ;;  %v3666_v53 = vunpack.i.h.bf16 %v3664_v56  ;;  %vm6234_vm6 = vmmov %vm6232_vm3 }
 0x47b   : > { %v3100_v48 = vpack.c.bf16 %v2759_v51, %v2722_v62  ;;  %v3659_v45 = vpop.permute.xlu0 %3658  ;;  %v3101_v49 = vpack.c.bf16 %v2760_v19, %v2723_v10 }
 0x47c   : > { %v3661_v18 = vunpack.i.h.bf16 %v3659_v45  ;;  %v3660_v46 = vunpack.i.l.bf16 %v3659_v45  ;;  %v2648_v38 = vsel %vm305_vm0, %v3635_v50, %v3665_v34  ;;  %v2649_v47 = vsel %vm305_vm0, %v3665_v34, %v3666_v53  ;;  %vm6235_vm0 = vmmov %vm6232_vm3 }
 0x47d   : > { %3203 = vmatprep.subr.bf16.mxu1 %v3101_v49  ;;  %v3674_v41 = vpop.permute.xlu1 %3673 }
 0x47e   : > { %3204 = vmatpush2.bf16.msra.mxu1 %v3100_v48  ;;  %v2610_v6 = vsel %vm6232_vm3, %v3660_v46, %v3661_v18  ;;  %v3675_v52 = vunpack.i.l.bf16 %v3674_v41  ;;  %v3676_v16 = vunpack.i.h.bf16 %v3674_v41 }
 0x47f   : > { %v3669_v35 = vpop.permute.xlu0 %3668  ;;  %v3091_v5 = vpack.c.bf16 %v2610_v6, %v2557_v20 }
 0x480   : > { %v3671_v33 = vunpack.i.h.bf16 %v3669_v35  ;;  %v3670_v37 = vunpack.i.l.bf16 %v3669_v35  ;;  %v2556_v8 = vsel %vm885_vm14, %v3675_v52, %v3655_v24  ;;  %v2558_v50 = vsel %vm885_vm14, %v3656_v1, %v3676_v16 }
 0x481   : > { %3166 = vmatprep.subr.bf16.mxu0 %v3091_v5  ;;  %v2555_v27 = vpop.permute.xlu1 %2554 }
 0x482   : > { %v2685_v23 = vsel %vm375_vm5, %v3640_v30, %v3670_v37  ;;  %v2686_v61 = vsel %vm375_vm5, %v3670_v37, %v3671_v33  ;;  %v2559_v59 = vsel %vm885_vm14, %v3676_v16, %v2555_v27 }
 0x483   : > { %v3096_v12 = vpack.c.bf16 %v2685_v23, %v2648_v38  ;;  %v3679_v21 = vpop.permute.xlu0 %3678  ;;  %v3097_v17 = vpack.c.bf16 %v2686_v61, %v2649_v47 }
 0x484   : > { %v3681_v2 = vunpack.i.h.bf16 %v3679_v21  ;;  %v3680_v43 = vunpack.i.l.bf16 %v3679_v21 }
 0x485   : > { %3205 = vmatprep.subr.bf16.mxu1 %v3097_v17 }
 0x486   : > { %v2609_v22 = vsel %vm6233_vm4, %v3680_v43, %v3660_v46  ;;  %3206 = vmatpush2.bf16.msra.mxu1 %v3096_v12  ;;  %v2611_v63 = vsel %vm6234_vm6, %v3661_v18, %v3681_v2 }
 0x487   : > { %v3090_v31 = vpack.c.bf16 %v2609_v22, %v2556_v8  ;;  %v2608_v58 = vpop.permute.xlu0 %2607  ;;  %v3092_v36 = vpack.c.bf16 %v2611_v63, %v2558_v50 }
 0x488   : > { %v2612_v4 = vsel %vm6235_vm0, %v3681_v2, %v2608_v58 }
 0x489   : > { %v3093_v28 = vpack.c.bf16 %v2612_v4, %v2559_v59  ;;  %3167 = vmatpush2.bf16.msra.mxu0 %v3090_v31 }
 0x48b   : > { %3207 = vmatprep.subr.bf16.mxu1 %v3093_v28 }
 0x48c   : > { %3169 = vmatmul.mubr.bf16.vlgmr.msra.gmra.mxu0 %v3340_v32  ;;  %3208 = vmatpush2.bf16.msra.mxu1 %v3092_v36 }
 0x48f   : > { %3210 = vmatmul.mubr.bf16.vlgmr.msra.gmra.mxu1 %v3340_v32 }
 0x54c   : > { %v3170_v57 = vpop.f32.mrf.mxu0 }
 0x54d   : > { %v3224_v40 = vmul.f32 %v3170_v57, %v3170_v57 }
 0x54e   : > { %v3172_v42 = vpop.f32.mrf.mxu0 }
 0x54f   : > { %v3218_v11 = vadd.f32 %v3172_v42, %v3170_v57  ;;  %v3225_v13 = vmul.f32 %v3172_v42, %v3172_v42  ;;  %v3211_v9 = vpop.f32.mrf.mxu1 }
 0x550   : > { %v3226_v30 = vmul.f32 %v3211_v9, %v3211_v9  ;;  %v3174_v25 = vpop.f32.mrf.mxu0 }
 0x551   : > { %v3228_v15 = vadd.f32 %v3225_v13, %v3224_v40  ;;  %v3219_v44 = vadd.f32 %v3218_v11, %v3211_v9  ;;  %v3213_v54 = vpop.f32.mrf.mxu1 }
 0x552   : > { %v3227_v39 = vmul.f32 %v3213_v54, %v3213_v54  ;;  %v3175_v0 = vpop.f32.mrf.mxu0 }
 0x553   : > { %v3229_v3 = vadd.f32 %v3228_v15, %v3226_v30  ;;  %v3220_v29 = vadd.f32 %v3219_v44, %v3213_v54  ;;  %v3215_v26 = vpop.f32.mrf.mxu1 }
 0x555   : > { %v3216_v14 = vpop.f32.mrf.mxu1  ;;  %3221 = vadd.xlane.f32.xlu1 %v3220_v29  ;;  %v3230_v7 = vadd.f32 %v3229_v3, %v3227_v39 }
 0x557   : > { %3231 = vadd.xlane.f32.xlu0 %v3230_v7 }
 0x5de   : > { %v3222_v60 = vpop.xlane.xlu1 %3221 }
 0x5df   : > { %v3223_v55 = vmul.f32 0.001953125, %v3222_v60 }
 0x5e0   : > { %v3232_v62 = vpop.xlane.xlu0 %3231 }
 0x5e1   : > { %v3233_v56 = vmul.f32 0.001953125, %v3232_v62  ;;  %v3234_v10 = vmul.f32 %v3223_v55, %v3223_v55  ;;  %v3236_v51 = vsub.f32 %v3170_v57, %v3223_v55  ;;  %v3237_v19 = vsub.f32 %v3172_v42, %v3223_v55 }
 0x5e2   : > { %v3238_v48 = vsub.f32 %v3211_v9, %v3223_v55  ;;  %v3239_v45 = vsub.f32 %v3213_v54, %v3223_v55 }
 0x5e3   : > { %v3235_v1 = vsub.f32 %v3233_v56, %v3234_v10 }
 0x5e5   : > { %v3240_v24 = vadd.f32 1e-05, %v3235_v1 }
 0x5e7   : > { %3690 = vrsqrt.f32 %v3240_v24 }
 0x5f4   : > { %v3691_v49 = vpop.eup %3690 }
 0x5f5   : > { %v3242_v18 = vmul.f32 %v3691_v49, %v3236_v51  ;;  %v3243_v46 = vmul.f32 %v3691_v49, %v3237_v19  ;;  %v3244_v34 = vmul.f32 %v3691_v49, %v3238_v48  ;;  %v3245_v53 = vmul.f32 %v3691_v49, %v3239_v45 }
 0x5f7   : > { %v3246_v20 = vmax.f32 %v3242_v18, 0.0  ;;  %v3247_v6 = vmax.f32 %v3243_v46, 0.0  ;;  %v3248_v41 = vmax.f32 %v3244_v34, 0.0  ;;  %v3249_v35 = vmax.f32 %v3245_v53, 0.0 }
 0x5f9   : > { %3250 = vst [vmem:[%s197_s18] sm:$0xff] %v3246_v20  ;;  %3251 = vst [vmem:[%s197_s18 + $0x8] sm:$0xff] %v3247_v6 }
 0x5fa   : > { %3252 = vst [vmem:[%s197_s18 + $0x10] sm:$0xff] %v3248_v41  ;;  %3253 = vst [vmem:[%s197_s18 + $0x18] sm:$0xff] %v3249_v35 }
 0x5fb PF: > { %s14_s15 = sadd.s32 1, %s3702_s15  }
 0x5fc   : > { %p11_p4 = scmp.ge.s32.totalorder %s14_s15, 4  }
 0x5fe   :  { %13 = sbr.rel (!%p11_p4) target bundleno = 1 (0x1), region = 73 }

</bundles_post_ra>
